<compile_context>
chip_gen: v7x
topology: tpu7x:2x2x1
jax: 0.10.0
libtpu: 0.0.40
codegen_flags: <defaults>
</compile_context>

<pallas_src>
import functools

import jax
import jax.numpy as jnp
from jax import lax
from jax.experimental import pallas as pl
from jax.experimental.pallas import tpu as pltpu

_LANES = 128


def _aspp_sum_kernel(x_ref, w_ref, bsum_ref, out_ref, xpad_s, col_s, *,
                     dilations, pmax, H, W):
    """Grid = (N, Cin_tiles); the Cin axis (innermost) is the reduction axis.

    x_ref    : (1, H, W, TCin)      bf16 UNPADDED NHWC input (one Cin slice)
    w_ref    : (B, 3, 3, TCin, Cp)  bf16 branch weights, Cout padded to 128
    bsum_ref : (1, Cp)              f32 sum of all branch biases
    out_ref  : (1, H*W, Cp)         f32 output block, resident across Cin steps
    xpad_s   : (Hp, Wp, TCin)       bf16 zero-halo padded input scratch
    col_s    : (Hp, W, 3*TCin)      bf16 hoisted kw-slices (per-branch im2col)
    """
    c = pl.program_id(1)
    tcin = x_ref.shape[-1]
    cp = out_ref.shape[-1]

    # Zero the whole padded scratch once per image; the interior is then
    # overwritten every step, so the halo stays zero for all Cin tiles/taps.
    @pl.when(c == 0)
    def _zero_halo():
        xpad_s[...] = jnp.zeros_like(xpad_s)

    xpad_s[pmax:pmax + H, pmax:pmax + W, :] = x_ref[0]

    # Seed the resident output block with the summed branch bias (fp32).
    @pl.when(c == 0)
    def _init_out():
        out_ref[0, ...] = jnp.broadcast_to(bsum_ref[...], (H * W, cp))

    total = None
    # enumerate() (not .index()) so duplicate dilation values stay correct.
    for b, d in enumerate(dilations):
        # Hoist the strided W-slices out of the kh loop: one per kw, written
        # side by side -> col_s doubles as the kw-axis im2col buffer.
        for kw in range(3):
            w0 = pmax - d + kw * d
            col_s[:, :, kw * tcin:(kw + 1) * tcin] = xpad_s[:, w0:w0 + W, :]
        for kh in range(3):
            h0 = pmax - d + kh * d
            # Cheap contiguous outer-dim row slice; one K=3*tcin MXU matmul.
            patch = col_s[h0:h0 + H, :, :].reshape(H * W, 3 * tcin)
            wrow = w_ref[b, kh].reshape(3 * tcin, cp)
            part = jnp.dot(patch, wrow, preferred_element_type=jnp.float32)
            total = part if total is None else total + part

    # Single read-modify-write of the resident output block per grid step.
    out_ref[0, ...] += total


def _physical_vmem_bytes():
    try:
        return int(pltpu.get_tpu_info().vmem_capacity_bytes)
    except Exception:
        return 64 * 2**20          # conservative fallback (v7x per-TC size)


def _pick_cin_tile(cin, vmem_phys_bytes):
    if cin <= 512:
        return cin
    # Smaller-VMEM generations (v7x: 64 MiB/TC) prefer smaller Cin tiles.
    prefs = (512, 256, 128) if vmem_phys_bytes >= 96 * 2**20 else (256, 128, 512)
    for t in prefs:
        if cin % t == 0:
            return t
    return cin  # TODO(synk): remainder handling on the Cin reduction axis.


def classifier_module_forward(x_nchw, weights_oihw, biases, dilations):
    """x_nchw: (N, Cin, H, W); weights_oihw: (B, Cout, Cin, 3, 3); biases: (B, Cout)."""
    N, Cin, H, W = x_nchw.shape
    B, Cout = weights_oihw.shape[0], weights_oihw.shape[1]
    pmax = max(dilations)
    Hp, Wp = H + 2 * pmax, W + 2 * pmax
    Cp = ((Cout + _LANES - 1) // _LANES) * _LANES            # lane-dense Cout
    out_dtype = x_nchw.dtype

    phys_vmem = _physical_vmem_bytes()
    tcin = _pick_cin_tile(Cin, phys_vmem)
    n_ct = Cin // tcin

    # ---- glue: layout conversion / bf16 cast / weight repack (NO HBM pad) ----
    x_nhwc = jnp.transpose(x_nchw, (0, 2, 3, 1)).astype(jnp.bfloat16)
    w_k = jnp.transpose(weights_oihw, (0, 3, 4, 2, 1)).astype(jnp.bfloat16)  # (B,3,3,Cin,Cout)
    w_k = jnp.pad(w_k, ((0, 0), (0, 0), (0, 0), (0, 0), (0, Cp - Cout)))
    bsum = jnp.pad(jnp.sum(biases.astype(jnp.float32), axis=0),
                   (0, Cp - Cout)).reshape(1, Cp)

    kernel = functools.partial(_aspp_sum_kernel, dilations=tuple(dilations),
                               pmax=pmax, H=H, W=W)

    # Scoped-VMEM budget from the actual footprint (no double counting),
    # capped by the physical VMEM of the current generation.
    vmem_est = (2 * H * W * tcin * 2            # double-buffered input block (bf16)
                + 2 * B * 9 * tcin * Cp * 2     # double-buffered weight block (bf16)
                + 2 * H * W * Cp * 4            # double-buffered output block (f32)
                + Hp * Wp * tcin * 2            # padded-input scratch (bf16)
                + Hp * W * 3 * tcin * 2         # hoisted kw-slice scratch (bf16)
                + H * W * 3 * tcin * 2          # live row patch (bf16)
                + 2 * H * W * Cp * 4)           # dot result + running total (f32)
    vmem_limit = int(min(max(int(1.3 * vmem_est) + (2 << 20), 16 * 2**20),
                         int(0.75 * phys_vmem)))

    out_flat = pl.pallas_call(
        kernel,
        out_shape=jax.ShapeDtypeStruct((N, H * W, Cp), jnp.float32),
        grid_spec=pltpu.PrefetchScalarGridSpec(
            num_scalar_prefetch=0,
            grid=(N, n_ct),
            in_specs=[
                pl.BlockSpec((1, H, W, tcin), lambda n, c: (n, 0, 0, c)),
                pl.BlockSpec((B, 3, 3, tcin, Cp), lambda n, c: (0, 0, 0, c, 0)),
                pl.BlockSpec((1, Cp), lambda n, c: (0, 0)),
            ],
            out_specs=pl.BlockSpec((1, H * W, Cp), lambda n, c: (n, 0, 0)),
            scratch_shapes=[pltpu.VMEM((Hp, Wp, tcin), jnp.bfloat16),
                            pltpu.VMEM((Hp, W, 3 * tcin), jnp.bfloat16)],
        ),
        compiler_params=pltpu.CompilerParams(
            dimension_semantics=("parallel", "arbitrary"),
            vmem_limit_bytes=vmem_limit),
    )(x_nhwc, w_k, bsum)

    out_nhwc = out_flat.reshape(N, H, W, Cp)[..., :Cout]
    return jnp.transpose(out_nhwc, (0, 3, 1, 2)).astype(out_dtype)  # back to NCHW


def reference_forward(x, weights_oihw, biases, dilations):
    """Pure-JAX reference matching the PyTorch module exactly."""
    out = None
    for b, d in enumerate(dilations):
        y = lax.conv_general_dilated(
            x, weights_oihw[b],
            window_strides=(1, 1),
            padding=((d, d), (d, d)),
            rhs_dilation=(d, d),
            dimension_numbers=("NCHW", "OIHW", "NCHW"),
            precision=lax.Precision.HIGHEST,
        )
        y = y + biases[b][None, :, None, None]
        out = y if out is None else out + y
    return out


if __name__ == "__main__":
    key = jax.random.PRNGKey(0)
    N, Cin, H, W = 2, 4, 16, 16
    num_classes = 8
    # Classifier_Module(inplanes, dilation_series, padding_series, num_classes)
    # with padding_i == dilation_i (standard DeepLab usage), scaled-down demo.
    dilations = [1, 2, 3, 4]
    B = len(dilations)

    kw_, kb_, kx_ = jax.random.split(key, 3)
    # m.weight.data.normal_(0, 0.01); PyTorch-default-style uniform bias init.
    weights = 0.01 * jax.random.normal(kw_, (B, num_classes, Cin, 3, 3), jnp.float32)
    bound = 1.0 / (Cin * 3 * 3) ** 0.5
    biases = jax.random.uniform(kb_, (B, num_classes), jnp.float32, -bound, bound)
    x = jax.random.normal(kx_, (N, Cin, H, W), jnp.float32)

    out = classifier_module_forward(x, weights, biases, dilations)
    out = jax.block_until_ready(out)
    assert out.shape == (N, num_classes, H, W), out.shape

    # Tight check: reference on the same bf16-rounded operands (the kernel feeds
    # the MXU in bf16 with fp32 accumulation), isolating kernel correctness.
    x_r = x.astype(jnp.bfloat16).astype(jnp.float32)
    w_r = weights.astype(jnp.bfloat16).astype(jnp.float32)
    ref_bf16 = reference_forward(x_r, w_r, biases, dilations)
    err = float(jnp.max(jnp.abs(out - ref_bf16)))
    assert jnp.allclose(out, ref_bf16, atol=1e-4, rtol=1e-4), err

    # Looser sanity check against the full-fp32 reference (bf16 input rounding).
    ref_f32 = reference_forward(x, weights, biases, dilations)
    err32 = float(jnp.max(jnp.abs(out - ref_f32)))
    assert jnp.allclose(out, ref_f32, atol=5e-3, rtol=5e-3), err32

    print("KERNEL_OK")
</pallas_src>

<mosaic_0001>
module attributes {stable_mosaic.version = 11 : i64} {
  func.func @_aspp_sum_kernel(%arg0: i32, %arg1: i32, %arg2: memref<1x16x16x4xbf16, #tpu.memory_space<vmem>>, %arg3: memref<4x3x3x4x128xbf16, #tpu.memory_space<vmem>>, %arg4: memref<1x128xf32, #tpu.memory_space<vmem>>, %arg5: memref<1x256x128xf32, #tpu.memory_space<vmem>>, %arg6: memref<24x24x4xbf16, #tpu.memory_space<vmem>>, %arg7: memref<24x16x12xbf16, #tpu.memory_space<vmem>>) attributes {dimension_semantics = [#tpu.dimension_semantics<parallel>, #tpu.dimension_semantics<arbitrary>], iteration_bounds = array<i64: 2, 1>, scalar_prefetch = 0 : i64, scratch_operands = 2 : i64, tpu.core_type = #tpu.core_type<tc>, window_params = [{transform_indices = @transform_0, window_bounds = array<i64: 1, 16, 16, 4>}, {transform_indices = @transform_1, window_bounds = array<i64: 4, 3, 3, 4, 128>}, {pipeline_mode = #tpu.pipeline_mode<synchronous>, transform_indices = @transform_2, window_bounds = array<i64: 1, 128>}, {transform_indices = @transform_3, window_bounds = array<i64: 1, 256, 128>}]} {
    %c0_i32 = arith.constant 0 : i32
    %0 = arith.cmpi eq, %arg1, %c0_i32 : i32
    %1 = arith.extui %0 : i1 to i32
    %c0_i32_0 = arith.constant 0 : i32
    %2 = arith.cmpi ne, %1, %c0_i32_0 : i32
    scf.if %2 {
      %cst_186 = arith.constant 0.000000e+00 : bf16
      %122 = vector.broadcast %cst_186 : bf16 to vector<24x24x4xbf16>
      %c0_187 = arith.constant 0 : index
      %c0_188 = arith.constant 0 : index
      %c0_189 = arith.constant 0 : index
      %123 = vector.load %arg6[%c0_187, %c0_188, %c0_189] : memref<24x24x4xbf16, #tpu.memory_space<vmem>>, vector<24x24x4xbf16>
      tpu.vector_store %arg6[%c0_187, %c0_188, %c0_189], %122 {strides = array<i32>} : memref<24x24x4xbf16, #tpu.memory_space<vmem>>, vector<24x24x4xbf16>,
    } else {
    }
    %c0 = arith.constant 0 : index
    %c0_1 = arith.constant 0 : index
    %c0_2 = arith.constant 0 : index
    %c0_3 = arith.constant 0 : index
    %3 = vector.load %arg2[%c0, %c0_1, %c0_2, %c0_3] : memref<1x16x16x4xbf16, #tpu.memory_space<vmem>>, vector<1x16x16x4xbf16>
    %4 = vector.shape_cast %3 : vector<1x16x16x4xbf16> to vector<16x16x4xbf16>
    %c4 = arith.constant 4 : index
    %c4_4 = arith.constant 4 : index
    %c0_5 = arith.constant 0 : index
    %5 = vector.load %arg6[%c4, %c4_4, %c0_5] : memref<24x24x4xbf16, #tpu.memory_space<vmem>>, vector<16x16x4xbf16>
    tpu.vector_store %arg6[%c4, %c4_4, %c0_5], %4 {strides = array<i32>} : memref<24x24x4xbf16, #tpu.memory_space<vmem>>, vector<16x16x4xbf16>,
    %c0_i32_6 = arith.constant 0 : i32
    %6 = arith.cmpi eq, %arg1, %c0_i32_6 : i32
    %7 = arith.extui %6 : i1 to i32
    %c0_i32_7 = arith.constant 0 : i32
    %8 = arith.cmpi ne, %7, %c0_i32_7 : i32
    scf.if %8 {
      %c0_186 = arith.constant 0 : index
      %c0_187 = arith.constant 0 : index
      %122 = vector.load %arg4[%c0_186, %c0_187] : memref<1x128xf32, #tpu.memory_space<vmem>>, vector<1x128xf32>
      %123 = vector.shape_cast %122 : vector<1x128xf32> to vector<1x128xf32>
      %124 = vector.broadcast %123 : vector<1x128xf32> to vector<256x128xf32>
      %c0_188 = arith.constant 0 : index
      %c0_189 = arith.constant 0 : index
      %c0_190 = arith.constant 0 : index
      %125 = vector.load %arg5[%c0_188, %c0_189, %c0_190] : memref<1x256x128xf32, #tpu.memory_space<vmem>>, vector<1x256x128xf32>
      %126 = vector.shape_cast %125 : vector<1x256x128xf32> to vector<256x128xf32>
      %127 = vector.shape_cast %124 : vector<256x128xf32> to vector<1x256x128xf32>
      tpu.vector_store %arg5[%c0_188, %c0_189, %c0_190], %127 {strides = array<i32>} : memref<1x256x128xf32, #tpu.memory_space<vmem>>, vector<1x256x128xf32>,
    } else {
    }
    %c0_8 = arith.constant 0 : index
    %c3 = arith.constant 3 : index
    %c0_9 = arith.constant 0 : index
    %9 = vector.load %arg6[%c0_8, %c3, %c0_9] : memref<24x24x4xbf16, #tpu.memory_space<vmem>>, vector<24x16x4xbf16>
    %c0_10 = arith.constant 0 : index
    %c0_11 = arith.constant 0 : index
    %c0_12 = arith.constant 0 : index
    %10 = vector.load %arg7[%c0_10, %c0_11, %c0_12] : memref<24x16x12xbf16, #tpu.memory_space<vmem>>, vector<24x16x4xbf16>
    tpu.vector_store %arg7[%c0_10, %c0_11, %c0_12], %9 {strides = array<i32>} : memref<24x16x12xbf16, #tpu.memory_space<vmem>>, vector<24x16x4xbf16>,
    %c0_13 = arith.constant 0 : index
    %c4_14 = arith.constant 4 : index
    %c0_15 = arith.constant 0 : index
    %11 = vector.load %arg6[%c0_13, %c4_14, %c0_15] : memref<24x24x4xbf16, #tpu.memory_space<vmem>>, vector<24x16x4xbf16>
    %c0_16 = arith.constant 0 : index
    %c0_17 = arith.constant 0 : index
    %c4_18 = arith.constant 4 : index
    %12 = vector.load %arg7[%c0_16, %c0_17, %c4_18] : memref<24x16x12xbf16, #tpu.memory_space<vmem>>, vector<24x16x4xbf16>
    tpu.vector_store %arg7[%c0_16, %c0_17, %c4_18], %11 {strides = array<i32>} : memref<24x16x12xbf16, #tpu.memory_space<vmem>>, vector<24x16x4xbf16>,
    %c0_19 = arith.constant 0 : index
    %c5 = arith.constant 5 : index
    %c0_20 = arith.constant 0 : index
    %13 = vector.load %arg6[%c0_19, %c5, %c0_20] : memref<24x24x4xbf16, #tpu.memory_space<vmem>>, vector<24x16x4xbf16>
    %c0_21 = arith.constant 0 : index
    %c0_22 = arith.constant 0 : index
    %c8 = arith.constant 8 : index
    %14 = vector.load %arg7[%c0_21, %c0_22, %c8] : memref<24x16x12xbf16, #tpu.memory_space<vmem>>, vector<24x16x4xbf16>
    tpu.vector_store %arg7[%c0_21, %c0_22, %c8], %13 {strides = array<i32>} : memref<24x16x12xbf16, #tpu.memory_space<vmem>>, vector<24x16x4xbf16>,
    %c3_23 = arith.constant 3 : index
    %c0_24 = arith.constant 0 : index
    %c0_25 = arith.constant 0 : index
    %15 = vector.load %arg7[%c3_23, %c0_24, %c0_25] : memref<24x16x12xbf16, #tpu.memory_space<vmem>>, vector<16x16x12xbf16>
    %16 = vector.shape_cast %15 : vector<16x16x12xbf16> to vector<256x12xbf16>
    %c0_26 = arith.constant 0 : index
    %c0_27 = arith.constant 0 : index
    %c0_28 = arith.constant 0 : index
    %c0_29 = arith.constant 0 : index
    %c0_30 = arith.constant 0 : index
    %17 = vector.load %arg3[%c0_26, %c0_27, %c0_28, %c0_29, %c0_30] : memref<4x3x3x4x128xbf16, #tpu.memory_space<vmem>>, vector<1x1x3x4x128xbf16>
    %18 = vector.shape_cast %17 : vector<1x1x3x4x128xbf16> to vector<3x4x128xbf16>
    %19 = vector.shape_cast %18 : vector<3x4x128xbf16> to vector<12x128xbf16>
    %cst = arith.constant dense<0.000000e+00> : vector<256x128xf32>
    %20 = tpu.matmul %16, %19, %cst {dimension_numbers = #tpu.dot_dimension_numbers<[1], [0], [0], [1], [0, 0, 1, 1], [], []>} : vector<256x12xbf16>, vector<12x128xbf16>, vector<256x128xf32> -> vector<256x128xf32>
    %c4_31 = arith.constant 4 : index
    %c0_32 = arith.constant 0 : index
    %c0_33 = arith.constant 0 : index
    %21 = vector.load %arg7[%c4_31, %c0_32, %c0_33] : memref<24x16x12xbf16, #tpu.memory_space<vmem>>, vector<16x16x12xbf16>
    %22 = vector.shape_cast %21 : vector<16x16x12xbf16> to vector<256x12xbf16>
    %c0_34 = arith.constant 0 : index
    %c1 = arith.constant 1 : index
    %c0_35 = arith.constant 0 : index
    %c0_36 = arith.constant 0 : index
    %c0_37 = arith.constant 0 : index
    %23 = vector.load %arg3[%c0_34, %c1, %c0_35, %c0_36, %c0_37] : memref<4x3x3x4x128xbf16, #tpu.memory_space<vmem>>, vector<1x1x3x4x128xbf16>
    %24 = vector.shape_cast %23 : vector<1x1x3x4x128xbf16> to vector<3x4x128xbf16>
    %25 = vector.shape_cast %24 : vector<3x4x128xbf16> to vector<12x128xbf16>
    %cst_38 = arith.constant dense<0.000000e+00> : vector<256x128xf32>
    %26 = tpu.matmul %22, %25, %cst_38 {dimension_numbers = #tpu.dot_dimension_numbers<[1], [0], [0], [1], [0, 0, 1, 1], [], []>} : vector<256x12xbf16>, vector<12x128xbf16>, vector<256x128xf32> -> vector<256x128xf32>
    %27 = arith.addf %20, %26 : vector<256x128xf32>
    %c5_39 = arith.constant 5 : index
    %c0_40 = arith.constant 0 : index
    %c0_41 = arith.constant 0 : index
    %28 = vector.load %arg7[%c5_39, %c0_40, %c0_41] : memref<24x16x12xbf16, #tpu.memory_space<vmem>>, vector<16x16x12xbf16>
    %29 = vector.shape_cast %28 : vector<16x16x12xbf16> to vector<256x12xbf16>
    %c0_42 = arith.constant 0 : index
    %c2 = arith.constant 2 : index
    %c0_43 = arith.constant 0 : index
    %c0_44 = arith.constant 0 : index
    %c0_45 = arith.constant 0 : index
    %30 = vector.load %arg3[%c0_42, %c2, %c0_43, %c0_44, %c0_45] : memref<4x3x3x4x128xbf16, #tpu.memory_space<vmem>>, vector<1x1x3x4x128xbf16>
    %31 = vector.shape_cast %30 : vector<1x1x3x4x128xbf16> to vector<3x4x128xbf16>
    %32 = vector.shape_cast %31 : vector<3x4x128xbf16> to vector<12x128xbf16>
    %cst_46 = arith.constant dense<0.000000e+00> : vector<256x128xf32>
    %33 = tpu.matmul %29, %32, %cst_46 {dimension_numbers = #tpu.dot_dimension_numbers<[1], [0], [0], [1], [0, 0, 1, 1], [], []>} : vector<256x12xbf16>, vector<12x128xbf16>, vector<256x128xf32> -> vector<256x128xf32>
    %34 = arith.addf %27, %33 : vector<256x128xf32>
    %c0_47 = arith.constant 0 : index
    %c2_48 = arith.constant 2 : index
    %c0_49 = arith.constant 0 : index
    %35 = vector.load %arg6[%c0_47, %c2_48, %c0_49] : memref<24x24x4xbf16, #tpu.memory_space<vmem>>, vector<24x16x4xbf16>
    %c0_50 = arith.constant 0 : index
    %c0_51 = arith.constant 0 : index
    %c0_52 = arith.constant 0 : index
    %36 = vector.load %arg7[%c0_50, %c0_51, %c0_52] : memref<24x16x12xbf16, #tpu.memory_space<vmem>>, vector<24x16x4xbf16>
    tpu.vector_store %arg7[%c0_50, %c0_51, %c0_52], %35 {strides = array<i32>} : memref<24x16x12xbf16, #tpu.memory_space<vmem>>, vector<24x16x4xbf16>,
    %c0_53 = arith.constant 0 : index
    %c4_54 = arith.constant 4 : index
    %c0_55 = arith.constant 0 : index
    %37 = vector.load %arg6[%c0_53, %c4_54, %c0_55] : memref<24x24x4xbf16, #tpu.memory_space<vmem>>, vector<24x16x4xbf16>
    %c0_56 = arith.constant 0 : index
    %c0_57 = arith.constant 0 : index
    %c4_58 = arith.constant 4 : index
    %38 = vector.load %arg7[%c0_56, %c0_57, %c4_58] : memref<24x16x12xbf16, #tpu.memory_space<vmem>>, vector<24x16x4xbf16>
    tpu.vector_store %arg7[%c0_56, %c0_57, %c4_58], %37 {strides = array<i32>} : memref<24x16x12xbf16, #tpu.memory_space<vmem>>, vector<24x16x4xbf16>,
    %c0_59 = arith.constant 0 : index
    %c6 = arith.constant 6 : index
    %c0_60 = arith.constant 0 : index
    %39 = vector.load %arg6[%c0_59, %c6, %c0_60] : memref<24x24x4xbf16, #tpu.memory_space<vmem>>, vector<24x16x4xbf16>
    %c0_61 = arith.constant 0 : index
    %c0_62 = arith.constant 0 : index
    %c8_63 = arith.constant 8 : index
    %40 = vector.load %arg7[%c0_61, %c0_62, %c8_63] : memref<24x16x12xbf16, #tpu.memory_space<vmem>>, vector<24x16x4xbf16>
    tpu.vector_store %arg7[%c0_61, %c0_62, %c8_63], %39 {strides = array<i32>} : memref<24x16x12xbf16, #tpu.memory_space<vmem>>, vector<24x16x4xbf16>,
    %c2_64 = arith.constant 2 : index
    %c0_65 = arith.constant 0 : index
    %c0_66 = arith.constant 0 : index
    %41 = vector.load %arg7[%c2_64, %c0_65, %c0_66] : memref<24x16x12xbf16, #tpu.memory_space<vmem>>, vector<16x16x12xbf16>
    %42 = vector.shape_cast %41 : vector<16x16x12xbf16> to vector<256x12xbf16>
    %c1_67 = arith.constant 1 : index
    %c0_68 = arith.constant 0 : index
    %c0_69 = arith.constant 0 : index
    %c0_70 = arith.constant 0 : index
    %c0_71 = arith.constant 0 : index
    %43 = vector.load %arg3[%c1_67, %c0_68, %c0_69, %c0_70, %c0_71] : memref<4x3x3x4x128xbf16, #tpu.memory_space<vmem>>, vector<1x1x3x4x128xbf16>
    %44 = vector.shape_cast %43 : vector<1x1x3x4x128xbf16> to vector<3x4x128xbf16>
    %45 = vector.shape_cast %44 : vector<3x4x128xbf16> to vector<12x128xbf16>
    %cst_72 = arith.constant dense<0.000000e+00> : vector<256x128xf32>
    %46 = tpu.matmul %42, %45, %cst_72 {dimension_numbers = #tpu.dot_dimension_numbers<[1], [0], [0], [1], [0, 0, 1, 1], [], []>} : vector<256x12xbf16>, vector<12x128xbf16>, vector<256x128xf32> -> vector<256x128xf32>
    %47 = arith.addf %34, %46 : vector<256x128xf32>
    %c4_73 = arith.constant 4 : index
    %c0_74 = arith.constant 0 : index
    %c0_75 = arith.constant 0 : index
    %48 = vector.load %arg7[%c4_73, %c0_74, %c0_75] : memref<24x16x12xbf16, #tpu.memory_space<vmem>>, vector<16x16x12xbf16>
    %49 = vector.shape_cast %48 : vector<16x16x12xbf16> to vector<256x12xbf16>
    %c1_76 = arith.constant 1 : index
    %c1_77 = arith.constant 1 : index
    %c0_78 = arith.constant 0 : index
    %c0_79 = arith.constant 0 : index
    %c0_80 = arith.constant 0 : index
    %50 = vector.load %arg3[%c1_76, %c1_77, %c0_78, %c0_79, %c0_80] : memref<4x3x3x4x128xbf16, #tpu.memory_space<vmem>>, vector<1x1x3x4x128xbf16>
    %51 = vector.shape_cast %50 : vector<1x1x3x4x128xbf16> to vector<3x4x128xbf16>
    %52 = vector.shape_cast %51 : vector<3x4x128xbf16> to vector<12x128xbf16>
    %cst_81 = arith.constant dense<0.000000e+00> : vector<256x128xf32>
    %53 = tpu.matmul %49, %52, %cst_81 {dimension_numbers = #tpu.dot_dimension_numbers<[1], [0], [0], [1], [0, 0, 1, 1], [], []>} : vector<256x12xbf16>, vector<12x128xbf16>, vector<256x128xf32> -> vector<256x128xf32>
    %54 = arith.addf %47, %53 : vector<256x128xf32>
    %c6_82 = arith.constant 6 : index
    %c0_83 = arith.constant 0 : index
    %c0_84 = arith.constant 0 : index
    %55 = vector.load %arg7[%c6_82, %c0_83, %c0_84] : memref<24x16x12xbf16, #tpu.memory_space<vmem>>, vector<16x16x12xbf16>
    %56 = vector.shape_cast %55 : vector<16x16x12xbf16> to vector<256x12xbf16>
    %c1_85 = arith.constant 1 : index
    %c2_86 = arith.constant 2 : index
    %c0_87 = arith.constant 0 : index
    %c0_88 = arith.constant 0 : index
    %c0_89 = arith.constant 0 : index
    %57 = vector.load %arg3[%c1_85, %c2_86, %c0_87, %c0_88, %c0_89] : memref<4x3x3x4x128xbf16, #tpu.memory_space<vmem>>, vector<1x1x3x4x128xbf16>
    %58 = vector.shape_cast %57 : vector<1x1x3x4x128xbf16> to vector<3x4x128xbf16>
    %59 = vector.shape_cast %58 : vector<3x4x128xbf16> to vector<12x128xbf16>
    %cst_90 = arith.constant dense<0.000000e+00> : vector<256x128xf32>
    %60 = tpu.matmul %56, %59, %cst_90 {dimension_numbers = #tpu.dot_dimension_numbers<[1], [0], [0], [1], [0, 0, 1, 1], [], []>} : vector<256x12xbf16>, vector<12x128xbf16>, vector<256x128xf32> -> vector<256x128xf32>
    %61 = arith.addf %54, %60 : vector<256x128xf32>
    %c0_91 = arith.constant 0 : index
    %c1_92 = arith.constant 1 : index
    %c0_93 = arith.constant 0 : index
    %62 = vector.load %arg6[%c0_91, %c1_92, %c0_93] : memref<24x24x4xbf16, #tpu.memory_space<vmem>>, vector<24x16x4xbf16>
    %c0_94 = arith.constant 0 : index
    %c0_95 = arith.constant 0 : index
    %c0_96 = arith.constant 0 : index
    %63 = vector.load %arg7[%c0_94, %c0_95, %c0_96] : memref<24x16x12xbf16, #tpu.memory_space<vmem>>, vector<24x16x4xbf16>
    tpu.vector_store %arg7[%c0_94, %c0_95, %c0_96], %62 {strides = array<i32>} : memref<24x16x12xbf16, #tpu.memory_space<vmem>>, vector<24x16x4xbf16>,
    %c0_97 = arith.constant 0 : index
    %c4_98 = arith.constant 4 : index
    %c0_99 = arith.constant 0 : index
    %64 = vector.load %arg6[%c0_97, %c4_98, %c0_99] : memref<24x24x4xbf16, #tpu.memory_space<vmem>>, vector<24x16x4xbf16>
    %c0_100 = arith.constant 0 : index
    %c0_101 = arith.constant 0 : index
    %c4_102 = arith.constant 4 : index
    %65 = vector.load %arg7[%c0_100, %c0_101, %c4_102] : memref<24x16x12xbf16, #tpu.memory_space<vmem>>, vector<24x16x4xbf16>
    tpu.vector_store %arg7[%c0_100, %c0_101, %c4_102], %64 {strides = array<i32>} : memref<24x16x12xbf16, #tpu.memory_space<vmem>>, vector<24x16x4xbf16>,
    %c0_103 = arith.constant 0 : index
    %c7 = arith.constant 7 : index
    %c0_104 = arith.constant 0 : index
    %66 = vector.load %arg6[%c0_103, %c7, %c0_104] : memref<24x24x4xbf16, #tpu.memory_space<vmem>>, vector<24x16x4xbf16>
    %c0_105 = arith.constant 0 : index
    %c0_106 = arith.constant 0 : index
    %c8_107 = arith.constant 8 : index
    %67 = vector.load %arg7[%c0_105, %c0_106, %c8_107] : memref<24x16x12xbf16, #tpu.memory_space<vmem>>, vector<24x16x4xbf16>
    tpu.vector_store %arg7[%c0_105, %c0_106, %c8_107], %66 {strides = array<i32>} : memref<24x16x12xbf16, #tpu.memory_space<vmem>>, vector<24x16x4xbf16>,
    %c1_108 = arith.constant 1 : index
    %c0_109 = arith.constant 0 : index
    %c0_110 = arith.constant 0 : index
    %68 = vector.load %arg7[%c1_108, %c0_109, %c0_110] : memref<24x16x12xbf16, #tpu.memory_space<vmem>>, vector<16x16x12xbf16>
    %69 = vector.shape_cast %68 : vector<16x16x12xbf16> to vector<256x12xbf16>
    %c2_111 = arith.constant 2 : index
    %c0_112 = arith.constant 0 : index
    %c0_113 = arith.constant 0 : index
    %c0_114 = arith.constant 0 : index
    %c0_115 = arith.constant 0 : index
    %70 = vector.load %arg3[%c2_111, %c0_112, %c0_113, %c0_114, %c0_115] : memref<4x3x3x4x128xbf16, #tpu.memory_space<vmem>>, vector<1x1x3x4x128xbf16>
    %71 = vector.shape_cast %70 : vector<1x1x3x4x128xbf16> to vector<3x4x128xbf16>
    %72 = vector.shape_cast %71 : vector<3x4x128xbf16> to vector<12x128xbf16>
    %cst_116 = arith.constant dense<0.000000e+00> : vector<256x128xf32>
    %73 = tpu.matmul %69, %72, %cst_116 {dimension_numbers = #tpu.dot_dimension_numbers<[1], [0], [0], [1], [0, 0, 1, 1], [], []>} : vector<256x12xbf16>, vector<12x128xbf16>, vector<256x128xf32> -> vector<256x128xf32>
    %74 = arith.addf %61, %73 : vector<256x128xf32>
    %c4_117 = arith.constant 4 : index
    %c0_118 = arith.constant 0 : index
    %c0_119 = arith.constant 0 : index
    %75 = vector.load %arg7[%c4_117, %c0_118, %c0_119] : memref<24x16x12xbf16, #tpu.memory_space<vmem>>, vector<16x16x12xbf16>
    %76 = vector.shape_cast %75 : vector<16x16x12xbf16> to vector<256x12xbf16>
    %c2_120 = arith.constant 2 : index
    %c1_121 = arith.constant 1 : index
    %c0_122 = arith.constant 0 : index
    %c0_123 = arith.constant 0 : index
    %c0_124 = arith.constant 0 : index
    %77 = vector.load %arg3[%c2_120, %c1_121, %c0_122, %c0_123, %c0_124] : memref<4x3x3x4x128xbf16, #tpu.memory_space<vmem>>, vector<1x1x3x4x128xbf16>
    %78 = vector.shape_cast %77 : vector<1x1x3x4x128xbf16> to vector<3x4x128xbf16>
    %79 = vector.shape_cast %78 : vector<3x4x128xbf16> to vector<12x128xbf16>
    %cst_125 = arith.constant dense<0.000000e+00> : vector<256x128xf32>
    %80 = tpu.matmul %76, %79, %cst_125 {dimension_numbers = #tpu.dot_dimension_numbers<[1], [0], [0], [1], [0, 0, 1, 1], [], []>} : vector<256x12xbf16>, vector<12x128xbf16>, vector<256x128xf32> -> vector<256x128xf32>
    %81 = arith.addf %74, %80 : vector<256x128xf32>
    %c7_126 = arith.constant 7 : index
    %c0_127 = arith.constant 0 : index
    %c0_128 = arith.constant 0 : index
    %82 = vector.load %arg7[%c7_126, %c0_127, %c0_128] : memref<24x16x12xbf16, #tpu.memory_space<vmem>>, vector<16x16x12xbf16>
    %83 = vector.shape_cast %82 : vector<16x16x12xbf16> to vector<256x12xbf16>
    %c2_129 = arith.constant 2 : index
    %c2_130 = arith.constant 2 : index
    %c0_131 = arith.constant 0 : index
    %c0_132 = arith.constant 0 : index
    %c0_133 = arith.constant 0 : index
    %84 = vector.load %arg3[%c2_129, %c2_130, %c0_131, %c0_132, %c0_133] : memref<4x3x3x4x128xbf16, #tpu.memory_space<vmem>>, vector<1x1x3x4x128xbf16>
    %85 = vector.shape_cast %84 : vector<1x1x3x4x128xbf16> to vector<3x4x128xbf16>
    %86 = vector.shape_cast %85 : vector<3x4x128xbf16> to vector<12x128xbf16>
    %cst_134 = arith.constant dense<0.000000e+00> : vector<256x128xf32>
    %87 = tpu.matmul %83, %86, %cst_134 {dimension_numbers = #tpu.dot_dimension_numbers<[1], [0], [0], [1], [0, 0, 1, 1], [], []>} : vector<256x12xbf16>, vector<12x128xbf16>, vector<256x128xf32> -> vector<256x128xf32>
    %88 = arith.addf %81, %87 : vector<256x128xf32>
    %c0_135 = arith.constant 0 : index
    %c0_136 = arith.constant 0 : index
    %c0_137 = arith.constant 0 : index
    %89 = vector.load %arg6[%c0_135, %c0_136, %c0_137] : memref<24x24x4xbf16, #tpu.memory_space<vmem>>, vector<24x16x4xbf16>
    %c0_138 = arith.constant 0 : index
    %c0_139 = arith.constant 0 : index
    %c0_140 = arith.constant 0 : index
    %90 = vector.load %arg7[%c0_138, %c0_139, %c0_140] : memref<24x16x12xbf16, #tpu.memory_space<vmem>>, vector<24x16x4xbf16>
    tpu.vector_store %arg7[%c0_138, %c0_139, %c0_140], %89 {strides = array<i32>} : memref<24x16x12xbf16, #tpu.memory_space<vmem>>, vector<24x16x4xbf16>,
    %c0_141 = arith.constant 0 : index
    %c4_142 = arith.constant 4 : index
    %c0_143 = arith.constant 0 : index
    %91 = vector.load %arg6[%c0_141, %c4_142, %c0_143] : memref<24x24x4xbf16, #tpu.memory_space<vmem>>, vector<24x16x4xbf16>
    %c0_144 = arith.constant 0 : index
    %c0_145 = arith.constant 0 : index
    %c4_146 = arith.constant 4 : index
    %92 = vector.load %arg7[%c0_144, %c0_145, %c4_146] : memref<24x16x12xbf16, #tpu.memory_space<vmem>>, vector<24x16x4xbf16>
    tpu.vector_store %arg7[%c0_144, %c0_145, %c4_146], %91 {strides = array<i32>} : memref<24x16x12xbf16, #tpu.memory_space<vmem>>, vector<24x16x4xbf16>,
    %c0_147 = arith.constant 0 : index
    %c8_148 = arith.constant 8 : index
    %c0_149 = arith.constant 0 : index
    %93 = vector.load %arg6[%c0_147, %c8_148, %c0_149] : memref<24x24x4xbf16, #tpu.memory_space<vmem>>, vector<24x16x4xbf16>
    %c0_150 = arith.constant 0 : index
    %c0_151 = arith.constant 0 : index
    %c8_152 = arith.constant 8 : index
    %94 = vector.load %arg7[%c0_150, %c0_151, %c8_152] : memref<24x16x12xbf16, #tpu.memory_space<vmem>>, vector<24x16x4xbf16>
    tpu.vector_store %arg7[%c0_150, %c0_151, %c8_152], %93 {strides = array<i32>} : memref<24x16x12xbf16, #tpu.memory_space<vmem>>, vector<24x16x4xbf16>,
    %c0_153 = arith.constant 0 : index
    %c0_154 = arith.constant 0 : index
    %c0_155 = arith.constant 0 : index
    %95 = vector.load %arg7[%c0_153, %c0_154, %c0_155] : memref<24x16x12xbf16, #tpu.memory_space<vmem>>, vector<16x16x12xbf16>
    %96 = vector.shape_cast %95 : vector<16x16x12xbf16> to vector<256x12xbf16>
    %c3_156 = arith.constant 3 : index
    %c0_157 = arith.constant 0 : index
    %c0_158 = arith.constant 0 : index
    %c0_159 = arith.constant 0 : index
    %c0_160 = arith.constant 0 : index
    %97 = vector.load %arg3[%c3_156, %c0_157, %c0_158, %c0_159, %c0_160] : memref<4x3x3x4x128xbf16, #tpu.memory_space<vmem>>, vector<1x1x3x4x128xbf16>
    %98 = vector.shape_cast %97 : vector<1x1x3x4x128xbf16> to vector<3x4x128xbf16>
    %99 = vector.shape_cast %98 : vector<3x4x128xbf16> to vector<12x128xbf16>
    %cst_161 = arith.constant dense<0.000000e+00> : vector<256x128xf32>
    %100 = tpu.matmul %96, %99, %cst_161 {dimension_numbers = #tpu.dot_dimension_numbers<[1], [0], [0], [1], [0, 0, 1, 1], [], []>} : vector<256x12xbf16>, vector<12x128xbf16>, vector<256x128xf32> -> vector<256x128xf32>
    %101 = arith.addf %88, %100 : vector<256x128xf32>
    %c4_162 = arith.constant 4 : index
    %c0_163 = arith.constant 0 : index
    %c0_164 = arith.constant 0 : index
    %102 = vector.load %arg7[%c4_162, %c0_163, %c0_164] : memref<24x16x12xbf16, #tpu.memory_space<vmem>>, vector<16x16x12xbf16>
    %103 = vector.shape_cast %102 : vector<16x16x12xbf16> to vector<256x12xbf16>
    %c3_165 = arith.constant 3 : index
    %c1_166 = arith.constant 1 : index
    %c0_167 = arith.constant 0 : index
    %c0_168 = arith.constant 0 : index
    %c0_169 = arith.constant 0 : index
    %104 = vector.load %arg3[%c3_165, %c1_166, %c0_167, %c0_168, %c0_169] : memref<4x3x3x4x128xbf16, #tpu.memory_space<vmem>>, vector<1x1x3x4x128xbf16>
    %105 = vector.shape_cast %104 : vector<1x1x3x4x128xbf16> to vector<3x4x128xbf16>
    %106 = vector.shape_cast %105 : vector<3x4x128xbf16> to vector<12x128xbf16>
    %cst_170 = arith.constant dense<0.000000e+00> : vector<256x128xf32>
    %107 = tpu.matmul %103, %106, %cst_170 {dimension_numbers = #tpu.dot_dimension_numbers<[1], [0], [0], [1], [0, 0, 1, 1], [], []>} : vector<256x12xbf16>, vector<12x128xbf16>, vector<256x128xf32> -> vector<256x128xf32>
    %108 = arith.addf %101, %107 : vector<256x128xf32>
    %c8_171 = arith.constant 8 : index
    %c0_172 = arith.constant 0 : index
    %c0_173 = arith.constant 0 : index
    %109 = vector.load %arg7[%c8_171, %c0_172, %c0_173] : memref<24x16x12xbf16, #tpu.memory_space<vmem>>, vector<16x16x12xbf16>
    %110 = vector.shape_cast %109 : vector<16x16x12xbf16> to vector<256x12xbf16>
    %c3_174 = arith.constant 3 : index
    %c2_175 = arith.constant 2 : index
    %c0_176 = arith.constant 0 : index
    %c0_177 = arith.constant 0 : index
    %c0_178 = arith.constant 0 : index
    %111 = vector.load %arg3[%c3_174, %c2_175, %c0_176, %c0_177, %c0_178] : memref<4x3x3x4x128xbf16, #tpu.memory_space<vmem>>, vector<1x1x3x4x128xbf16>
    %112 = vector.shape_cast %111 : vector<1x1x3x4x128xbf16> to vector<3x4x128xbf16>
    %113 = vector.shape_cast %112 : vector<3x4x128xbf16> to vector<12x128xbf16>
    %cst_179 = arith.constant dense<0.000000e+00> : vector<256x128xf32>
    %114 = tpu.matmul %110, %113, %cst_179 {dimension_numbers = #tpu.dot_dimension_numbers<[1], [0], [0], [1], [0, 0, 1, 1], [], []>} : vector<256x12xbf16>, vector<12x128xbf16>, vector<256x128xf32> -> vector<256x128xf32>
    %115 = arith.addf %108, %114 : vector<256x128xf32>
    %c0_180 = arith.constant 0 : index
    %c0_181 = arith.constant 0 : index
    %c0_182 = arith.constant 0 : index
    %116 = vector.load %arg5[%c0_180, %c0_181, %c0_182] : memref<1x256x128xf32, #tpu.memory_space<vmem>>, vector<1x256x128xf32>
    %117 = vector.shape_cast %116 : vector<1x256x128xf32> to vector<256x128xf32>
    %118 = arith.addf %117, %115 : vector<256x128xf32>
    %c0_183 = arith.constant 0 : index
    %c0_184 = arith.constant 0 : index
    %c0_185 = arith.constant 0 : index
    %119 = vector.load %arg5[%c0_183, %c0_184, %c0_185] : memref<1x256x128xf32, #tpu.memory_space<vmem>>, vector<1x256x128xf32>
    %120 = vector.shape_cast %119 : vector<1x256x128xf32> to vector<256x128xf32>
    %121 = vector.shape_cast %118 : vector<256x128xf32> to vector<1x256x128xf32>
    tpu.vector_store %arg5[%c0_183, %c0_184, %c0_185], %121 {strides = array<i32>} : memref<1x256x128xf32, #tpu.memory_space<vmem>>, vector<1x256x128xf32>,
    return
  }
  func.func @transform_0(%arg0: i32, %arg1: i32) -> (i32, i32, i32, i32) {
    %c0_i32 = arith.constant 0 : i32
    %c0_i32_0 = arith.constant 0 : i32
    %c0_i32_1 = arith.constant 0 : i32
    return %arg0, %c0_i32, %c0_i32_0, %arg1 : i32, i32, i32, i32
  }
  func.func @transform_1(%arg0: i32, %arg1: i32) -> (i32, i32, i32, i32, i32) {
    %c0_i32 = arith.constant 0 : i32
    %c0_i32_0 = arith.constant 0 : i32
    %c0_i32_1 = arith.constant 0 : i32
    %c0_i32_2 = arith.constant 0 : i32
    %c0_i32_3 = arith.constant 0 : i32
    return %c0_i32, %c0_i32_0, %c0_i32_1, %arg1, %c0_i32_2 : i32, i32, i32, i32, i32
  }
  func.func @transform_2(%arg0: i32, %arg1: i32) -> (i32, i32) {
    %c0_i32 = arith.constant 0 : i32
    %c0_i32_0 = arith.constant 0 : i32
    %c0_i32_1 = arith.constant 0 : i32
    return %c0_i32, %c0_i32_0 : i32, i32
  }
  func.func @transform_3(%arg0: i32, %arg1: i32) -> (i32, i32, i32) {
    %c0_i32 = arith.constant 0 : i32
    %c0_i32_0 = arith.constant 0 : i32
    %c0_i32_1 = arith.constant 0 : i32
    return %arg0, %c0_i32, %c0_i32_0 : i32, i32, i32
  }
}

</mosaic_0001>

<bundles_post_ra>
// kernel: tpu_custom_call.1
= control target key start
LH: loop header
LB: loop body
LE: loop exit
PB: predicated region body
PF: predicated region fallthrough
CT: control target
= control target key end

     0   :  { %8 = vsyncpa [#allocation5], 0  ;;  %s14654_s0 = inlined_call_operand.vmem [shape: bf16[2,16,16,4], index: 0, kind: input, shape index: {}]   ;;  %s14655_s1 = inlined_call_operand.vmem [shape: bf16[4,3,3,4,128], index: 1, kind: input, shape index: {}]   ;;  %s14656_s2 = inlined_call_operand.vmem [shape: f32[1,128], index: 2, kind: input, shape index: {}]   ;;  %s14657_s3 = inlined_call_operand.hbm [shape: f32[2,256,128], index: 3, kind: output, shape index: {}]  }
   0x1   :  { %10 = vsyncpa [#allocation5 + $0x1], 0  ;;  %s12460_s12 = smov 0   ;;  %s12462_s13 = smov 0  }
   0x2   :  { %s12464_s14 = smov 0   ;;  %s12466_s15 = smov 0  }
   0x3   :  { %s12468_s16 = smov 0   ;;  %s12470_s17 = smov 0  }
   0x4 LB: > { %s10008_s18 = sadd.s32 4294967295, %s12432_s17   ;;  %s10009_s19 = sadd.s32 4294967294, %s12432_s17   ;;  %s12432_s17 = sphi %s12470_s17, %s16_s17   ;;  %s12428_s16 = sphi %s12468_s16, %s14687_s16   ;;  %s12424_s15 = sphi %s12466_s15, %s14686_s15   ;;  %s12420_s14 = sphi %s12464_s14, %s14685_s14   ;;  %s12416_s13 = sphi %s12462_s13, %s14684_s13   ;;  %s12412_s12 = sphi %s12460_s12, %s14683_s12  }
   0x5   : > { %s28_s20 = sadd.s32 1, %s12428_s16  ;;  %s110_s21 = sadd.s32 1, %s12420_s14 }
   0x6   : > { %p30_p0 = scmp.ge.s32.totalorder %s28_s20, 2  ;;  %p120_p1 = scmp.ne.s32.totalorder %s12420_s14, %s12416_s13 }
   0x7   : > { %p121_p2 = scmp.eq.s32.totalorder %s10008_s18, 1  ;;  %p126_p3 = scmp.ne.s32.totalorder %s12416_s13, %s12412_s12 }
   0x8   : > { %s14689_s20 = smov (%p30_p0, %s28_s20), 0  ;;  %p127_p5 = scmp.eq.s32.totalorder %s10009_s19, 1 }
   0x9   : > { %p12500_p4 = por %p121_p2, %p120_p1  ;;  %s107_s23 = ssub.s32 %s12428_s16, %s14689_s20 }
   0xa   : > { %p10013_p6 = scmp.ge.s32.totalorder %s12432_s17, 1  ;;  %p108_p7 = scmp.eq.s32.totalorder %s107_s23, 0 }
   0xb   : > { %p12507_p8 = por %p127_p5, %p126_p3  ;;  %p166_p9 = scmp.lt.s32.totalorder %s12432_s17, 3 }
   0xc   : > { %s12513_s25 = scalar_select %p108_p7, %s12420_s14, %s110_s21  }
   0xd   : > { %p167_p10 = pnand %p10013_p6, %p166_p9 }
   0xf   : > { %170 = sbr.rel (%p167_p10) target bundleno = 1017 (0x3f9), region = 32 }
  0x16   : > { %vm214_vm0 = vcmask 27648   ;;  %v12434_v0 = vmov 0   ;;  %p197_p11 = scmp.lt.s32.totalorder %s12424_s15, 1  ;;  %vm4372_vm1 = vcmask 1044480   ;;  %vm1562_vm2 = vcmask 1045504   ;;  %s12435_s4 = smov 8  }
  0x17   : > { %221 = vst.msk [vmem:[#allocation2 + $0x18] sm:$0xf] %vm214_vm0, %v12434_v0  ;;  %222 = vst.msk [vmem:[#allocation2 + $0x1c] sm:$0xf] %vm214_vm0, %v12434_v0  ;;  %vm351_vm3 = vcmask 1041408   ;;  %vm352_vm4 = vcmask 1045508  }
  0x18   : > { %223 = vst.msk [vmem:[#allocation2 + $0x20] sm:$0xf] %vm214_vm0, %v12434_v0  ;;  %215 = vst.msk [vmem:[#allocation2] sm:$0xf] %vm214_vm0, %v12434_v0  ;;  %s198_s26 = scalar_select %p197_p11, %s12424_s15, 1  ;;  %vm483_vm5 = vcmask 27650  }
  0x19   : > { %216 = vst.msk [vmem:[#allocation2 + $0x4] sm:$0xf] %vm214_vm0, %v12434_v0  ;;  %217 = vst.msk [vmem:[#allocation2 + $0x8] sm:$0xf] %vm214_vm0, %v12434_v0  ;;  %vm487_vm6 = vcmask 25600   ;;  %s12436_s5 = smov 4  }
  0x1a   : > { %218 = vst.msk [vmem:[#allocation2 + $0xc] sm:$0xf] %vm214_vm0, %v12434_v0  ;;  %219 = vst.msk [vmem:[#allocation2 + $0x10] sm:$0xf] %vm214_vm0, %v12434_v0  ;;  %s10788_s27 = sshll.u32 %s198_s26, 7  ;;  %vm1273_vm10 = vcmask 31744  }
  0x1b   : > { %220 = vst.msk [vmem:[#allocation2 + $0x14] sm:$0xf] %vm214_vm0, %v12434_v0  ;;  %224 = vst.msk [vmem:[#allocation2 + $0x24] sm:$0xf] %vm214_vm0, %v12434_v0  ;;  %s12664_s30 = scalar_lea.vmem %s14654_s0, %s10788_s27  ;;  %vm1996_vm8 = vsmask.f32 5376 }
  0x1c   : > { %225 = vst.msk [vmem:[#allocation2 + $0x28] sm:$0xf] %vm214_vm0, %v12434_v0  ;;  %226 = vst.msk [vmem:[#allocation2 + $0x2c] sm:$0xf] %vm214_vm0, %v12434_v0  ;;  %v289_v1 = vld [vmem:[%s12664_s30 + $0x8] sm:$0xf] }
  0x1d   : > { %227 = vst.msk [vmem:[#allocation2 + $0x30] sm:$0xf] %vm214_vm0, %v12434_v0  ;;  %228 = vst.msk [vmem:[#allocation2 + $0x34] sm:$0xf] %vm214_vm0, %v12434_v0  ;;  %v290_v2 = vld [vmem:[%s12664_s30 + $0xc] sm:$0xf] }
  0x1e   : > { %229 = vst.msk [vmem:[#allocation2 + $0x38] sm:$0xf] %vm214_vm0, %v12434_v0  ;;  %230 = vst.msk [vmem:[#allocation2 + $0x3c] sm:$0xf] %vm214_vm0, %v12434_v0  ;;  %v11826_v3 = vld [vmem:[#allocation2 + $0x18] sm:$0xf8]  }
  0x1f   : > { %231 = vst.msk [vmem:[#allocation2 + $0x40] sm:$0xf] %vm214_vm0, %v12434_v0  ;;  %232 = vst.msk [vmem:[#allocation2 + $0x44] sm:$0xf] %vm214_vm0, %v12434_v0  ;;  %v359_v5 = vrot.slane %v289_v1, 6  ;;  %v4379_v6 = vrot.slane %v11826_v3, 3 }
  0x20   : > { %233 = vst.msk [vmem:[#allocation2 + $0x48] sm:$0xf] %vm214_vm0, %v12434_v0  ;;  %234 = vst.msk [vmem:[#allocation2 + $0x4c] sm:$0xf] %vm214_vm0, %v12434_v0  ;;  %v11828_v8 = vld [vmem:[#allocation2 + $0x18] sm:$0xfc]  }
  0x21   : > { %235 = vst.msk [vmem:[#allocation2 + $0x50] sm:$0xf] %vm214_vm0, %v12434_v0  ;;  %236 = vst.msk [vmem:[#allocation2 + $0x54] sm:$0xf] %vm214_vm0, %v12434_v0  ;;  %v360_v11 = vrot.slane %v359_v5, 4  ;;  %v1569_v13 = vrot.slane %v11828_v8, 2 }
  0x22   : > { %237 = vst.msk [vmem:[#allocation2 + $0x58] sm:$0xf] %vm214_vm0, %v12434_v0  ;;  %238 = vst.msk [vmem:[#allocation2 + $0x5c] sm:$0xf] %vm214_vm0, %v12434_v0  ;;  %v361_v15 = vrot.slane %v290_v2, 6  ;;  %vm1707_vm12 = vcmask 64544  }
  0x23   : > { %239 = vst.msk [vmem:[#allocation2 + $0x60] sm:$0xf] %vm214_vm0, %v12434_v0  ;;  %240 = vst.msk [vmem:[#allocation2 + $0x64] sm:$0xf] %vm214_vm0, %v12434_v0  ;;  %v11830_v14 = vld [vmem:[#allocation2 + $0x24] sm:$0xfc]  }
  0x24   : > { %241 = vst.msk [vmem:[#allocation2 + $0x68] sm:$0xf] %vm214_vm0, %v12434_v0  ;;  %242 = vst.msk [vmem:[#allocation2 + $0x6c] sm:$0xf] %vm214_vm0, %v12434_v0  ;;  %v12676_v18 = vld [vmem:[%s12664_s30] sm:$0xf] }
  0x25   : > { %243 = vst.msk [vmem:[#allocation2 + $0x70] sm:$0xf] %vm214_vm0, %v12434_v0  ;;  %244 = vst.msk [vmem:[#allocation2 + $0x74] sm:$0xf] %vm214_vm0, %v12434_v0  ;;  %v1572_v19 = vrot.slane %v11830_v14, 2  ;;  %v363_v21 = vrot.slane %v361_v15, 4 }
  0x26   : > { %245 = vst.msk [vmem:[#allocation2 + $0x78] sm:$0xf] %vm214_vm0, %v12434_v0  ;;  %246 = vst.msk [vmem:[#allocation2 + $0x7c] sm:$0xf] %vm214_vm0, %v12434_v0  ;;  %v11832_v24 = vld [vmem:[#allocation2 + $0xc] sm:$0xfc]  }
  0x27   : > { %247 = vst.msk [vmem:[#allocation2 + $0x80] sm:$0xf] %vm214_vm0, %v12434_v0  ;;  %248 = vst.msk [vmem:[#allocation2 + $0x84] sm:$0xf] %vm214_vm0, %v12434_v0  ;;  %v3943_v27 = vrot.slane %v11832_v24, 2  ;;  %v354_v31 = vrot.slane %v12676_v18, 6 }
  0x28   : > { %249 = vst.msk [vmem:[#allocation2 + $0x88] sm:$0xf] %vm214_vm0, %v12434_v0  ;;  %250 = vst.msk [vmem:[#allocation2 + $0x8c] sm:$0xf] %vm214_vm0, %v12434_v0  ;;  %v11834_v29 = vld [vmem:[#allocation2 + $0x18] sm:$0xfc]  }
  0x29   : > { %251 = vst.msk [vmem:[#allocation2 + $0x90] sm:$0xf] %vm214_vm0, %v12434_v0  ;;  %252 = vst.msk [vmem:[#allocation2 + $0x94] sm:$0xf] %vm214_vm0, %v12434_v0  ;;  %v3946_v33 = vrot.slane %v11834_v29, 2  ;;  %vm2477_vm13 = vcmask 97344  }
  0x2a   : > { %253 = vst.msk [vmem:[#allocation2 + $0x98] sm:$0xf] %vm214_vm0, %v12434_v0  ;;  %254 = vst.msk [vmem:[#allocation2 + $0x9c] sm:$0xf] %vm214_vm0, %v12434_v0  ;;  %v11836_v34 = vld [vmem:[#allocation2 + $0x18] sm:$0xfc]  }
  0x2b   : > { %255 = vst.msk [vmem:[#allocation2 + $0xa0] sm:$0xf] %vm214_vm0, %v12434_v0  ;;  %256 = vst.msk [vmem:[#allocation2 + $0xa4] sm:$0xf] %vm214_vm0, %v12434_v0  ;;  %v2032_v37 = vshrl.u32 %v11836_v34, 16  ;;  %v2035_v38 = vshll.u32 %v11836_v34, 16 }
  0x2c   : > { %257 = vst.msk [vmem:[#allocation2 + $0xa8] sm:$0xf] %vm214_vm0, %v12434_v0  ;;  %258 = vst.msk [vmem:[#allocation2 + $0xac] sm:$0xf] %vm214_vm0, %v12434_v0  ;;  %v11838_v42 = vld [vmem:[#allocation2 + $0xc] sm:$0xfc]  }
  0x2d   : > { %259 = vst.msk [vmem:[#allocation2 + $0xb0] sm:$0xf] %vm214_vm0, %v12434_v0  ;;  %260 = vst.msk [vmem:[#allocation2 + $0xb4] sm:$0xf] %vm214_vm0, %v12434_v0  ;;  %v2034_v43 = vrot.slane %v2032_v37, 2  ;;  %v2037_v44 = vrot.slane %v2035_v38, 3 }
  0x2e   : > { %261 = vst.msk [vmem:[#allocation2 + $0xb8] sm:$0xf] %vm214_vm0, %v12434_v0  ;;  %262 = vst.msk [vmem:[#allocation2 + $0xbc] sm:$0xf] %vm214_vm0, %v12434_v0  ;;  %v2015_v48 = vshrl.u32 %v11838_v42, 16  ;;  %v2018_v49 = vshll.u32 %v11838_v42, 16 }
  0x2f   : > { %263 = vst.msk [vmem:[#allocation2 + $0xc0] sm:$0xf] %vm214_vm0, %v12434_v0  ;;  %264 = vst.msk [vmem:[#allocation2 + $0xc4] sm:$0xf] %vm214_vm0, %v12434_v0  ;;  %v2038_v50 = vor.u32 %v2037_v44, %v2034_v43  ;;  %v11840_v53 = vld [vmem:[#allocation2 + $0xc] sm:$0xfc]  }
  0x30   : > { %265 = vst.msk [vmem:[#allocation2 + $0xc8] sm:$0xf] %vm214_vm0, %v12434_v0  ;;  %266 = vst.msk [vmem:[#allocation2 + $0xcc] sm:$0xf] %vm214_vm0, %v12434_v0  ;;  %v2017_v55 = vrot.slane %v2015_v48, 2  ;;  %v2020_v56 = vrot.slane %v2018_v49, 3 }
  0x31   : > { %267 = vst.msk [vmem:[#allocation2 + $0xd0] sm:$0xf] %vm214_vm0, %v12434_v0  ;;  %268 = vst.msk [vmem:[#allocation2 + $0xd4] sm:$0xf] %vm214_vm0, %v12434_v0  ;;  %v1566_v60 = vrot.slane %v11840_v53, 2  ;;  %vm3555_vm14 = vcmask 1046528  }
  0x32   : > { %269 = vst.msk [vmem:[#allocation2 + $0xd8] sm:$0xf] %vm214_vm0, %v12434_v0  ;;  %270 = vst.msk [vmem:[#allocation2 + $0xdc] sm:$0xf] %vm214_vm0, %v12434_v0  ;;  %v2021_v62 = vor.u32 %v2020_v56, %v2017_v55  ;;  %v11842_v1 = vld [vmem:[#allocation2 + $0x24] sm:$0xfc]  }
  0x33   : > { %271 = vst.msk [vmem:[#allocation2 + $0xe0] sm:$0xf] %vm214_vm0, %v12434_v0  ;;  %272 = vst.msk [vmem:[#allocation2 + $0xe4] sm:$0xf] %vm214_vm0, %v12434_v0  ;;  %vm6689_vm9 = vsmask.f32 4352 }
  0x34   : > { %273 = vst.msk [vmem:[#allocation2 + $0xe8] sm:$0xf] %vm214_vm0, %v12434_v0  ;;  %274 = vst.msk [vmem:[#allocation2 + $0xec] sm:$0xf] %vm214_vm0, %v12434_v0  ;;  %vm840_vm11 = vsmask.f32 6400 }
  0x35   : > { %275 = vst.msk [vmem:[#allocation2 + $0xf0] sm:$0xf] %vm214_vm0, %v12434_v0  ;;  %276 = vst.msk [vmem:[#allocation2 + $0xf4] sm:$0xf] %vm214_vm0, %v12434_v0  ;;  %vm2562_vm15 = vcmask 97280   ;;  %s10789_s7 = sshll.u32 %s12424_s15, 12 }
  0x36   : > { %277 = vst.msk [vmem:[#allocation2 + $0xf8] sm:$0xf] %vm214_vm0, %v12434_v0  ;;  %278 = vst.msk [vmem:[#allocation2 + $0xfc] sm:$0xf] %vm214_vm0, %v12434_v0  ;;  %s14597_s11 = scalar_lea.hbm %s14657_s3, %s10789_s7  ;;  %s12438_s19 = smov [#allocation4]  }
  0x37   : > { %279 = vst.msk [vmem:[#allocation2 + $0x100] sm:$0xf] %vm214_vm0, %v12434_v0  ;;  %280 = vst.msk [vmem:[#allocation2 + $0x104] sm:$0xf] %vm214_vm0, %v12434_v0  ;;  %s12358_s21 = sshll.u32 %s12438_s19, 4  ;;  %s12359_s21 = int_to_ptr.vmem [resolvable:$false] %s12358_s21 }
  0x38   : > { %281 = vst.msk [vmem:[#allocation2 + $0x108] sm:$0xf] %vm214_vm0, %v12434_v0  ;;  %282 = vst.msk [vmem:[#allocation2 + $0x10c] sm:$0xf] %vm214_vm0, %v12434_v0  ;;  %s12360_s23 = scalar_lea.vmem %s12359_s21, 8192 }
  0x39   : > { %283 = vst.msk [vmem:[#allocation2 + $0x110] sm:$0xf] %vm214_vm0, %v12434_v0  ;;  %284 = vst.msk [vmem:[#allocation2 + $0x114] sm:$0xf] %vm214_vm0, %v12434_v0 }
  0x3a   : > { %285 = vst.msk [vmem:[#allocation2 + $0x118] sm:$0xf] %vm214_vm0, %v12434_v0  ;;  %286 = vst.msk [vmem:[#allocation2 + $0x11c] sm:$0xf] %vm214_vm0, %v12434_v0 }
  0x3b   : > { %v11827_v4 = vld [vmem:[#allocation2 + $0x20] ss:$0 sps:$4 sm:$0x77]   ;;  %489 = vst.msk [vmem:[#allocation2 + $0x3c] sm:$0xc] %vm483_vm5, %v359_v5  ;;  %vm12669_vm7 = vmor %vm351_vm3, %vm352_vm4  ;;  %v3949_v5 = vrot.slane %v11842_v1, 2 }
  0x3c   : > { %v4380_v7 = vrot.slane %v11827_v4, 3  ;;  %v11829_v9 = vld [vmem:[#allocation2 + $0x20] ss:$0 sps:$4 sm:$0x33]   ;;  %v362_v20 = vsel %vm12669_vm7, %v360_v11, %v361_v15  ;;  %491 = vst.msk [vmem:[#allocation2 + $0x44] sm:$0x3] %vm487_vm6, %v363_v21 }
  0x3d   : > { %v1570_v16 = vrot.slane %v11829_v9, 2  ;;  %v11831_v17 = vld [vmem:[#allocation2 + $0x2c] ss:$0 sps:$4 sm:$0x33]   ;;  %490 = vst.msk [vmem:[#allocation2 + $0x40] sm:$0xf] %vm214_vm0, %v362_v20 }
  0x3e   : > { %v4381_v12 = vsel %vm4372_vm1, %v4379_v6, %v4380_v7  ;;  %v1573_v23 = vrot.slane %v11831_v17, 2  ;;  %v11833_v25 = vld [vmem:[#allocation2 + $0x14] ss:$0 sps:$4 sm:$0x33]   ;;  %484 = vst.msk [vmem:[#allocation2 + $0x30] sm:$0xc] %vm483_vm5, %v354_v31 }
  0x3f   : > { %4449 = vrot.lane.b32.xlu1 %v4381_v12, %s12435_s4  ;;  %v1571_v22 = vsel %vm1562_vm2, %v1569_v13, %v1570_v16  ;;  %v3944_v28 = vrot.slane %v11833_v25, 2  ;;  %v11835_v30 = vld [vmem:[#allocation2 + $0x20] ss:$0 sps:$4 sm:$0x33]   ;;  %v11844_v7 = vld [vmem:[#allocation2 + $0x24] sm:$0xfc]  }
  0x40   : > { %1639 = vrot.lane.b32.xlu0 %v1571_v22, %s12436_s5  ;;  %v1574_v26 = vsel %vm1562_vm2, %v1572_v19, %v1573_v23  ;;  %v3947_v35 = vrot.slane %v11835_v30, 2  ;;  %v11837_v36 = vld [vmem:[#allocation2 + $0x20] ss:$0 sps:$4 sm:$0x77]   ;;  %v2049_v9 = vshrl.u32 %v11844_v7, 16  ;;  %v2052_v11 = vshll.u32 %v11844_v7, 16 }
  0x41   : > { %v3945_v32 = vsel %vm1562_vm2, %v3943_v27, %v3944_v28  ;;  %v2040_v40 = vshrl.u32 %v11837_v36, 16  ;;  %v2043_v41 = vshll.u32 %v11837_v36, 16  ;;  %v11839_v45 = vld [vmem:[#allocation2 + $0x14] ss:$0 sps:$4 sm:$0x77]   ;;  %v355_v17 = vrot.slane %v354_v31, 4 }
  0x42   : > { %v3948_v39 = vsel %vm1562_vm2, %v3946_v33, %v3947_v35  ;;  %v2023_v51 = vshrl.u32 %v11839_v45, 16  ;;  %v2026_v52 = vshll.u32 %v11839_v45, 16  ;;  %v11841_v57 = vld [vmem:[#allocation2 + $0x14] ss:$0 sps:$4 sm:$0x33]   ;;  %v2051_v18 = vrot.slane %v2049_v9, 2 }
  0x43   : > { %4014 = vrot.lane.b32.xlu1 %v3945_v32, %s12436_s5  ;;  %v2042_v46 = vrot.slane %v2040_v40, 2  ;;  %v2045_v47 = vrot.slane %v2043_v41, 3  ;;  %v1567_v63 = vrot.slane %v11841_v57, 2  ;;  %v11843_v2 = vld [vmem:[#allocation2 + $0x2c] ss:$0 sps:$4 sm:$0x33]  }
  0x44   : > { %1641 = vrot.lane.b32.xlu0 %v1574_v26, %s12436_s5  ;;  %v2025_v58 = vrot.slane %v2023_v51, 2  ;;  %v2028_v59 = vrot.slane %v2026_v52, 3  ;;  %v3950_v6 = vrot.slane %v11843_v2, 2  ;;  %v11845_v8 = vld [vmem:[#allocation2 + $0x2c] ss:$0 sps:$4 sm:$0x77]  }
  0x45   : > { %v2046_v54 = vor.u32 %v2045_v47, %v2042_v46  ;;  %v1568_v3 = vsel %vm1562_vm2, %v1566_v60, %v1567_v63  ;;  %v11846_v12 = vld [vmem:[#allocation2 + $0x3c] sm:$0xfc]   ;;  %v2057_v14 = vshrl.u32 %v11845_v8, 16  ;;  %v2060_v15 = vshll.u32 %v11845_v8, 16  ;;  %v291_v32 = vld [vmem:[%s12664_s30 + $0x10] sm:$0xf] }
  0x46   : > { %v2029_v0 = vor.u32 %v2028_v59, %v2025_v58  ;;  %v3951_v13 = vsel %vm1562_vm2, %v3949_v5, %v3950_v6  ;;  %v11847_v16 = vld [vmem:[#allocation2 + $0x44] ss:$0 sps:$4 sm:$0x33]   ;;  %v2054_v19 = vrot.slane %v2052_v11, 3  ;;  %v1578_v20 = vrot.slane %v11846_v12, 2 }
  0x47   : > { %v2047_v61 = vsel %vm1996_vm8, %v2038_v50, %v2046_v54  ;;  %v288_v21 = vld [vmem:[%s12664_s30 + $0x4] sm:$0xf]  ;;  %v2059_v22 = vrot.slane %v2057_v14, 2  ;;  %v2062_v23 = vrot.slane %v2060_v15, 3  ;;  %v1579_v24 = vrot.slane %v11847_v16, 2 }
  0x48   : > { %4016 = vrot.lane.b32.xlu0 %v3948_v39, %s12436_s5  ;;  %2409 = vrot.lane.b32.xlu1 %v2047_v61, %s12435_s4  ;;  %v2030_v4 = vsel %vm1996_vm8, %v2021_v62, %v2029_v0  ;;  %v356_v25 = vrot.slane %v288_v21, 6  ;;  %v2055_v26 = vor.u32 %v2054_v19, %v2051_v18  ;;  %v11850_v30 = vld [vmem:[#allocation2 + $0x3c] sm:$0xfc]   ;;  %v11851_v31 = vld [vmem:[#allocation2 + $0x44] ss:$0 sps:$4 sm:$0x77]  }
  0x49   : > { %v2063_v27 = vor.u32 %v2062_v23, %v2059_v22  ;;  %v292_v33 = vld [vmem:[%s12664_s30 + $0x14] sm:$0xf]  ;;  %v2083_v35 = vshrl.u32 %v11850_v30, 16  ;;  %v2086_v36 = vshll.u32 %v11850_v30, 16  ;;  %v2091_v37 = vshrl.u32 %v11851_v31, 16 }
  0x4a   : > { %v357_v28 = vsel %vm12669_vm7, %v355_v17, %v356_v25  ;;  %v358_v29 = vrot.slane %v356_v25, 4  ;;  %v2094_v38 = vshll.u32 %v11851_v31, 16  ;;  %v364_v39 = vrot.slane %v291_v32, 6  ;;  %v11858_v1 = vld [vmem:[#allocation2 + $0xc] sm:$0xf8]  }
  0x4b   : > { %486 = vst.msk [vmem:[#allocation2 + $0x34] sm:$0xf] %vm214_vm0, %v357_v28  ;;  %v2064_v34 = vsel %vm1996_vm8, %v2055_v26, %v2063_v27  ;;  %v366_v40 = vrot.slane %v292_v33, 6  ;;  %v1580_v41 = vsel %vm1562_vm2, %v1578_v20, %v1579_v24  ;;  %v2085_v42 = vrot.slane %v2083_v35, 2  ;;  %v11862_v31 = vld [vmem:[#allocation2 + $0x24] sm:$0xf8]  }
  0x4c   : > { %1637 = vrot.lane.b32.xlu0 %v1568_v3, %s12436_s5  ;;  %2407 = vrot.lane.b32.xlu1 %v2030_v4, %s12435_s4  ;;  %488 = vst.msk [vmem:[#allocation2 + $0x38] sm:$0x3] %vm487_vm6, %v358_v29  ;;  %v2088_v43 = vrot.slane %v2086_v36, 3  ;;  %v2093_v44 = vrot.slane %v2091_v37, 2  ;;  %v2096_v45 = vrot.slane %v2094_v38, 3  ;;  %v365_v46 = vrot.slane %v364_v39, 4 }
  0x4d   : > { %v368_v47 = vrot.slane %v366_v40, 4  ;;  %492 = vst.msk [vmem:[#allocation2 + $0x48] sm:$0xc] %vm483_vm5, %v364_v39  ;;  %v11859_v12 = vld [vmem:[#allocation2 + $0x14] ss:$0 sps:$4 sm:$0x77]  }
  0x4e   : > { %v2089_v48 = vor.u32 %v2088_v43, %v2085_v42  ;;  %v2097_v49 = vor.u32 %v2096_v45, %v2093_v44  ;;  %v367_v50 = vsel %vm12669_vm7, %v365_v46, %v366_v40  ;;  %v4376_v23 = vrot.slane %v11858_v1, 3  ;;  %v11863_v29 = vld [vmem:[#allocation2 + $0x2c] ss:$0 sps:$4 sm:$0x77]   ;;  %v11866_v40 = vld [vmem:[#allocation2 + $0xc] sm:$0xfc]  }
  0x4f   : > { %494 = vst.msk [vmem:[#allocation2 + $0x50] sm:$0x3] %vm487_vm6, %v368_v47  ;;  %v4377_v33 = vrot.slane %v11859_v12, 3  ;;  %v4382_v43 = vrot.slane %v11862_v31, 3  ;;  %v4383_v44 = vrot.slane %v11863_v29, 3  ;;  %v6260_v46 = vrot.slane %v11866_v40, 2 }
  0x50   : > { %4018 = vrot.lane.b32.xlu1 %v3951_v13, %s12436_s5  ;;  %2411 = vrot.lane.b32.xlu0 %v2064_v34, %s12435_s4  ;;  %493 = vst.msk [vmem:[#allocation2 + $0x4c] sm:$0xf] %vm214_vm0, %v367_v50  ;;  %v2098_v53 = vsel %vm1996_vm8, %v2089_v48, %v2097_v49  ;;  %v11868_v45 = vld [vmem:[#allocation2 + $0x18] sm:$0xfc]   ;;  %vm5656_vm3 = vsmask.f32 7424 }
  0x51   : > { %v4378_v42 = vsel %vm4372_vm1, %v4376_v23, %v4377_v33  ;;  %v11869_v47 = vld [vmem:[#allocation2 + $0x20] ss:$0 sps:$4 sm:$0x33]   ;;  %v6263_v50 = vrot.slane %v11868_v45, 2 }
  0x52   : > { %v11848_v51 = vld [vmem:[#allocation2 + $0x30] sm:$0xfc]   ;;  %v11883_v33 = vld [vmem:[#allocation2 + $0x44] ss:$0 sps:$4 sm:$0x33]  }
  0x53   : > { %v11849_v52 = vld [vmem:[#allocation2 + $0x38] ss:$0 sps:$4 sm:$0x33]   ;;  %v1575_v54 = vrot.slane %v11848_v51, 2  ;;  %v11856_v55 = vld [vmem:[#allocation2 + $0x30] sm:$0xfc]  }
  0x54   : > { %1645 = vrot.lane.b32.xlu0 %v1580_v41, %s12436_s5  ;;  %v1576_v56 = vrot.slane %v11849_v52, 2  ;;  %v11857_v57 = vld [vmem:[#allocation2 + $0x38] ss:$0 sps:$4 sm:$0x77]   ;;  %v2066_v58 = vshrl.u32 %v11856_v55, 16  ;;  %v2069_v59 = vshll.u32 %v11856_v55, 16 }
  0x55   : > { %v2074_v61 = vshrl.u32 %v11857_v57, 16  ;;  %v2077_v62 = vshll.u32 %v11857_v57, 16  ;;  %v11860_v2 = vld [vmem:[#allocation2 + $0x30] sm:$0xfc]   ;;  %v6264_v51 = vrot.slane %v11869_v47, 2 }
  0x56   : > { %v1577_v60 = vsel %vm1562_vm2, %v1575_v54, %v1576_v56  ;;  %v11853_v63 = vld [vmem:[#allocation2 + $0x50] ss:$0 sps:$4 sm:$0x33]   ;;  %v2068_v0 = vrot.slane %v2066_v58, 2  ;;  %v2071_v6 = vrot.slane %v2069_v59, 3  ;;  %v3952_v24 = vrot.slane %v11860_v2, 2 }
  0x57   : > { %1643 = vrot.lane.b32.xlu1 %v1577_v60, %s12436_s5  ;;  %v11852_v3 = vld [vmem:[#allocation2 + $0x48] sm:$0xfc]   ;;  %v1582_v4 = vrot.slane %v11853_v63, 2  ;;  %v11855_v8 = vld [vmem:[#allocation2 + $0x50] ss:$0 sps:$4 sm:$0x77]   ;;  %v4384_v54 = vsel %vm4372_vm1, %v4382_v43, %v4383_v44  ;;  %v6265_v60 = vsel %vm1562_vm2, %v6263_v50, %v6264_v51 }
  0x58   : > { %2415 = vrot.lane.b32.xlu0 %v2098_v53, %s12435_s4  ;;  %v11854_v5 = vld [vmem:[#allocation2 + $0x48] sm:$0xfc]   ;;  %v1581_v7 = vrot.slane %v11852_v3, 2  ;;  %v2076_v9 = vrot.slane %v2074_v61, 2  ;;  %v2079_v11 = vrot.slane %v2077_v62, 3  ;;  %v2072_v15 = vor.u32 %v2071_v6, %v2068_v0 }
  0x59   : > { %v2100_v13 = vshrl.u32 %v11854_v5, 16  ;;  %v2103_v14 = vshll.u32 %v11854_v5, 16  ;;  %v11861_v16 = vld [vmem:[#allocation2 + $0x38] ss:$0 sps:$4 sm:$0x33]   ;;  %v2108_v18 = vshrl.u32 %v11855_v8, 16 }
  0x5a   : > { %v1583_v17 = vsel %vm1562_vm2, %v1581_v7, %v1582_v4  ;;  %v2111_v19 = vshll.u32 %v11855_v8, 16  ;;  %v2080_v20 = vor.u32 %v2079_v11, %v2076_v9  ;;  %v3953_v28 = vrot.slane %v11861_v16, 2  ;;  %v11864_v34 = vld [vmem:[#allocation2 + $0x30] sm:$0xf8]   ;;  %v11872_v58 = vld [vmem:[#allocation2 + $0x18] sm:$0xf8]  }
  0x5b   : > { %1647 = vrot.lane.b32.xlu1 %v1583_v17, %s12436_s5  ;;  %v2102_v21 = vrot.slane %v2100_v13, 2  ;;  %v2105_v22 = vrot.slane %v2103_v14, 3  ;;  %v2110_v25 = vrot.slane %v2108_v18, 2  ;;  %v11865_v35 = vld [vmem:[#allocation2 + $0x38] ss:$0 sps:$4 sm:$0x77]  }
  0x5c   : > { %v2113_v26 = vrot.slane %v2111_v19, 3  ;;  %v2081_v27 = vsel %vm1996_vm8, %v2072_v15, %v2080_v20  ;;  %v3954_v37 = vsel %vm1562_vm2, %v3952_v24, %v3953_v28  ;;  %v4385_v38 = vrot.slane %v11864_v34, 3  ;;  %v11867_v41 = vld [vmem:[#allocation2 + $0x14] ss:$0 sps:$4 sm:$0x33]  }
  0x5d   : > { %v2106_v30 = vor.u32 %v2105_v22, %v2102_v21  ;;  %v4386_v39 = vrot.slane %v11865_v35, 3  ;;  %v6261_v49 = vrot.slane %v11867_v41, 2  ;;  %v11870_v52 = vld [vmem:[#allocation2 + $0xc] sm:$0xf8]   ;;  %v11871_v53 = vld [vmem:[#allocation2 + $0x14] ss:$0 sps:$4 sm:$0xff]  }
  0x5e   : > { %v2114_v32 = vor.u32 %v2113_v26, %v2110_v25  ;;  %v6708_v55 = vshrl.u32 %v11870_v52, 16  ;;  %v6711_v56 = vshll.u32 %v11870_v52, 16  ;;  %v6716_v57 = vshrl.u32 %v11871_v53, 16  ;;  %v11873_v62 = vld [vmem:[#allocation2 + $0x20] ss:$0 sps:$4 sm:$0xff]  }
  0x5f   : > { %2413 = vrot.lane.b32.xlu1 %v2081_v27, %s12435_s4  ;;  %v4387_v48 = vsel %vm4372_vm1, %v4385_v38, %v4386_v39  ;;  %v6262_v59 = vsel %vm1562_vm2, %v6260_v46, %v6261_v49  ;;  %v6719_v61 = vshll.u32 %v11871_v53, 16  ;;  %v293_v63 = vld [vmem:[%s12664_s30 + $0x18] sm:$0xf]  ;;  %v6725_v3 = vshrl.u32 %v11872_v58, 16  ;;  %v294_v4 = vld [vmem:[%s12664_s30 + $0x1c] sm:$0xf] }
  0x60   : > { %v2115_v36 = vsel %vm1996_vm8, %v2106_v30, %v2114_v32  ;;  %v6710_v0 = vrot.slane %v6708_v55, 3  ;;  %v6713_v1 = vrot.slane %v6711_v56, 4  ;;  %v6718_v2 = vrot.slane %v6716_v57, 3  ;;  %v295_v9 = vld [vmem:[%s12664_s30 + $0x20] sm:$0xf] }
  0x61   : > { %2417 = vrot.lane.b32.xlu0 %v2115_v36, %s12435_s4  ;;  %v6721_v5 = vrot.slane %v6719_v61, 4  ;;  %v6728_v6 = vshll.u32 %v11872_v58, 16  ;;  %v6733_v7 = vshrl.u32 %v11873_v62, 16  ;;  %v6736_v8 = vshll.u32 %v11873_v62, 16  ;;  %v296_v15 = vld [vmem:[%s12664_s30 + $0x24] sm:$0xf] }
  0x62   : > { %v6714_v11 = vor.u32 %v6713_v1, %v6710_v0  ;;  %v6727_v12 = vrot.slane %v6725_v3, 3  ;;  %v369_v13 = vrot.slane %v293_v63, 6  ;;  %v371_v14 = vrot.slane %v294_v4, 6  ;;  %v11882_v32 = vld [vmem:[#allocation2 + $0x3c] sm:$0xfc]  }
  0x63   : > { %4020 = vrot.lane.b32.xlu1 %v3954_v37, %s12436_s5  ;;  %v6722_v16 = vor.u32 %v6721_v5, %v6718_v2  ;;  %v6730_v17 = vrot.slane %v6728_v6, 4  ;;  %v6735_v18 = vrot.slane %v6733_v7, 3  ;;  %v6738_v19 = vrot.slane %v6736_v8, 4  ;;  %v12756_v34 = vld [vmem:[#allocation2 + $0x48] sm:$0xfc]  }
  0x64   : > { %v370_v20 = vrot.slane %v369_v13, 4  ;;  %v373_v21 = vrot.slane %v371_v14, 4  ;;  %495 = vst.msk [vmem:[#allocation2 + $0x54] sm:$0xc] %vm483_vm5, %v369_v13  ;;  %v374_v22 = vrot.slane %v295_v9, 6  ;;  %v376_v23 = vrot.slane %v296_v15, 6 }
  0x65   : > { %4447 = vrot.lane.b32.xlu0 %v4378_v42, %s12435_s4  ;;  %v6723_v24 = vsel %vm6689_vm9, %v6714_v11, %v6722_v16  ;;  %v6731_v25 = vor.u32 %v6730_v17, %v6727_v12  ;;  %v6739_v26 = vor.u32 %v6738_v19, %v6735_v18  ;;  %v3955_v35 = vrot.slane %v11882_v32, 2  ;;  %v11885_v36 = vld [vmem:[#allocation2 + $0x50] ss:$0 sps:$4 sm:$0x33]   ;;  %v11886_v58 = vld [vmem:[#allocation2 + $0x3c] sm:$0xf8]  }
  0x66   : > { %v372_v27 = vsel %vm12669_vm7, %v370_v20, %v371_v14  ;;  %497 = vst.msk [vmem:[#allocation2 + $0x5c] sm:$0x3] %vm487_vm6, %v373_v21  ;;  %v375_v28 = vrot.slane %v374_v22, 4  ;;  %v378_v29 = vrot.slane %v376_v23, 4  ;;  %v3956_v38 = vrot.slane %v11883_v33, 2 }
  0x67   : > { %4453 = vrot.lane.b32.xlu1 %v4387_v48, %s12435_s4  ;;  %498 = vst.msk [vmem:[#allocation2 + $0x60] sm:$0xc] %vm483_vm5, %v374_v22  ;;  %v6740_v30 = vsel %vm6689_vm9, %v6731_v25, %v6739_v26  ;;  %v3958_v44 = vrot.slane %v12756_v34, 2  ;;  %v3959_v46 = vrot.slane %v11885_v36, 2  ;;  %v11888_v6 = vld [vmem:[#allocation2 + $0x48] sm:$0xf8]  }
  0x68   : > { %496 = vst.msk [vmem:[#allocation2 + $0x58] sm:$0xf] %vm214_vm0, %v372_v27  ;;  %v377_v31 = vsel %vm12669_vm7, %v375_v28, %v376_v23  ;;  %v11887_v63 = vld [vmem:[#allocation2 + $0x44] ss:$0 sps:$4 sm:$0x77]   ;;  %v4388_v13 = vrot.slane %v11886_v58, 3  ;;  %v3957_v23 = vsel %vm1562_vm2, %v3955_v35, %v3956_v38 }
  0x69   : > { %4451 = vrot.lane.b32.xlu0 %v4384_v54, %s12435_s4  ;;  %500 = vst.msk [vmem:[#allocation2 + $0x68] sm:$0x3] %vm487_vm6, %v378_v29  ;;  %v11889_v7 = vld [vmem:[#allocation2 + $0x50] ss:$0 sps:$4 sm:$0x77]   ;;  %v4389_v19 = vrot.slane %v11887_v63, 3  ;;  %v3960_v29 = vsel %vm1562_vm2, %v3958_v44, %v3959_v46 }
  0x6a   : > { %499 = vst.msk [vmem:[#allocation2 + $0x64] sm:$0xf] %vm214_vm0, %v377_v31  ;;  %v11890_v14 = vld [vmem:[#allocation2 + $0x24] sm:$0xfc]   ;;  %v4391_v20 = vrot.slane %v11888_v6, 3 }
  0x6b   : > { %6333 = vrot.lane.b32.xlu1 %v6265_v60, %s12436_s5  ;;  %v11891_v15 = vld [vmem:[#allocation2 + $0x2c] ss:$0 sps:$4 sm:$0x33]   ;;  %v11892_v21 = vld [vmem:[#allocation2 + $0x30] sm:$0xfc]   ;;  %v6266_v26 = vrot.slane %v11890_v14, 2  ;;  %v4390_v35 = vsel %vm4372_vm1, %v4388_v13, %v4389_v19 }
  0x6c   : > { %v11893_v25 = vld [vmem:[#allocation2 + $0x38] ss:$0 sps:$4 sm:$0x33]   ;;  %v6267_v27 = vrot.slane %v11891_v15, 2  ;;  %v11894_v28 = vld [vmem:[#allocation2 + $0x24] sm:$0xf8]  }
  0x6d   : > { %6331 = vrot.lane.b32.xlu0 %v6262_v59, %s12436_s5  ;;  %v11875_v37 = vld [vmem:[#allocation2 + $0x5c] ss:$0 sps:$4 sm:$0x33]   ;;  %v6270_v31 = vrot.slane %v11893_v25, 2  ;;  %v11895_v32 = vld [vmem:[#allocation2 + $0x2c] ss:$0 sps:$4 sm:$0xff]  }
  0x6e   : > { %v1585_v40 = vrot.slane %v11875_v37, 2  ;;  %v11879_v50 = vld [vmem:[#allocation2 + $0x5c] ss:$0 sps:$4 sm:$0x77]   ;;  %v6742_v33 = vshrl.u32 %v11894_v28, 16  ;;  %v6745_v34 = vshll.u32 %v11894_v28, 16 }
  0x6f   : > { %7102 = vrot.lane.b32.xlu1 %v6740_v30, %s12435_s4  ;;  %v11874_v39 = vld [vmem:[#allocation2 + $0x54] sm:$0xfc]   ;;  %v2125_v54 = vshrl.u32 %v11879_v50, 16  ;;  %v2128_v56 = vshll.u32 %v11879_v50, 16  ;;  %v6269_v30 = vrot.slane %v11892_v21, 2  ;;  %v6750_v36 = vshrl.u32 %v11895_v32, 16 }
  0x70   : > { %v11877_v41 = vld [vmem:[#allocation2 + $0x68] ss:$0 sps:$4 sm:$0x33]   ;;  %v1584_v42 = vrot.slane %v11874_v39, 2  ;;  %v11878_v49 = vld [vmem:[#allocation2 + $0x54] sm:$0xfc]  }
  0x71   : > { %7100 = vrot.lane.b32.xlu0 %v6723_v24, %s12435_s4  ;;  %v11876_v43 = vld [vmem:[#allocation2 + $0x60] sm:$0xfc]   ;;  %v1588_v45 = vrot.slane %v11877_v41, 2  ;;  %v2117_v52 = vshrl.u32 %v11878_v49, 16  ;;  %v2120_v53 = vshll.u32 %v11878_v49, 16  ;;  %v2127_v61 = vrot.slane %v2125_v54, 2 }
  0x72   : > { %v1586_v47 = vsel %vm1562_vm2, %v1584_v42, %v1585_v40  ;;  %v1587_v48 = vrot.slane %v11876_v43, 2  ;;  %v11880_v55 = vld [vmem:[#allocation2 + $0x60] sm:$0xfc]   ;;  %v11881_v57 = vld [vmem:[#allocation2 + $0x68] ss:$0 sps:$4 sm:$0x77]   ;;  %v6268_v41 = vsel %vm1562_vm2, %v6266_v26, %v6267_v27 }
  0x73   : > { %v2119_v59 = vrot.slane %v2117_v52, 2  ;;  %v2122_v60 = vrot.slane %v2120_v53, 3  ;;  %v2134_v62 = vshrl.u32 %v11880_v55, 16  ;;  %v2130_v0 = vrot.slane %v2128_v56, 3  ;;  %v11896_v38 = vld [vmem:[#allocation2 + $0x30] sm:$0xf8]  }
  0x74   : > { %v1589_v51 = vsel %vm1562_vm2, %v1587_v48, %v1588_v45  ;;  %v2137_v1 = vshll.u32 %v11880_v55, 16  ;;  %v2142_v2 = vshrl.u32 %v11881_v57, 16  ;;  %v2145_v3 = vshll.u32 %v11881_v57, 16  ;;  %v11897_v39 = vld [vmem:[#allocation2 + $0x38] ss:$0 sps:$4 sm:$0xff]  }
  0x75   : > { %1649 = vrot.lane.b32.xlu0 %v1586_v47, %s12436_s5  ;;  %1651 = vrot.lane.b32.xlu1 %v1589_v51, %s12436_s5  ;;  %v2123_v4 = vor.u32 %v2122_v60, %v2119_v59  ;;  %v2136_v5 = vrot.slane %v2134_v62, 2  ;;  %v2131_v8 = vor.u32 %v2130_v0, %v2127_v61  ;;  %v4392_v24 = vrot.slane %v11889_v7, 3  ;;  %v297_v44 = vld [vmem:[%s12664_s30 + $0x28] sm:$0xf]  ;;  %v298_v45 = vld [vmem:[%s12664_s30 + $0x2c] sm:$0xf] }
  0x76   : > { %v2139_v9 = vrot.slane %v2137_v1, 3  ;;  %v2144_v11 = vrot.slane %v2142_v2, 2  ;;  %v2147_v12 = vrot.slane %v2145_v3, 3  ;;  %v6753_v37 = vshll.u32 %v11895_v32, 16  ;;  %v299_v50 = vld [vmem:[%s12664_s30 + $0x30] sm:$0xf] }
  0x77   : > { %v2132_v16 = vsel %vm1996_vm8, %v2123_v4, %v2131_v8  ;;  %v4393_v40 = vsel %vm4372_vm1, %v4391_v20, %v4392_v24  ;;  %v6744_v42 = vrot.slane %v6742_v33, 3  ;;  %v6747_v43 = vrot.slane %v6745_v34, 4  ;;  %v300_v55 = vld [vmem:[%s12664_s30 + $0x34] sm:$0xf]  ;;  %v12801_v14 = vld [vmem:[#allocation2 + $0x60] sm:$0xfc]  }
  0x78   : > { %v2140_v17 = vor.u32 %v2139_v9, %v2136_v5  ;;  %v2148_v18 = vor.u32 %v2147_v12, %v2144_v11  ;;  %v6752_v46 = vrot.slane %v6750_v36, 3  ;;  %v6755_v47 = vrot.slane %v6753_v37, 4  ;;  %v12792_v11 = vld [vmem:[#allocation2 + $0x54] sm:$0xfc]   ;;  %v11912_v36 = vld [vmem:[#allocation2 + $0x60] sm:$0xf8]  }
  0x79   : > { %2419 = vrot.lane.b32.xlu0 %v2132_v16, %s12435_s4  ;;  %v6759_v48 = vshrl.u32 %v11896_v38, 16  ;;  %v6762_v49 = vshll.u32 %v11896_v38, 16  ;;  %v6748_v51 = vor.u32 %v6747_v43, %v6744_v42  ;;  %v6767_v52 = vshrl.u32 %v11897_v39, 16  ;;  %v12798_v13 = vld [vmem:[#allocation2 + $0x5c] ss:$0 sps:$4 sm:$0x33]  }
  0x7a   : > { %v2149_v22 = vsel %vm1996_vm8, %v2140_v17, %v2148_v18  ;;  %v6770_v53 = vshll.u32 %v11897_v39, 16  ;;  %v379_v54 = vrot.slane %v297_v44, 6  ;;  %v6756_v56 = vor.u32 %v6755_v47, %v6752_v46  ;;  %v12804_v16 = vld [vmem:[#allocation2 + $0x68] ss:$0 sps:$4 sm:$0x33]  }
  0x7b   : > { %2421 = vrot.lane.b32.xlu1 %v2149_v22, %s12435_s4  ;;  %v6761_v57 = vrot.slane %v6759_v48, 3  ;;  %v6764_v58 = vrot.slane %v6762_v49, 4  ;;  %v381_v59 = vrot.slane %v298_v45, 6  ;;  %v6769_v60 = vrot.slane %v6767_v52, 3  ;;  %v11910_v20 = vld [vmem:[#allocation2 + $0x54] sm:$0xf8]  }
  0x7c   : > { %v6772_v61 = vrot.slane %v6770_v53, 4  ;;  %v380_v62 = vrot.slane %v379_v54, 4  ;;  %501 = vst.msk [vmem:[#allocation2 + $0x6c] sm:$0xc] %vm483_vm5, %v379_v54  ;;  %v384_v63 = vrot.slane %v299_v50, 6  ;;  %v6271_v0 = vsel %vm1562_vm2, %v6269_v30, %v6270_v31 }
  0x7d   : > { %4022 = vrot.lane.b32.xlu0 %v3957_v23, %s12436_s5  ;;  %v6765_v1 = vor.u32 %v6764_v58, %v6761_v57  ;;  %v383_v2 = vrot.slane %v381_v59, 4  ;;  %v386_v3 = vrot.slane %v300_v55, 6  ;;  %v6757_v7 = vsel %vm6689_vm9, %v6748_v51, %v6756_v56  ;;  %v11911_v27 = vld [vmem:[#allocation2 + $0x5c] ss:$0 sps:$4 sm:$0x77]  }
  0x7e   : > { %v6773_v4 = vor.u32 %v6772_v61, %v6769_v60  ;;  %v382_v5 = vsel %vm12669_vm7, %v380_v62, %v381_v59  ;;  %v385_v6 = vrot.slane %v384_v63, 4  ;;  %504 = vst.msk [vmem:[#allocation2 + $0x78] sm:$0xc] %vm483_vm5, %v384_v63  ;;  %v3961_v15 = vrot.slane %v12792_v11, 2  ;;  %v11914_v58 = vld [vmem:[#allocation2 + $0x3c] sm:$0xfc]  }
  0x7f   : > { %4024 = vrot.lane.b32.xlu1 %v3960_v29, %s12436_s5  ;;  %502 = vst.msk [vmem:[#allocation2 + $0x70] sm:$0xf] %vm214_vm0, %v382_v5  ;;  %v388_v8 = vrot.slane %v386_v3, 4  ;;  %v3962_v19 = vrot.slane %v12798_v13, 2  ;;  %v3964_v22 = vrot.slane %v12801_v14, 2  ;;  %v3965_v32 = vrot.slane %v12804_v16, 2 }
  0x80   : > { %503 = vst.msk [vmem:[#allocation2 + $0x74] sm:$0x3] %vm487_vm6, %v383_v2  ;;  %v387_v9 = vsel %vm12669_vm7, %v385_v6, %v386_v3  ;;  %v6774_v12 = vsel %vm6689_vm9, %v6765_v1, %v6773_v4  ;;  %v4395_v53 = vrot.slane %v11911_v27, 3  ;;  %v11913_v54 = vld [vmem:[#allocation2 + $0x68] ss:$0 sps:$4 sm:$0x77]  }
  0x81   : > { %4455 = vrot.lane.b32.xlu0 %v4390_v35, %s12435_s4  ;;  %505 = vst.msk [vmem:[#allocation2 + $0x7c] sm:$0xf] %vm214_vm0, %v387_v9  ;;  %v4397_v60 = vrot.slane %v11912_v36, 3  ;;  %v11915_v61 = vld [vmem:[#allocation2 + $0x44] ss:$0 sps:$4 sm:$0x33]   ;;  %v3963_v6 = vsel %vm1562_vm2, %v3961_v15, %v3962_v19  ;;  %v3966_v9 = vsel %vm1562_vm2, %v3964_v22, %v3965_v32 }
  0x82   : > { %506 = vst.msk [vmem:[#allocation2 + $0x80] sm:$0x3] %vm487_vm6, %v388_v8  ;;  %v6272_v1 = vrot.slane %v11914_v58, 2  ;;  %v6273_v2 = vrot.slane %v11915_v61, 2  ;;  %v11916_v3 = vld [vmem:[#allocation2 + $0x48] sm:$0xfc]  }
  0x83   : > { %4457 = vrot.lane.b32.xlu1 %v4393_v40, %s12435_s4  ;;  %v11917_v4 = vld [vmem:[#allocation2 + $0x50] ss:$0 sps:$4 sm:$0x33]   ;;  %v11919_v8 = vld [vmem:[#allocation2 + $0x44] ss:$0 sps:$4 sm:$0xff]  }
  0x84   : > { %v6784_v16 = vshrl.u32 %v11919_v8, 16  ;;  %v6274_v15 = vsel %vm1562_vm2, %v6272_v1, %v6273_v2  ;;  %v6276_v19 = vrot.slane %v11917_v4, 2  ;;  %v302_v27 = vld [vmem:[%s12664_s30 + $0x3c] sm:$0xf]  ;;  %v303_v32 = vld [vmem:[%s12664_s30 + $0x40] sm:$0xf] }
  0x85   : > { %6335 = vrot.lane.b32.xlu0 %v6268_v41, %s12436_s5  ;;  %v4394_v41 = vrot.slane %v11910_v20, 3  ;;  %v6787_v20 = vshll.u32 %v11919_v8, 16  ;;  %v391_v36 = vrot.slane %v302_v27, 6 }
  0x86   : > { %v11898_v17 = vld [vmem:[#allocation2 + $0x6c] sm:$0xfc]  }
  0x87   : > { %6337 = vrot.lane.b32.xlu1 %v6271_v0, %s12436_s5  ;;  %v11899_v18 = vld [vmem:[#allocation2 + $0x74] ss:$0 sps:$4 sm:$0x33]   ;;  %v1590_v21 = vrot.slane %v11898_v17, 2  ;;  %v11902_v26 = vld [vmem:[#allocation2 + $0x6c] sm:$0xfc]   ;;  %v4396_v11 = vsel %vm4372_vm1, %v4394_v41, %v4395_v53 }
  0x88   : > { %v1591_v23 = vrot.slane %v11899_v18, 2  ;;  %v11900_v24 = vld [vmem:[#allocation2 + $0x78] sm:$0xfc]   ;;  %v11903_v31 = vld [vmem:[#allocation2 + $0x74] ss:$0 sps:$4 sm:$0x77]  }
  0x89   : > { %7104 = vrot.lane.b32.xlu0 %v6757_v7, %s12435_s4  ;;  %v11901_v25 = vld [vmem:[#allocation2 + $0x80] ss:$0 sps:$4 sm:$0x33]   ;;  %v1593_v29 = vrot.slane %v11900_v24, 2  ;;  %v2151_v33 = vshrl.u32 %v11902_v26, 16  ;;  %v2154_v34 = vshll.u32 %v11902_v26, 16 }
  0x8a   : > { %v1592_v28 = vsel %vm1562_vm2, %v1590_v21, %v1591_v23  ;;  %v1594_v30 = vrot.slane %v11901_v25, 2  ;;  %v11904_v35 = vld [vmem:[#allocation2 + $0x78] sm:$0xfc]   ;;  %v2159_v38 = vshrl.u32 %v11903_v31, 16  ;;  %v2162_v39 = vshll.u32 %v11903_v31, 16 }
  0x8b   : > { %7106 = vrot.lane.b32.xlu1 %v6774_v12, %s12435_s4  ;;  %v11905_v40 = vld [vmem:[#allocation2 + $0x80] ss:$0 sps:$4 sm:$0x77]   ;;  %v2153_v42 = vrot.slane %v2151_v33, 2  ;;  %v2156_v43 = vrot.slane %v2154_v34, 3  ;;  %v2168_v44 = vshrl.u32 %v11904_v35, 16 }
  0x8c   : > { %v1595_v37 = vsel %vm1562_vm2, %v1593_v29, %v1594_v30  ;;  %v2171_v45 = vshll.u32 %v11904_v35, 16  ;;  %v2161_v46 = vrot.slane %v2159_v38, 2  ;;  %v2164_v47 = vrot.slane %v2162_v39, 3  ;;  %v11918_v7 = vld [vmem:[#allocation2 + $0x3c] sm:$0xf8]  }
  0x8d   : > { %1653 = vrot.lane.b32.xlu0 %v1592_v28, %s12436_s5  ;;  %v2176_v48 = vshrl.u32 %v11905_v40, 16  ;;  %v2179_v49 = vshll.u32 %v11905_v40, 16  ;;  %v2157_v50 = vor.u32 %v2156_v43, %v2153_v42  ;;  %v2170_v51 = vrot.slane %v2168_v44, 2  ;;  %v11920_v17 = vld [vmem:[#allocation2 + $0x48] sm:$0xf8]  }
  0x8e   : > { %v2173_v52 = vrot.slane %v2171_v45, 3  ;;  %v2165_v55 = vor.u32 %v2164_v47, %v2161_v46  ;;  %v4398_v0 = vrot.slane %v11913_v54, 3  ;;  %v6275_v12 = vrot.slane %v11916_v3, 2  ;;  %v11921_v21 = vld [vmem:[#allocation2 + $0x50] ss:$0 sps:$4 sm:$0xff]  }
  0x8f   : > { %1655 = vrot.lane.b32.xlu1 %v1595_v37, %s12436_s5  ;;  %v2178_v56 = vrot.slane %v2176_v48, 2  ;;  %v2181_v57 = vrot.slane %v2179_v49, 3  ;;  %v6776_v13 = vshrl.u32 %v11918_v7, 16  ;;  %v6779_v14 = vshll.u32 %v11918_v7, 16  ;;  %v301_v23 = vld [vmem:[%s12664_s30 + $0x38] sm:$0xf] }
  0x90   : > { %v2174_v59 = vor.u32 %v2173_v52, %v2170_v51  ;;  %v2166_v62 = vsel %vm1996_vm8, %v2157_v50, %v2165_v55  ;;  %v4399_v18 = vsel %vm4372_vm1, %v4397_v60, %v4398_v0  ;;  %v6786_v25 = vrot.slane %v6784_v16, 3  ;;  %v304_v37 = vld [vmem:[%s12664_s30 + $0x44] sm:$0xf]  ;;  %v12843_v54 = vld [vmem:[#allocation2 + $0x6c] sm:$0xfc]  }
  0x91   : > { %v2182_v63 = vor.u32 %v2181_v57, %v2178_v56  ;;  %2423 = vrot.lane.b32.xlu0 %v2166_v62, %s12435_s4  ;;  %v6778_v22 = vrot.slane %v6776_v13, 3  ;;  %v6781_v24 = vrot.slane %v6779_v14, 4  ;;  %v6793_v26 = vshrl.u32 %v11920_v17, 16  ;;  %v12848_v56 = vld [vmem:[#allocation2 + $0x74] ss:$0 sps:$4 sm:$0x33]  }
  0x92   : > { %v6789_v28 = vrot.slane %v6787_v20, 4  ;;  %v6796_v29 = vshll.u32 %v11920_v17, 16  ;;  %v6801_v30 = vshrl.u32 %v11921_v21, 16  ;;  %v6804_v31 = vshll.u32 %v11921_v21, 16  ;;  %v12851_v57 = vld [vmem:[#allocation2 + $0x78] sm:$0xfc]  }
  0x93   : > { %v2183_v5 = vsel %vm1996_vm8, %v2174_v59, %v2182_v63  ;;  %v6782_v33 = vor.u32 %v6781_v24, %v6778_v22  ;;  %v6795_v34 = vrot.slane %v6793_v26, 3  ;;  %v389_v35 = vrot.slane %v301_v23, 6  ;;  %v12854_v63 = vld [vmem:[#allocation2 + $0x80] ss:$0 sps:$4 sm:$0x33]  }
  0x94   : > { %2425 = vrot.lane.b32.xlu1 %v2183_v5, %s12435_s4  ;;  %v6790_v38 = vor.u32 %v6789_v28, %v6786_v25  ;;  %v6798_v39 = vrot.slane %v6796_v29, 4  ;;  %v6803_v40 = vrot.slane %v6801_v30, 3  ;;  %v6806_v41 = vrot.slane %v6804_v31, 4  ;;  %v12856_v0 = vld [vmem:[#allocation2 + $0x6c] sm:$0xf8]  }
  0x95   : > { %4026 = vrot.lane.b32.xlu0 %v3963_v6, %s12436_s5  ;;  %v390_v42 = vrot.slane %v389_v35, 4  ;;  %v393_v43 = vrot.slane %v391_v36, 4  ;;  %507 = vst.msk [vmem:[#allocation2 + $0x84] sm:$0xc] %vm483_vm5, %v389_v35  ;;  %v394_v44 = vrot.slane %v303_v32, 6  ;;  %v396_v45 = vrot.slane %v304_v37, 6 }
  0x96   : > { %v6277_v46 = vsel %vm1562_vm2, %v6275_v12, %v6276_v19  ;;  %v6799_v47 = vor.u32 %v6798_v39, %v6795_v34  ;;  %v6807_v48 = vor.u32 %v6806_v41, %v6803_v40  ;;  %v6791_v52 = vsel %vm6689_vm9, %v6782_v33, %v6790_v38  ;;  %v11936_v32 = vld [vmem:[#allocation2 + $0x78] sm:$0xf8]   ;;  %v11937_v33 = vld [vmem:[#allocation2 + $0x80] ss:$0 sps:$4 sm:$0x77]  }
  0x97   : > { %v392_v49 = vsel %vm12669_vm7, %v390_v42, %v391_v36  ;;  %509 = vst.msk [vmem:[#allocation2 + $0x8c] sm:$0x3] %vm487_vm6, %v393_v43  ;;  %v395_v50 = vrot.slane %v394_v44, 4  ;;  %v398_v51 = vrot.slane %v396_v45, 4  ;;  %v3967_v59 = vrot.slane %v12843_v54, 2 }
  0x98   : > { %4028 = vrot.lane.b32.xlu1 %v3966_v9, %s12436_s5  ;;  %510 = vst.msk [vmem:[#allocation2 + $0x90] sm:$0xc] %vm483_vm5, %v394_v44  ;;  %v6808_v55 = vsel %vm6689_vm9, %v6799_v47, %v6807_v48  ;;  %v3968_v3 = vrot.slane %v12848_v56, 2  ;;  %v3970_v5 = vrot.slane %v12851_v57, 2  ;;  %v3971_v20 = vrot.slane %v12854_v63, 2 }
  0x99   : > { %4459 = vrot.lane.b32.xlu0 %v4396_v11, %s12435_s4  ;;  %508 = vst.msk [vmem:[#allocation2 + $0x88] sm:$0xf] %vm214_vm0, %v392_v49  ;;  %v397_v53 = vsel %vm12669_vm7, %v395_v50, %v396_v45  ;;  %v4400_v21 = vrot.slane %v12856_v0, 3  ;;  %v11938_v40 = vld [vmem:[#allocation2 + $0x54] sm:$0xfc]   ;;  %v4404_v47 = vrot.slane %v11937_v33, 3 }
  0x9a   : > { %512 = vst.msk [vmem:[#allocation2 + $0x98] sm:$0x3] %vm487_vm6, %v398_v51  ;;  %v11939_v41 = vld [vmem:[#allocation2 + $0x5c] ss:$0 sps:$4 sm:$0x33]   ;;  %v3969_v50 = vsel %vm1562_vm2, %v3967_v59, %v3968_v3  ;;  %v6278_v51 = vrot.slane %v11938_v40, 2  ;;  %v3972_v56 = vsel %vm1562_vm2, %v3970_v5, %v3971_v20 }
  0x9b   : > { %511 = vst.msk [vmem:[#allocation2 + $0x94] sm:$0xf] %vm214_vm0, %v397_v53  ;;  %v11940_v48 = vld [vmem:[#allocation2 + $0x60] sm:$0xfc]   ;;  %v6279_v53 = vrot.slane %v11939_v41, 2 }
  0x9c   : > { %4461 = vrot.lane.b32.xlu1 %v4399_v18, %s12435_s4  ;;  %v11935_v18 = vld [vmem:[#allocation2 + $0x74] ss:$0 sps:$4 sm:$0x77]   ;;  %v11942_v54 = vld [vmem:[#allocation2 + $0x20] ss:$0 sps:$4 sm:$0x33]  }
  0x9d   : > { %6339 = vrot.lane.b32.xlu0 %v6274_v15, %s12436_s5  ;;  %v4401_v39 = vrot.slane %v11935_v18, 3  ;;  %v6281_v57 = vrot.slane %v11940_v48, 2  ;;  %v884_v59 = vshrl.u32 %v11942_v54, 16  ;;  %v11946_v18 = vld [vmem:[#allocation2 + $0x60] sm:$0xf8]  }
  0x9e   : > { %v11923_v58 = vld [vmem:[#allocation2 + $0x8c] ss:$0 sps:$4 sm:$0x33]  }
  0x9f   : > { %v1597_v61 = vrot.slane %v11923_v58, 2  ;;  %v11927_v9 = vld [vmem:[#allocation2 + $0x8c] ss:$0 sps:$4 sm:$0x77]  }
  0xa0   : > { %6341 = vrot.lane.b32.xlu1 %v6277_v46, %s12436_s5  ;;  %v11922_v60 = vld [vmem:[#allocation2 + $0x84] sm:$0xfc]   ;;  %v2193_v16 = vshrl.u32 %v11927_v9, 16  ;;  %v2196_v15 = vshll.u32 %v11927_v9, 16  ;;  %v4403_v46 = vrot.slane %v11936_v32, 3 }
  0xa1   : > { %7108 = vrot.lane.b32.xlu0 %v6791_v52, %s12435_s4  ;;  %v11925_v62 = vld [vmem:[#allocation2 + $0x98] ss:$0 sps:$4 sm:$0x33]   ;;  %v1596_v1 = vrot.slane %v11922_v60, 2  ;;  %v11926_v8 = vld [vmem:[#allocation2 + $0x84] sm:$0xfc]  }
  0xa2   : > { %v11924_v2 = vld [vmem:[#allocation2 + $0x90] sm:$0xfc]   ;;  %v1600_v4 = vrot.slane %v11925_v62, 2  ;;  %v2185_v13 = vshrl.u32 %v11926_v8, 16  ;;  %v2188_v14 = vshll.u32 %v11926_v8, 16  ;;  %v2195_v24 = vrot.slane %v2193_v16, 2 }
  0xa3   : > { %v1598_v6 = vsel %vm1562_vm2, %v1596_v1, %v1597_v61  ;;  %v1599_v7 = vrot.slane %v11924_v2, 2  ;;  %v11928_v17 = vld [vmem:[#allocation2 + $0x90] sm:$0xfc]   ;;  %v11929_v19 = vld [vmem:[#allocation2 + $0x98] ss:$0 sps:$4 sm:$0x77]   ;;  %v4402_v62 = vsel %vm4372_vm1, %v4400_v21, %v4401_v39  ;;  %v4405_v3 = vsel %vm4372_vm1, %v4403_v46, %v4404_v47 }
  0xa4   : > { %7110 = vrot.lane.b32.xlu1 %v6808_v55, %s12435_s4  ;;  %v2187_v23 = vrot.slane %v2185_v13, 2  ;;  %v2190_v22 = vrot.slane %v2188_v14, 3  ;;  %v2202_v25 = vshrl.u32 %v11928_v17, 16  ;;  %v2198_v26 = vrot.slane %v2196_v15, 3  ;;  %v11943_v60 = vld [vmem:[#allocation2 + $0x18] sm:$0xfe]  }
  0xa5   : > { %1657 = vrot.lane.b32.xlu0 %v1598_v6, %s12436_s5  ;;  %v1601_v12 = vsel %vm1562_vm2, %v1599_v7, %v1600_v4  ;;  %v2205_v27 = vshll.u32 %v11928_v17, 16  ;;  %v2210_v28 = vshrl.u32 %v11929_v19, 16  ;;  %v2213_v29 = vshll.u32 %v11929_v19, 16  ;;  %v11941_v52 = vld [vmem:[#allocation2 + $0x68] ss:$0 sps:$4 sm:$0x33]  }
  0xa6   : > { %v2191_v30 = vor.u32 %v2190_v22, %v2187_v23  ;;  %v2204_v31 = vrot.slane %v2202_v25, 2  ;;  %v2199_v35 = vor.u32 %v2198_v26, %v2195_v24  ;;  %v6282_v58 = vrot.slane %v11941_v52, 2  ;;  %v11944_v1 = vld [vmem:[#allocation2 + $0x54] sm:$0xf8]   ;;  %v11945_v6 = vld [vmem:[#allocation2 + $0x5c] ss:$0 sps:$4 sm:$0xff]  }
  0xa7   : > { %v2207_v36 = vrot.slane %v2205_v27, 3  ;;  %v2212_v37 = vrot.slane %v2210_v28, 2  ;;  %v2215_v38 = vrot.slane %v2213_v29, 3  ;;  %v887_v61 = vshll.u32 %v11942_v54, 16  ;;  %v11947_v22 = vld [vmem:[#allocation2 + $0x68] ss:$0 sps:$4 sm:$0xff]  }
  0xa8   : > { %1659 = vrot.lane.b32.xlu1 %v1601_v12, %s12436_s5  ;;  %v2200_v42 = vsel %vm1996_vm8, %v2191_v30, %v2199_v35  ;;  %v876_v63 = vshrl.u32 %v11943_v60, 16  ;;  %v879_v0 = vshll.u32 %v11943_v60, 16  ;;  %v886_v4 = vrot.slane %v884_v59, 1  ;;  %v11948_v32 = vld [vmem:[#allocation2 + $0x24] sm:$0xfe]  }
  0xa9   : > { %v2208_v43 = vor.u32 %v2207_v36, %v2204_v31  ;;  %v2216_v44 = vor.u32 %v2215_v38, %v2212_v37  ;;  %2427 = vrot.lane.b32.xlu0 %v2200_v42, %s12435_s4  ;;  %v889_v5 = vrot.slane %v887_v61, 2  ;;  %v6810_v9 = vshrl.u32 %v11944_v1, 16  ;;  %v11949_v38 = vld [vmem:[#allocation2 + $0x2c] ss:$0 sps:$4 sm:$0x33]  }
  0xaa   : > { %v878_v7 = vrot.slane %v876_v63, 1  ;;  %v881_v8 = vrot.slane %v879_v0, 2  ;;  %v6813_v12 = vshll.u32 %v11944_v1, 16  ;;  %v6280_v13 = vsel %vm1562_vm2, %v6278_v51, %v6279_v53 }
  0xab   : > { %v2217_v49 = vsel %vm1996_vm8, %v2208_v43, %v2216_v44  ;;  %v890_v14 = vor.u32 %v889_v5, %v886_v4  ;;  %v6818_v16 = vshrl.u32 %v11945_v6, 16  ;;  %v6821_v17 = vshll.u32 %v11945_v6, 16  ;;  %v305_v43 = vld [vmem:[%s12664_s30 + $0x48] sm:$0xf]  ;;  %v11954_v5 = vld [vmem:[#allocation2 + $0x18] sm:$0xfe]  }
  0xac   : > { %2429 = vrot.lane.b32.xlu1 %v2217_v49, %s12435_s4  ;;  %v6283_v19 = vsel %vm1562_vm2, %v6281_v57, %v6282_v58  ;;  %v882_v20 = vor.u32 %v881_v8, %v878_v7  ;;  %v6812_v21 = vrot.slane %v6810_v9, 3  ;;  %v6815_v23 = vrot.slane %v6813_v12, 4  ;;  %v306_v49 = vld [vmem:[%s12664_s30 + $0x4c] sm:$0xf] }
  0xad   : > { %4030 = vrot.lane.b32.xlu0 %v3969_v50, %s12436_s5  ;;  %v6820_v24 = vrot.slane %v6818_v16, 3  ;;  %v6823_v25 = vrot.slane %v6821_v17, 4  ;;  %v6827_v26 = vshrl.u32 %v11946_v18, 16  ;;  %v6830_v27 = vshll.u32 %v11946_v18, 16  ;;  %v307_v50 = vld [vmem:[%s12664_s30 + $0x50] sm:$0xf] }
  0xae   : > { %v891_v28 = vsel %vm840_vm11, %v882_v20, %v890_v14  ;;  %v6816_v29 = vor.u32 %v6815_v23, %v6812_v21  ;;  %v6835_v30 = vshrl.u32 %v11947_v22, 16  ;;  %v6838_v31 = vshll.u32 %v11947_v22, 16  ;;  %v11955_v8 = vld [vmem:[#allocation2 + $0x20] ss:$0 sps:$4 sm:$0x11]  }
  0xaf   : > { %1276 = vst.msk [vmem:[#allocation3 + $0x10] sm:$0xff] %vm1273_vm10, %v891_v28  ;;  %v6824_v35 = vor.u32 %v6823_v25, %v6820_v24  ;;  %v6829_v36 = vrot.slane %v6827_v26, 3  ;;  %v6832_v37 = vrot.slane %v6830_v27, 4  ;;  %v893_v41 = vshrl.u32 %v11948_v32, 16  ;;  %v11961_v18 = vld [vmem:[#allocation2 + $0xc] sm:$0xfe]  }
  0xb0   : > { %4032 = vrot.lane.b32.xlu1 %v3972_v56, %s12436_s5  ;;  %v6837_v39 = vrot.slane %v6835_v30, 3  ;;  %v6840_v40 = vrot.slane %v6838_v31, 4  ;;  %v896_v42 = vshll.u32 %v11948_v32, 16  ;;  %v901_v47 = vshrl.u32 %v11949_v38, 16  ;;  %v308_v56 = vld [vmem:[%s12664_s30 + $0x54] sm:$0xf] }
  0xb1   : > { %v12871_v45 = vpop.permute.xlu1 %4449  ;;  %4463 = vrot.lane.b32.xlu0 %v4402_v62, %s12435_s4  ;;  %v6825_v44 = vsel %vm6689_vm9, %v6816_v29, %v6824_v35  ;;  %v6833_v46 = vor.u32 %v6832_v37, %v6829_v36  ;;  %v904_v48 = vshll.u32 %v11949_v38, 16  ;;  %v399_v54 = vrot.slane %v305_v43, 6  ;;  %v11960_v14 = vld [vmem:[#allocation2 + $0x14] ss:$0 sps:$4 sm:$0x33]  }
  0xb2   : > { %v12861_v11 = vpop.permute.xlu0 %1639  ;;  %v6841_v52 = vor.u32 %v6840_v40, %v6837_v39  ;;  %v898_v53 = vrot.slane %v896_v42, 2  ;;  %v903_v57 = vrot.slane %v901_v47, 1  ;;  %v401_v60 = vrot.slane %v306_v49, 6  ;;  %v11963_v43 = vld [vmem:[#allocation2 + $0x8c] ss:$0 sps:$4 sm:$0x33]  }
  0xb3   : > { %1710 = vst.msk [vmem:[#allocation3 + $0x10] sm:$0xff] %vm1707_vm12, %v12861_v11  ;;  %v895_v11 = vrot.slane %v893_v41, 1  ;;  %v906_v58 = vrot.slane %v904_v48, 2  ;;  %v404_v59 = vrot.slane %v307_v50, 6  ;;  %v400_v63 = vrot.slane %v399_v54, 4 }
  0xb4   : > { %4465 = vrot.lane.b32.xlu1 %v4405_v3, %s12435_s4  ;;  %v6842_v61 = vsel %vm6689_vm9, %v6833_v46, %v6841_v52  ;;  %513 = vst.msk [vmem:[#allocation2 + $0x9c] sm:$0xc] %vm483_vm5, %v399_v54  ;;  %v406_v0 = vrot.slane %v308_v56, 6  ;;  %v403_v3 = vrot.slane %v401_v60, 4  ;;  %v3563_v17 = vrot.slane %v11955_v8, 1 }
  0xb5   : > { %v12882_v2 = vpop.permute.xlu1 %4014  ;;  %6343 = vrot.lane.b32.xlu0 %v6280_v13, %s12436_s5  ;;  %v899_v62 = vor.u32 %v898_v53, %v895_v11  ;;  %v907_v1 = vor.u32 %v906_v58, %v903_v57  ;;  %v405_v4 = vrot.slane %v404_v59, 4  ;;  %516 = vst.msk [vmem:[#allocation2 + $0xa8] sm:$0xc] %vm483_vm5, %v404_v59  ;;  %v402_v6 = vsel %vm12669_vm7, %v400_v63, %v401_v60  ;;  %v11964_v59 = vld [vmem:[#allocation2 + $0x90] sm:$0xfc]  }
  0xb6   : > { %v12868_v34 = vpop.permute.xlu0 %1641  ;;  %v408_v7 = vrot.slane %v406_v0, 4  ;;  %514 = vst.msk [vmem:[#allocation2 + $0xa0] sm:$0xf] %vm214_vm0, %v402_v6  ;;  %v3562_v13 = vrot.slane %v11954_v5, 1  ;;  %v870_v20 = vshll.u32 %v11960_v14, 16  ;;  %v859_v23 = vshrl.u32 %v11961_v18, 16 }
  0xb7   : > { %v908_v9 = vsel %vm840_vm11, %v899_v62, %v907_v1  ;;  %515 = vst.msk [vmem:[#allocation2 + $0xa4] sm:$0x3] %vm487_vm6, %v403_v3  ;;  %v407_v12 = vsel %vm12669_vm7, %v405_v4, %v406_v0  ;;  %v862_v22 = vshll.u32 %v11961_v18, 16  ;;  %v11965_v1 = vld [vmem:[#allocation2 + $0x98] ss:$0 sps:$4 sm:$0x33]  }
  0xb8   : > { %6345 = vrot.lane.b32.xlu1 %v6283_v19, %s12436_s5  ;;  %1277 = vst.msk [vmem:[#allocation3 + $0x18] sm:$0xff] %vm1273_vm10, %v908_v9  ;;  %v867_v19 = vshrl.u32 %v11960_v14, 16  ;;  %v3564_v21 = vsel %vm3555_vm14, %v3562_v13, %v3563_v17  ;;  %v872_v25 = vrot.slane %v870_v20, 2  ;;  %v861_v26 = vrot.slane %v859_v23, 1  ;;  %v11966_v18 = vld [vmem:[#allocation2 + $0x24] sm:$0xfe]  }
  0xb9   : > { %7112 = vrot.lane.b32.xlu0 %v6825_v44, %s12435_s4  ;;  %517 = vst.msk [vmem:[#allocation2 + $0xac] sm:$0xf] %vm214_vm0, %v407_v12  ;;  %v864_v27 = vrot.slane %v862_v22, 2  ;;  %v3974_v6 = vrot.slane %v11963_v43, 2  ;;  %v3976_v9 = vrot.slane %v11964_v59, 2  ;;  %v3977_v14 = vrot.slane %v11965_v1, 2 }
  0xba   : > { %v12877_v55 = vpop.permute.xlu0 %4016  ;;  %v2410_v33 = vpop.permute.xlu1 %2409  ;;  %518 = vst.msk [vmem:[#allocation2 + $0xb0] sm:$0x3] %vm487_vm6, %v408_v7  ;;  %v869_v24 = vrot.slane %v867_v19, 1  ;;  %v11967_v19 = vld [vmem:[#allocation2 + $0x2c] ss:$0 sps:$4 sm:$0x11]  }
  0xbb   : > { %2480 = vst.msk [vmem:[#allocation3 + $0x10] sm:$0xff] %vm2477_vm13, %v2410_v33  ;;  %v865_v30 = vor.u32 %v864_v27, %v861_v26  ;;  %v3565_v22 = vrot.slane %v11966_v18, 1  ;;  %v11969_v26 = vld [vmem:[#allocation2 + $0x8c] ss:$0 sps:$4 sm:$0x77]   ;;  %v3978_v27 = vsel %vm1562_vm2, %v3976_v9, %v3977_v14 }
  0xbc   : > { %7114 = vrot.lane.b32.xlu1 %v6842_v61, %s12435_s4  ;;  %1711 = vst.msk [vmem:[#allocation3 + $0x18] sm:$0xff] %vm1707_vm12, %v12868_v34  ;;  %v873_v34 = vor.u32 %v872_v25, %v869_v24  ;;  %v3566_v24 = vrot.slane %v11967_v19, 1  ;;  %v11968_v25 = vld [vmem:[#allocation2 + $0x84] sm:$0xf8]   ;;  %v11976_v59 = vld [vmem:[#allocation2 + $0x6c] sm:$0xfc]  }
  0xbd   : > { %3654 = vst.msk [vmem:[#allocation3 + $0x10] sm:$0xff] %vm1273_vm10, %v3564_v21  ;;  %v11950_v29 = vld [vmem:[#allocation2 + $0x9c] sm:$0xfc]   ;;  %v11981_v19 = vld [vmem:[#allocation2 + $0x50] ss:$0 sps:$4 sm:$0x33]  }
  0xbe   : > { %v12888_v15 = vpop.permute.xlu0 %1637  ;;  %4086 = vst.msk [vmem:[#allocation3 + $0x10] sm:$0xff] %vm1707_vm12, %v12877_v55  ;;  %v11951_v31 = vld [vmem:[#allocation2 + $0xa4] ss:$0 sps:$4 sm:$0x33]   ;;  %v1602_v32 = vrot.slane %v11950_v29, 2  ;;  %v2408_v35 = vpop.permute.xlu1 %2407  ;;  %v874_v36 = vsel %vm840_vm11, %v865_v30, %v873_v34  ;;  %v3567_v34 = vsel %vm3555_vm14, %v3565_v22, %v3566_v24  ;;  %v4406_v29 = vrot.slane %v11968_v25, 3 }
  0xbf   : > { %4519 = vst.msk [vmem:[#allocation3 + $0x10] sm:$0xff] %vm2477_vm13, %v12871_v45  ;;  %v1603_v37 = vrot.slane %v11951_v31, 2  ;;  %v11956_v39 = vld [vmem:[#allocation2 + $0x9c] sm:$0xfc]   ;;  %v11962_v45 = vld [vmem:[#allocation2 + $0x84] sm:$0xfc]  }
  0xc0   : > { %v11952_v33 = vld [vmem:[#allocation2 + $0xa8] sm:$0xfc]   ;;  %1275 = vst.msk [vmem:[#allocation3 + $0x8] sm:$0xff] %vm1273_vm10, %v874_v36  ;;  %v11957_v42 = vld [vmem:[#allocation2 + $0xa4] ss:$0 sps:$4 sm:$0x77]  }
  0xc1   : > { %v11953_v38 = vld [vmem:[#allocation2 + $0xb0] ss:$0 sps:$4 sm:$0x33]   ;;  %v1605_v55 = vrot.slane %v11952_v33, 2  ;;  %1709 = vst.msk [vmem:[#allocation3 + $0x8] sm:$0xff] %vm1707_vm12, %v12888_v15  ;;  %v1604_v40 = vsel %vm1562_vm2, %v1602_v32, %v1603_v37  ;;  %v2219_v46 = vshrl.u32 %v11956_v39, 16 }
  0xc2   : > { %v2412_v51 = vpop.permute.xlu0 %2411  ;;  %v1606_v41 = vrot.slane %v11953_v38, 2  ;;  %2479 = vst.msk [vmem:[#allocation3 + $0x8] sm:$0xff] %vm2477_vm13, %v2408_v35  ;;  %1661 = vrot.lane.b32.xlu0 %v1604_v40, %s12436_s5  ;;  %v2222_v47 = vshll.u32 %v11956_v39, 16  ;;  %v11958_v48 = vld [vmem:[#allocation2 + $0xa8] sm:$0xfc]   ;;  %v2227_v50 = vshrl.u32 %v11957_v42, 16  ;;  %v4019_v17 = vpop.permute.xlu1 %4018 }
  0xc3   : > { %2481 = vst.msk [vmem:[#allocation3 + $0x18] sm:$0xff] %vm2477_vm13, %v2412_v51  ;;  %v2230_v51 = vshll.u32 %v11957_v42, 16  ;;  %v11959_v15 = vld [vmem:[#allocation2 + $0xb0] ss:$0 sps:$4 sm:$0x77]   ;;  %v2221_v52 = vrot.slane %v2219_v46, 2 }
  0xc4   : > { %v1607_v49 = vsel %vm1562_vm2, %v1605_v55, %v1606_v41  ;;  %v2224_v11 = vrot.slane %v2222_v47, 3  ;;  %v2236_v53 = vshrl.u32 %v11958_v48, 16  ;;  %v2239_v54 = vshll.u32 %v11958_v48, 16  ;;  %v11970_v30 = vld [vmem:[#allocation2 + $0x90] sm:$0xf8]  }
  0xc5   : > { %1663 = vrot.lane.b32.xlu1 %v1607_v49, %s12436_s5  ;;  %v2229_v56 = vrot.slane %v2227_v50, 2  ;;  %v2232_v57 = vrot.slane %v2230_v51, 3  ;;  %v2244_v58 = vshrl.u32 %v11959_v15, 16  ;;  %v2247_v60 = vshll.u32 %v11959_v15, 16  ;;  %v11973_v39 = vld [vmem:[#allocation2 + $0x3c] sm:$0xfe]  }
  0xc6   : > { %v12916_v16 = vpop.permute.xlu0 %1645  ;;  %v2225_v61 = vor.u32 %v2224_v11, %v2221_v52  ;;  %v2238_v62 = vrot.slane %v2236_v53, 2  ;;  %v2241_v63 = vrot.slane %v2239_v54, 3  ;;  %v3973_v0 = vrot.slane %v11962_v45, 2  ;;  %v11971_v33 = vld [vmem:[#allocation2 + $0x98] ss:$0 sps:$4 sm:$0x77]  }
  0xc7   : > { %v2233_v3 = vor.u32 %v2232_v57, %v2229_v56  ;;  %v2246_v4 = vrot.slane %v2244_v58, 2  ;;  %v2249_v5 = vrot.slane %v2247_v60, 3  ;;  %v4407_v32 = vrot.slane %v11969_v26, 3  ;;  %v11972_v36 = vld [vmem:[#allocation2 + $0x44] ss:$0 sps:$4 sm:$0x33]  }
  0xc8   : > { %v2242_v8 = vor.u32 %v2241_v63, %v2238_v62  ;;  %v3975_v23 = vsel %vm1562_vm2, %v3973_v0, %v3974_v6  ;;  %v4409_v35 = vrot.slane %v11970_v30, 3  ;;  %v4410_v55 = vrot.slane %v11971_v33, 3  ;;  %v11974_v46 = vld [vmem:[#allocation2 + $0x38] ss:$0 sps:$4 sm:$0x33]  }
  0xc9   : > { %v2234_v12 = vsel %vm1996_vm8, %v2225_v61, %v2233_v3  ;;  %v2250_v13 = vor.u32 %v2249_v5, %v2246_v4  ;;  %v1644_v37 = vpop.permute.xlu1 %1643  ;;  %v4408_v38 = vsel %vm4372_vm1, %v4406_v29, %v4407_v32  ;;  %v935_v45 = vshrl.u32 %v11972_v36, 16  ;;  %v11975_v49 = vld [vmem:[#allocation2 + $0x30] sm:$0xfe]   ;;  %v11978_v6 = vld [vmem:[#allocation2 + $0x78] sm:$0xfc]  }
  0xca   : > { %v12930_v28 = vpop.permute.xlu0 %2415  ;;  %v12946_v20 = vld [vmem:[#allocation3 + $0x18] sm:$0xff]  ;;  %2431 = vrot.lane.b32.xlu0 %v2234_v12, %s12435_s4  ;;  %v938_v40 = vshll.u32 %v11972_v36, 16  ;;  %v4411_v41 = vsel %vm4372_vm1, %v4409_v35, %v4410_v55  ;;  %v927_v42 = vshrl.u32 %v11973_v39, 16  ;;  %v930_v43 = vshll.u32 %v11973_v39, 16  ;;  %v11982_v22 = vld [vmem:[#allocation2 + $0x6c] sm:$0xf8]  }
  0xcb   : > { %v2251_v21 = vsel %vm1996_vm8, %v2242_v8, %v2250_v13  ;;  %3655 = vst.msk [vmem:[#allocation3 + $0x18] sm:$0xff] %vm1273_vm10, %v3567_v34  ;;  %v937_v47 = vrot.slane %v935_v45, 1  ;;  %v918_v15 = vshrl.u32 %v11974_v46, 16  ;;  %v921_v52 = vshll.u32 %v11974_v46, 16  ;;  %v11985_v55 = vld [vmem:[#allocation2 + $0x80] ss:$0 sps:$4 sm:$0xff]  }
  0xcc   : > { %2433 = vrot.lane.b32.xlu1 %v2251_v21, %s12435_s4  ;;  %4087 = vst.msk [vmem:[#allocation3 + $0x18] sm:$0xff] %vm1707_vm12, %v4019_v17  ;;  %v940_v48 = vrot.slane %v938_v40, 2  ;;  %v929_v50 = vrot.slane %v927_v42, 1  ;;  %v932_v51 = vrot.slane %v930_v43, 2  ;;  %v910_v53 = vshrl.u32 %v11975_v49, 16 }
  0xcd   : > { %v913_v54 = vshll.u32 %v11975_v49, 16  ;;  %v12963_v56 = vpop.permute.xlu1 %1647  ;;  %v920_v58 = vrot.slane %v918_v15, 1  ;;  %v923_v60 = vrot.slane %v921_v52, 2  ;;  %v11977_v63 = vld [vmem:[#allocation2 + $0x74] ss:$0 sps:$4 sm:$0x33]   ;;  %v2550_v43 = vlaneseq }
  0xce   : > { %4034 = vrot.lane.b32.xlu0 %v3975_v23, %s12436_s5  ;;  %v941_v11 = vor.u32 %v940_v48, %v937_v47  ;;  %v933_v57 = vor.u32 %v932_v51, %v929_v50  ;;  %v912_v61 = vrot.slane %v910_v53, 1  ;;  %v6284_v3 = vrot.slane %v11976_v59, 2  ;;  %v11979_v8 = vld [vmem:[#allocation2 + $0x80] ss:$0 sps:$4 sm:$0x33]   ;;  %v12982_v51 = vld [vmem:[#allocation2 + $0xc] sm:$0xff]  }
  0xcf   : > { %v915_v62 = vrot.slane %v913_v54, 2  ;;  %v924_v1 = vor.u32 %v923_v60, %v920_v58  ;;  %v6285_v5 = vrot.slane %v11977_v63, 2  ;;  %v6287_v13 = vrot.slane %v11978_v6, 2  ;;  %v11980_v17 = vld [vmem:[#allocation2 + $0x48] sm:$0xfe]  }
  0xd0   : > { %4036 = vrot.lane.b32.xlu1 %v3978_v27, %s12436_s5  ;;  %v942_v0 = vsel %vm840_vm11, %v933_v57, %v941_v11  ;;  %v6288_v14 = vrot.slane %v11979_v8, 2  ;;  %v944_v21 = vshrl.u32 %v11980_v17, 16  ;;  %v947_v23 = vshll.u32 %v11980_v17, 16  ;;  %v310_v42 = vld [vmem:[%s12664_s30 + $0x5c] sm:$0xf] }
  0xd1   : > { %1279 = vst.msk [vmem:[#allocation3 + $0x28] sm:$0xff] %vm1273_vm10, %v942_v0  ;;  %v916_v4 = vor.u32 %v915_v62, %v912_v61  ;;  %v6286_v12 = vsel %vm1562_vm2, %v6284_v3, %v6285_v5  ;;  %v2414_v18 = vpop.permute.xlu1 %2413  ;;  %v952_v24 = vshrl.u32 %v11981_v19, 16  ;;  %v955_v25 = vshll.u32 %v11981_v19, 16  ;;  %v311_v50 = vld [vmem:[%s12664_s30 + $0x60] sm:$0xf] }
  0xd2   : > { %4467 = vrot.lane.b32.xlu0 %v4408_v38, %s12435_s4  ;;  %1713 = vst.msk [vmem:[#allocation3 + $0x28] sm:$0xff] %vm1707_vm12, %v12916_v16  ;;  %v6289_v16 = vsel %vm1562_vm2, %v6287_v13, %v6288_v14  ;;  %v946_v26 = vrot.slane %v944_v21, 1  ;;  %v949_v27 = vrot.slane %v947_v23, 2  ;;  %v6844_v34 = vshrl.u32 %v11982_v22, 16  ;;  %v11984_v38 = vld [vmem:[#allocation2 + $0x78] sm:$0xf8]  }
  0xd3   : > { %v12938_v44 = vpop.permute.xlu0 %2417  ;;  %v925_v9 = vsel %vm840_vm11, %v916_v4, %v924_v1  ;;  %2483 = vst.msk [vmem:[#allocation3 + $0x28] sm:$0xff] %vm2477_vm13, %v12930_v28  ;;  %v11983_v28 = vld [vmem:[#allocation2 + $0x74] ss:$0 sps:$4 sm:$0xff]   ;;  %v6847_v29 = vshll.u32 %v11982_v22, 16  ;;  %v954_v30 = vrot.slane %v952_v24, 1  ;;  %v6861_v47 = vshrl.u32 %v11984_v38, 16 }
  0xd4   : > { %4469 = vrot.lane.b32.xlu1 %v4411_v41, %s12435_s4  ;;  %1278 = vst.msk [vmem:[#allocation3 + $0x20] sm:$0xff] %vm1273_vm10, %v925_v9  ;;  %v6852_v32 = vshrl.u32 %v11983_v28, 16  ;;  %v6855_v33 = vshll.u32 %v11983_v28, 16  ;;  %v950_v35 = vor.u32 %v949_v27, %v946_v26  ;;  %v6846_v36 = vrot.slane %v6844_v34, 3  ;;  %v309_v41 = vld [vmem:[%s12664_s30 + $0x58] sm:$0xf] }
  0xd5   : > { %1712 = vst.msk [vmem:[#allocation3 + $0x20] sm:$0xff] %vm1707_vm12, %v1644_v37  ;;  %v6849_v37 = vrot.slane %v6847_v29, 4  ;;  %v6864_v48 = vshll.u32 %v11984_v38, 16  ;;  %v6869_v49 = vshrl.u32 %v11985_v55, 16  ;;  %v6872_v11 = vshll.u32 %v11985_v55, 16  ;;  %v4021_v26 = vpop.permute.xlu1 %4020 }
  0xd6   : > { %6347 = vrot.lane.b32.xlu0 %v6286_v12, %s12436_s5  ;;  %2482 = vst.msk [vmem:[#allocation3 + $0x20] sm:$0xff] %vm2477_vm13, %v2414_v18  ;;  %v6854_v45 = vrot.slane %v6852_v32, 3  ;;  %v6857_v40 = vrot.slane %v6855_v33, 4  ;;  %v409_v53 = vrot.slane %v309_v41, 6  ;;  %v312_v54 = vld [vmem:[%s12664_s30 + $0x64] sm:$0xf] }
  0xd7   : > { %v12943_v7 = vpop.permute.xlu0 %4447  ;;  %v6850_v46 = vor.u32 %v6849_v37, %v6846_v36  ;;  %v6863_v57 = vrot.slane %v6861_v47, 3  ;;  %v6866_v58 = vrot.slane %v6864_v48, 4  ;;  %v6871_v60 = vrot.slane %v6869_v49, 3  ;;  %v11990_v6 = vld [vmem:[#allocation2 + $0xc] sm:$0xfe]   ;;  %v13023_v33 = vld [vmem:[#allocation2 + $0x18] sm:$0xff]  }
  0xd8   : > { %6349 = vrot.lane.b32.xlu1 %v6289_v16, %s12436_s5  ;;  %v6858_v52 = vor.u32 %v6857_v40, %v6854_v45  ;;  %v411_v59 = vrot.slane %v310_v42, 6  ;;  %v6874_v62 = vrot.slane %v6872_v11, 4  ;;  %v410_v63 = vrot.slane %v409_v53, 4  ;;  %519 = vst.msk [vmem:[#allocation2 + $0xb4] sm:$0xc] %vm483_vm5, %v409_v53 }
  0xd9   : > { %v414_v0 = vrot.slane %v311_v50, 6  ;;  %v6867_v3 = vor.u32 %v6866_v58, %v6863_v57  ;;  %v416_v5 = vrot.slane %v312_v54, 6  ;;  %v2551_v8 = vshrl.u32 %v2550_v43, 7  ;;  %v11991_v13 = vld [vmem:[#allocation2 + $0x14] ss:$0 sps:$4 sm:$0x11]   ;;  %v4454_v41 = vpop.permute.xlu1 %4453 }
  0xda   : > { %v6859_v61 = vsel %vm6689_vm9, %v6850_v46, %v6858_v52  ;;  %v413_v4 = vrot.slane %v411_v59, 4  ;;  %v412_v9 = vsel %vm12669_vm7, %v410_v63, %v411_v59  ;;  %v5672_v14 = vshll.u32 %v12982_v51, 16  ;;  %v10162_v18 = vld [vmem:[%s14655_s1 + $0x6] sm:$0x3]  ;;  %v10163_v19 = vld [vmem:[%s14655_s1 + $0x8] sm:$0x3] }
  0xdb   : > { %v4452_v31 = vpop.permute.xlu0 %4451  ;;  %7116 = vrot.lane.b32.xlu0 %v6859_v61, %s12435_s4  ;;  %v415_v12 = vrot.slane %v414_v0, 4  ;;  %522 = vst.msk [vmem:[#allocation2 + $0xc0] sm:$0xc] %vm483_vm5, %v414_v0  ;;  %v3559_v17 = vrot.slane %v11990_v6, 1  ;;  %v3560_v23 = vrot.slane %v11991_v13, 1  ;;  %v2546_v34 = vcombine.low %v10162_v18, %v10163_v19 }
  0xdc   : > { %4520 = vst.msk [vmem:[#allocation3 + $0x18] sm:$0xff] %vm2477_vm13, %v4452_v31  ;;  %v957_v31 = vrot.slane %v955_v25, 2  ;;  %v12437_v22 = vmov 1983009808   ;;  %v11996_v25 = vld [vmem:[#allocation2 + $0x30] sm:$0xfe]  }
  0xdd   : > { %v12991_v1 = vld [vmem:[#allocation3 + $0x20] sm:$0xff]  ;;  %520 = vst.msk [vmem:[#allocation2 + $0xb8] sm:$0xf] %vm214_vm0, %v412_v9  ;;  %v417_v21 = vsel %vm12669_vm7, %v415_v12, %v416_v5  ;;  %v2548_v24 = vunpack.c.l.s4 %v12437_v22  ;;  %v3561_v28 = vsel %vm3555_vm14, %v3559_v17, %v3560_v23  ;;  %v11997_v27 = vld [vmem:[#allocation2 + $0x38] ss:$0 sps:$4 sm:$0x11]  }
  0xde   : > { %v958_v39 = vor.u32 %v957_v31, %v954_v30  ;;  %10996 = vmatprep.mubr.msk.bf16.mxu1 %vm2562_vm15, %v12991_v1  ;;  %521 = vst.msk [vmem:[#allocation2 + $0xbc] sm:$0x3] %vm487_vm6, %v413_v4  ;;  %v3568_v30 = vrot.slane %v11996_v25, 1  ;;  %v3569_v32 = vrot.slane %v11997_v27, 1  ;;  %v5670_v36 = vshrl.u32 %v12982_v51, 16 }
  0xdf   : > { %523 = vst.msk [vmem:[#allocation2 + $0xc4] sm:$0xf] %vm214_vm0, %v417_v21  ;;  %v2549_v29 = vunpack.c.0.s8 %v2548_v24  ;;  %v10165_v31 = vld.sshfl [vmem:[%s14655_s1 + $0xa] sm:$0x3 pattern:$0x76325410]  ;;  %v6332_v19 = vpop.permute.xlu0 %6331 }
  0xe0   : > { %v959_v15 = vsel %vm840_vm11, %v950_v35, %v958_v39  ;;  %3653 = vst.msk [vmem:[#allocation3 + $0x8] sm:$0xff] %vm1273_vm10, %v3561_v28  ;;  %v13030_v37 = vrot.slane %v5672_v14, 1  ;;  %v3570_v55 = vsel %vm3555_vm14, %v3568_v30, %v3569_v32  ;;  %v5682_v45 = vshrl.u32 %v13023_v33, 16  ;;  %v11998_v49 = vld [vmem:[#allocation2 + $0x9c] sm:$0xfc]  }
  0xe1   : > { %1280 = vst.msk [vmem:[#allocation3 + $0x30] sm:$0xff] %vm1273_vm10, %v959_v15  ;;  %v13027_v35 = vsub.s32 %v2549_v29, %v2551_v8  ;;  %3656 = vst.msk [vmem:[#allocation3 + $0x20] sm:$0xff] %vm1273_vm10, %v3570_v55  ;;  %v11999_v17 = vld [vmem:[#allocation2 + $0xa4] ss:$0 sps:$4 sm:$0x33]   ;;  %v3979_v18 = vrot.slane %v11998_v49, 2 }
  0xe2   : > { %1714 = vst.msk [vmem:[#allocation3 + $0x30] sm:$0xff] %vm1707_vm12, %v12963_v56  ;;  %v6875_v56 = vor.u32 %v6874_v62, %v6871_v60  ;;  %4085 = vst.msk [vmem:[#allocation3 + $0x8] sm:$0xff] %vm1707_vm12, %v12882_v2  ;;  %v13043_v60 = vld [vmem:[#allocation3 + $0x28] sm:$0xff]  ;;  %v3980_v25 = vrot.slane %v11999_v17, 2 }
  0xe3   : > { %2484 = vst.msk [vmem:[#allocation3 + $0x30] sm:$0xff] %vm2477_vm13, %v12938_v44  ;;  %v418_v44 = vrot.slane %v416_v5, 4  ;;  %4518 = vst.msk [vmem:[#allocation3 + $0x8] sm:$0xff] %vm2477_vm13, %v12943_v7  ;;  %v2553_v39 = vrot.slane %v2546_v34, %v13027_v35  ;;  %v5684_v7 = vshll.u32 %v13023_v33, 16  ;;  %v12000_v22 = vld [vmem:[#allocation2 + $0xa8] sm:$0xfc]  }
  0xe4   : > { %v6876_v16 = vsel %vm6689_vm9, %v6867_v3, %v6875_v56  ;;  %v11986_v38 = vld [vmem:[#allocation2 + $0xb4] sm:$0xfc]   ;;  %4088 = vst.msk [vmem:[#allocation3 + $0x20] sm:$0xff] %vm1707_vm12, %v4021_v26  ;;  %v12001_v28 = vld [vmem:[#allocation2 + $0xb0] ss:$0 sps:$4 sm:$0x33]   ;;  %v6334_v26 = vpop.permute.xlu1 %6333  ;;  %v3981_v55 = vsel %vm1562_vm2, %v3979_v18, %v3980_v25 }
  0xe5   : > { %7118 = vrot.lane.b32.xlu1 %v6876_v16, %s12435_s4  ;;  %524 = vst.msk [vmem:[#allocation2 + $0xc8] sm:$0x3] %vm487_vm6, %v418_v44  ;;  %v11987_v2 = vld [vmem:[#allocation2 + $0xbc] ss:$0 sps:$4 sm:$0x33]   ;;  %v1608_v40 = vrot.slane %v11986_v38, 2  ;;  %v2561_v47 = vcombine.low %v2553_v39, %v10165_v31 }
  0xe6   : > { %v1609_v42 = vrot.slane %v11987_v2, 2  ;;  %v11988_v43 = vld [vmem:[#allocation2 + $0xc0] sm:$0xfc]   ;;  %4521 = vst.msk [vmem:[#allocation3 + $0x20] sm:$0xff] %vm2477_vm13, %v4454_v41  ;;  %v11992_v48 = vld [vmem:[#allocation2 + $0xb4] sm:$0xfc]   ;;  %v5675_v2 = vor.u32 %v13030_v37, %v5670_v36  ;;  %v7101_v41 = vpop.permute.xlu0 %7100 }
  0xe7   : > { %v1611_v15 = vrot.slane %v11988_v43, 2  ;;  %11754 = vmatprep.subr.msk.bf16.mxu1 %vm1562_vm2, %v2561_v47  ;;  %v11993_v11 = vld [vmem:[#allocation2 + $0xbc] ss:$0 sps:$4 sm:$0x77]   ;;  %v2613_v53 = vsel %vm1562_vm2, %v2561_v47, 0  ;;  %v2253_v54 = vshrl.u32 %v11992_v48, 16 }
  0xe8   : > { %v1610_v50 = vsel %vm1562_vm2, %v1608_v40, %v1609_v42  ;;  %v2256_v57 = vshll.u32 %v11992_v48, 16  ;;  %v11994_v58 = vld [vmem:[#allocation2 + $0xc0] sm:$0xfc]   ;;  %10995 = vmatpush3.bf16.msra.mxu1 %v2613_v53  ;;  %v2261_v61 = vshrl.u32 %v11993_v11, 16  ;;  %v2264_v62 = vshll.u32 %v11993_v11, 16  ;;  %v7103_v49 = vpop.permute.xlu1 %7102  ;;  %v13071_v33 = vld [vmem:[#allocation3 + $0x10] sm:$0xff] }
  0xe9   : > { %1665 = vrot.lane.b32.xlu0 %v1610_v50, %s12436_s5  ;;  %v2255_v3 = vrot.slane %v2253_v54, 2  ;;  %v2270_v5 = vshrl.u32 %v11994_v58, 16  ;;  %v2273_v6 = vshll.u32 %v11994_v58, 16  ;;  %v3982_v29 = vrot.slane %v12000_v22, 2  ;;  %v12006_v42 = vld [vmem:[#allocation2 + $0x9c] sm:$0xf8]  }
  0xea   : > { %v13046_v0 = vld [vmem:[#allocation3 + $0x30] sm:$0xff]  ;;  %v2258_v4 = vrot.slane %v2256_v57, 3  ;;  %v2263_v8 = vrot.slane %v2261_v61, 2  ;;  %v2266_v56 = vrot.slane %v2264_v62, 3  ;;  %v5686_v30 = vrot.slane %v5684_v7, 1  ;;  %v13068_v11 = vld [vmem:[#allocation2 + $0x24] sm:$0xff]   ;;  %v13075_v57 = vpop.permute.xlu0 %1649 }
  0xeb   : > { %10997 = vmatmul.mubr.msk.bf16.vlgmr.msra.gmra.mrb[0].mxu1 %vm2562_vm15, %v13043_v60  ;;  %v2272_v14 = vrot.slane %v2270_v5, 2  ;;  %v2275_v44 = vrot.slane %v2273_v6, 3  ;;  %v3983_v31 = vrot.slane %v12001_v28, 2  ;;  %v12003_v32 = vld [vmem:[#allocation2 + $0x14] ss:$0 sps:$4 sm:$0x11]  }
  0xec   : > { %v11989_v46 = vld [vmem:[#allocation2 + $0xc8] ss:$0 sps:$4 sm:$0x33]   ;;  %v2259_v13 = vor.u32 %v2258_v4, %v2255_v3  ;;  %11000 = vmatprep.mubr.msk.bf16.mxu1 %vm2562_vm15, %v13046_v0  ;;  %v2267_v16 = vor.u32 %v2266_v56, %v2263_v8  ;;  %v5677_v39 = vshll.u32 %v12003_v32, 16  ;;  %v4412_v50 = vrot.slane %v12006_v42, 3  ;;  %v13081_v62 = vpop.permute.xlu1 %1651 }
  0xed   : > { %v1612_v52 = vrot.slane %v11989_v46, 2  ;;  %v11995_v63 = vld [vmem:[#allocation2 + $0xc8] ss:$0 sps:$4 sm:$0x77]   ;;  %v2276_v24 = vor.u32 %v2275_v44, %v2272_v14  ;;  %v3984_v7 = vsel %vm1562_vm2, %v3982_v29, %v3983_v31  ;;  %v5687_v46 = vor.u32 %v5686_v30, %v5682_v45  ;;  %v12012_v5 = vld [vmem:[#allocation2 + $0x90] sm:$0xfc]  }
  0xee   : > { %v2278_v9 = vshrl.u32 %v11995_v63, 16  ;;  %v2281_v12 = vshll.u32 %v11995_v63, 16  ;;  %v2268_v27 = vsel %vm1996_vm8, %v2259_v13, %v2267_v16  ;;  %v12005_v40 = vld [vmem:[#allocation2 + $0x20] ss:$0 sps:$4 sm:$0x11]   ;;  %v5679_v43 = vrot.slane %v5677_v39, 1  ;;  %v2420_v17 = vpop.permute.xlu0 %2419 }
  0xef   : > { %v1613_v59 = vsel %vm1562_vm2, %v1611_v15, %v1612_v52  ;;  %2435 = vrot.lane.b32.xlu0 %v2268_v27, %s12435_s4  ;;  %v5689_v47 = vshll.u32 %v12005_v40, 16  ;;  %v12007_v48 = vld [vmem:[#allocation2 + $0xa4] ss:$0 sps:$4 sm:$0x77]   ;;  %v12008_v15 = vld [vmem:[#allocation2 + $0xa8] sm:$0xf8]  }
  0xf0   : > { %1667 = vrot.lane.b32.xlu1 %v1613_v59, %s12436_s5  ;;  %v2280_v21 = vrot.slane %v2278_v9, 2  ;;  %v2283_v23 = vrot.slane %v2281_v12, 3  ;;  %v5680_v51 = vsel %vm5656_vm3, %v5675_v2, %v5679_v43  ;;  %v4413_v37 = vrot.slane %v12007_v48, 3  ;;  %v12009_v52 = vld [vmem:[#allocation2 + $0xb0] ss:$0 sps:$4 sm:$0x77]   ;;  %v2422_v25 = vpop.permute.xlu1 %2421 }
  0xf1   : > { %v5691_v36 = vrot.slane %v5689_v47, 1  ;;  %5970 = vst.msk [vmem:[#allocation3 + $0x8] sm:$0xff] %vm1273_vm10, %v5680_v51  ;;  %v4415_v54 = vrot.slane %v12008_v15, 3  ;;  %v4416_v58 = vrot.slane %v12009_v52, 3  ;;  %v12010_v59 = vld [vmem:[#allocation2 + $0x84] sm:$0xfc]  }
  0xf2   : > { %v2284_v34 = vor.u32 %v2283_v23, %v2280_v21  ;;  %6402 = vst.msk [vmem:[#allocation3 + $0x8] sm:$0xff] %vm1707_vm12, %v6332_v19  ;;  %v4414_v53 = vsel %vm4372_vm1, %v4412_v50, %v4413_v37  ;;  %v12011_v61 = vld [vmem:[#allocation2 + $0x8c] ss:$0 sps:$4 sm:$0x33]   ;;  %v6290_v3 = vrot.slane %v12010_v59, 2  ;;  %v5694_v8 = vshrl.u32 %v13068_v11, 16 }
  0xf3   : > { %4038 = vrot.lane.b32.xlu0 %v3981_v55, %s12436_s5  ;;  %v5692_v45 = vsel %vm5656_vm3, %v5687_v46, %v5691_v36  ;;  %7171 = vst.msk [vmem:[#allocation3 + $0x8] sm:$0xff] %vm2477_vm13, %v7101_v41  ;;  %v4417_v63 = vsel %vm4372_vm1, %v4415_v54, %v4416_v58  ;;  %v6291_v4 = vrot.slane %v12011_v61, 2  ;;  %v12013_v6 = vld [vmem:[#allocation2 + $0x98] ss:$0 sps:$4 sm:$0x33]   ;;  %v6293_v9 = vrot.slane %v12012_v5, 2  ;;  %v13102_v46 = vpop.permute.xlu0 %4022 }
  0xf4   : > { %v2285_v38 = vsel %vm1996_vm8, %v2276_v24, %v2284_v34  ;;  %5971 = vst.msk [vmem:[#allocation3 + $0x10] sm:$0xff] %vm1273_vm10, %v5692_v45  ;;  %v12014_v12 = vld [vmem:[#allocation2 + $0x54] sm:$0xfe]   ;;  %v5696_v13 = vshll.u32 %v13068_v11, 16  ;;  %v6294_v14 = vrot.slane %v12013_v6, 2  ;;  %v13106_v15 = vpop.permute.xlu1 %4024 }
  0xf5   : > { %2437 = vrot.lane.b32.xlu1 %v2285_v38, %s12435_s4  ;;  %6403 = vst.msk [vmem:[#allocation3 + $0x10] sm:$0xff] %vm1707_vm12, %v6334_v26  ;;  %v6292_v56 = vsel %vm1562_vm2, %v6290_v3, %v6291_v4  ;;  %v12015_v44 = vld [vmem:[#allocation2 + $0x5c] ss:$0 sps:$4 sm:$0x33]   ;;  %v961_v18 = vshrl.u32 %v12014_v12, 16  ;;  %v964_v19 = vshll.u32 %v12014_v12, 16 }
  0xf6   : > { %7172 = vst.msk [vmem:[#allocation3 + $0x10] sm:$0xff] %vm2477_vm13, %v7103_v49  ;;  %v6295_v16 = vsel %vm1562_vm2, %v6293_v9, %v6294_v14  ;;  %v969_v21 = vshrl.u32 %v12015_v44, 16  ;;  %v972_v23 = vshll.u32 %v12015_v44, 16  ;;  %v12016_v22 = vld [vmem:[#allocation2 + $0x60] sm:$0xfe]  }
  0xf7   : > { %4471 = vrot.lane.b32.xlu0 %v4414_v53, %s12435_s4  ;;  %v10567_v24 = vld [vmem:[%s14655_s1 + $0x24] sm:$0x3]  ;;  %v963_v28 = vrot.slane %v961_v18, 1  ;;  %v966_v26 = vrot.slane %v964_v19, 2  ;;  %v978_v31 = vshrl.u32 %v12016_v22, 16  ;;  %v981_v32 = vshll.u32 %v12016_v22, 16  ;;  %v13115_v44 = vpop.permute.xlu0 %4455 }
  0xf8   : > { %v12017_v27 = vld [vmem:[#allocation2 + $0x68] ss:$0 sps:$4 sm:$0x33]   ;;  %v971_v29 = vrot.slane %v969_v21, 1  ;;  %v974_v30 = vrot.slane %v972_v23, 2  ;;  %v13120_v23 = vld [vmem:[#allocation2 + $0x30] sm:$0xff]  }
  0xf9   : > { %4040 = vrot.lane.b32.xlu1 %v3984_v7, %s12436_s5  ;;  %v10568_v38 = vld [vmem:[%s14655_s1 + $0x26] sm:$0x3]  ;;  %v967_v55 = vor.u32 %v966_v26, %v963_v28  ;;  %v986_v2 = vshrl.u32 %v12017_v27, 16  ;;  %v989_v39 = vshll.u32 %v12017_v27, 16  ;;  %v980_v42 = vrot.slane %v978_v31, 1  ;;  %v4458_v27 = vpop.permute.xlu1 %4457 }
  0xfa   : > { %v7195_v34 = vld [vmem:[#allocation3 + $0x8] sm:$0xff]  ;;  %v10570_v40 = vld.sshfl [vmem:[%s14655_s1 + $0x28] sm:$0x3 pattern:$0x76325410]  ;;  %v7218_v41 = vcombine.low %v10567_v24, %v10568_v38  ;;  %v975_v7 = vor.u32 %v974_v30, %v971_v29  ;;  %v983_v43 = vrot.slane %v981_v32, 2 }
  0xfb   : > { %6351 = vrot.lane.b32.xlu0 %v6292_v56, %s12436_s5  ;;  %11200 = vmatprep.mubr.msk.bf16.mxu0 %vm2562_vm15, %v7195_v34  ;;  %v988_v47 = vrot.slane %v986_v2, 1  ;;  %v991_v48 = vrot.slane %v989_v39, 2  ;;  %v12018_v50 = vld [vmem:[#allocation2 + $0x84] sm:$0xf8]   ;;  %v12019_v37 = vld [vmem:[#allocation2 + $0x8c] ss:$0 sps:$4 sm:$0xff]  }
  0xfc   : > { %v7225_v49 = vrot.slane %v7218_v41, %v13027_v35  ;;  %v976_v51 = vsel %vm840_vm11, %v967_v55, %v975_v7  ;;  %v984_v36 = vor.u32 %v983_v43, %v980_v42  ;;  %v6878_v53 = vshrl.u32 %v12018_v50, 16  ;;  %v12020_v58 = vld [vmem:[#allocation2 + $0x90] sm:$0xf8]   ;;  %v12023_v28 = vld [vmem:[#allocation2 + $0xbc] ss:$0 sps:$4 sm:$0x33]   ;;  %v13134_v7 = vpop.permute.xlu0 %6335 }
  0xfd   : > { %4473 = vrot.lane.b32.xlu1 %v4417_v63, %s12435_s4  ;;  %1281 = vst.msk [vmem:[#allocation3 + $0x38] sm:$0xff] %vm1273_vm10, %v976_v51  ;;  %v992_v52 = vor.u32 %v991_v48, %v988_v47  ;;  %v6881_v54 = vshll.u32 %v12018_v50, 16  ;;  %v6886_v59 = vshrl.u32 %v12019_v37, 16  ;;  %v6889_v61 = vshll.u32 %v12019_v37, 16  ;;  %v12021_v63 = vld [vmem:[#allocation2 + $0x98] ss:$0 sps:$4 sm:$0xff]   ;;  %v13140_v48 = vpop.permute.xlu1 %6337 }
  0xfe   : > { %v7233_v45 = vcombine.low %v7225_v49, %v10570_v40  ;;  %1715 = vst.msk [vmem:[#allocation3 + $0x38] sm:$0xff] %vm1707_vm12, %v13075_v57  ;;  %v6880_v4 = vrot.slane %v6878_v53, 3  ;;  %v6895_v6 = vshrl.u32 %v12020_v58, 16  ;;  %v6898_v12 = vshll.u32 %v12020_v58, 16  ;;  %v12022_v21 = vld [vmem:[#allocation2 + $0xb4] sm:$0xfc]  }
  0xff   : > { %v993_v3 = vsel %vm840_vm11, %v984_v36, %v992_v52  ;;  %v6883_v5 = vrot.slane %v6881_v54, 4  ;;  %2485 = vst.msk [vmem:[#allocation3 + $0x38] sm:$0xff] %vm2477_vm13, %v2420_v17  ;;  %v6888_v56 = vrot.slane %v6886_v59, 3  ;;  %v6891_v9 = vrot.slane %v6889_v61, 4  ;;  %v7196_v26 = vld [vmem:[#allocation3 + $0x10] sm:$0xff] }
 0x100   : > { %11760 = vmatprep.subr.msk.bf16.mxu0 %vm1562_vm2, %v7233_v45  ;;  %1282 = vst.msk [vmem:[#allocation3 + $0x40] sm:$0xff] %vm1273_vm10, %v993_v3  ;;  %v6903_v14 = vshrl.u32 %v12021_v63, 16  ;;  %v6897_v18 = vrot.slane %v6895_v6, 3  ;;  %v6906_v19 = vshll.u32 %v12021_v63, 16  ;;  %v6900_v22 = vrot.slane %v6898_v12, 4  ;;  %v13152_v63 = vpop.permute.xlu0 %7104 }
 0x101   : > { %6353 = vrot.lane.b32.xlu1 %v6295_v16, %s12436_s5  ;;  %1716 = vst.msk [vmem:[#allocation3 + $0x40] sm:$0xff] %vm1707_vm12, %v13081_v62  ;;  %v6884_v57 = vor.u32 %v6883_v5, %v6880_v4  ;;  %v7283_v16 = vsel %vm1562_vm2, %v7233_v45, 0  ;;  %v6892_v17 = vor.u32 %v6891_v9, %v6888_v56  ;;  %v3985_v29 = vrot.slane %v12022_v21, 2  ;;  %v12024_v32 = vld [vmem:[#allocation2 + $0xc0] sm:$0xfc]   ;;  %v7107_v12 = vpop.permute.xlu1 %7106 }
 0x102   : > { %v6905_v24 = vrot.slane %v6903_v14, 3  ;;  %11199 = vmatpush3.bf16.msra.mxu0 %v7283_v16  ;;  %2486 = vst.msk [vmem:[#allocation3 + $0x40] sm:$0xff] %vm2477_vm13, %v2422_v25  ;;  %v6908_v34 = vrot.slane %v6906_v19, 4  ;;  %v6901_v30 = vor.u32 %v6900_v22, %v6897_v18  ;;  %v3986_v31 = vrot.slane %v12023_v28, 2  ;;  %v12028_v36 = vld [vmem:[#allocation2 + $0x48] sm:$0xfe]  }
 0x103   : > { %v6893_v62 = vsel %vm6689_vm9, %v6884_v57, %v6892_v17  ;;  %v13126_v38 = vrot.slane %v5696_v13, 1  ;;  %v12025_v2 = vld [vmem:[#allocation2 + $0xc8] ss:$0 sps:$4 sm:$0x33]   ;;  %v5708_v25 = vshll.u32 %v13120_v23, 16  ;;  %v3988_v40 = vrot.slane %v12024_v32, 2 }
 0x104   : > { %7120 = vrot.lane.b32.xlu0 %v6893_v62, %s12435_s4  ;;  %v6909_v55 = vor.u32 %v6908_v34, %v6905_v24  ;;  %v3987_v39 = vsel %vm1562_vm2, %v3985_v29, %v3986_v31  ;;  %v3989_v43 = vrot.slane %v12025_v2, 2  ;;  %v12026_v13 = vld [vmem:[#allocation2 + $0x3c] sm:$0xfe]   ;;  %v12027_v47 = vld [vmem:[#allocation2 + $0x44] ss:$0 sps:$4 sm:$0x11]   ;;  %v13168_v24 = vpop.permute.xlu0 %1653 }
 0x105   : > { %11201 = vmatmul.mubr.msk.bf16.vlgmr.msra.gmra.mrb[0].mxu0 %vm2562_vm15, %v7196_v26  ;;  %v3571_v50 = vrot.slane %v12026_v13, 1  ;;  %v3572_v51 = vrot.slane %v12027_v47, 1  ;;  %v12029_v37 = vld [vmem:[#allocation2 + $0x50] ss:$0 sps:$4 sm:$0x11]   ;;  %v3574_v53 = vrot.slane %v12028_v36, 1  ;;  %v13172_v29 = vpop.permute.xlu1 %1655  ;;  %v5699_v31 = vor.u32 %v13126_v38, %v5694_v8 }
 0x106   : > { %v13132_v41 = vld [vmem:[#allocation3 + $0x38] sm:$0xff]  ;;  %v6910_v42 = vsel %vm6689_vm9, %v6901_v30, %v6909_v55  ;;  %v3990_v49 = vsel %vm1562_vm2, %v3988_v40, %v3989_v43  ;;  %v5706_v58 = vshrl.u32 %v13120_v23, 16  ;;  %v3575_v59 = vrot.slane %v12029_v37, 1  ;;  %v12032_v56 = vld [vmem:[#allocation2 + $0xc0] sm:$0xf8]  }
 0x107   : > { %11001 = vmatmul.mubr.msk.bf16.gmra.mrb[4].mxu1 %vm2562_vm15, %v13132_v41  ;;  %7122 = vrot.lane.b32.xlu1 %v6910_v42, %s12435_s4  ;;  %v3573_v45 = vsel %vm3555_vm14, %v3571_v50, %v3572_v51  ;;  %v12030_v54 = vld [vmem:[#allocation2 + $0xb4] sm:$0xf8]   ;;  %v12031_v61 = vld [vmem:[#allocation2 + $0xbc] ss:$0 sps:$4 sm:$0x77]   ;;  %v5710_v4 = vrot.slane %v5708_v25, 1 }
 0x108   : > { %4042 = vrot.lane.b32.xlu0 %v3987_v39, %s12436_s5  ;;  %3657 = vst.msk [vmem:[#allocation3 + $0x28] sm:$0xff] %vm1273_vm10, %v3573_v45  ;;  %v4418_v3 = vrot.slane %v12030_v54, 3  ;;  %v3576_v5 = vsel %vm3555_vm14, %v3574_v53, %v3575_v59  ;;  %v4419_v6 = vrot.slane %v12031_v61, 3  ;;  %v12033_v9 = vld [vmem:[#allocation2 + $0xc8] ss:$0 sps:$4 sm:$0x77]   ;;  %v13185_v43 = vpop.permute.xlu0 %2423 }
 0x109   : > { %v13144_v52 = vld [vmem:[#allocation3 + $0x40] sm:$0xff]  ;;  %4089 = vst.msk [vmem:[#allocation3 + $0x28] sm:$0xff] %vm1707_vm12, %v13102_v46  ;;  %v4421_v46 = vrot.slane %v12032_v56, 3  ;;  %v4422_v57 = vrot.slane %v12033_v9, 3  ;;  %v5711_v55 = vor.u32 %v5710_v4, %v5706_v58  ;;  %v12042_v25 = vld [vmem:[#allocation2 + $0xa8] sm:$0xfc]   ;;  %v13190_v36 = vpop.permute.xlu1 %2425 }
 0x10a   : > { %11004 = vmatprep.mubr.msk.bf16.mxu1 %vm2562_vm15, %v13144_v52  ;;  %4522 = vst.msk [vmem:[#allocation3 + $0x28] sm:$0xff] %vm2477_vm13, %v13115_v44  ;;  %v4420_v14 = vsel %vm4372_vm1, %v4418_v3, %v4419_v6  ;;  %v12034_v18 = vld [vmem:[#allocation2 + $0x9c] sm:$0xfc]   ;;  %v12035_v16 = vld [vmem:[#allocation2 + $0xa4] ss:$0 sps:$4 sm:$0x33]  }
 0x10b   : > { %4044 = vrot.lane.b32.xlu1 %v3990_v49, %s12436_s5  ;;  %3658 = vst.msk [vmem:[#allocation3 + $0x30] sm:$0xff] %vm1273_vm10, %v3576_v5  ;;  %v313_v19 = vld [vmem:[%s12664_s30 + $0x68] sm:$0xf]  ;;  %v314_v21 = vld [vmem:[%s12664_s30 + $0x6c] sm:$0xf]  ;;  %v4423_v44 = vsel %vm4372_vm1, %v4421_v46, %v4422_v57  ;;  %v6296_v17 = vrot.slane %v12034_v18, 2 }
 0x10c   : > { %4090 = vst.msk [vmem:[#allocation3 + $0x30] sm:$0xff] %vm1707_vm12, %v13106_v15  ;;  %4475 = vrot.lane.b32.xlu0 %v4420_v14, %s12435_s4  ;;  %v419_v23 = vrot.slane %v313_v19, 6  ;;  %v421_v22 = vrot.slane %v314_v21, 6  ;;  %v6297_v15 = vrot.slane %v12035_v16, 2  ;;  %v13183_v39 = vld [vmem:[#allocation3 + $0x18] sm:$0xff]  ;;  %v6299_v47 = vrot.slane %v12042_v25, 2 }
 0x10d   : > { %4523 = vst.msk [vmem:[#allocation3 + $0x30] sm:$0xff] %vm2477_vm13, %v4458_v27  ;;  %v12039_v34 = vld [vmem:[#allocation2 + $0x2c] ss:$0 sps:$4 sm:$0x11]   ;;  %v13188_v50 = vld [vmem:[#allocation3 + $0x20] sm:$0xff] }
 0x10e   : > { %v420_v28 = vrot.slane %v419_v23, 4  ;;  %525 = vst.msk [vmem:[#allocation2 + $0xcc] sm:$0xc] %vm483_vm5, %v419_v23  ;;  %v423_v26 = vrot.slane %v421_v22, 4  ;;  %v6298_v27 = vsel %vm1562_vm2, %v6296_v17, %v6297_v15  ;;  %v5701_v32 = vshll.u32 %v12039_v34, 16 }
 0x10f   : > { %4477 = vrot.lane.b32.xlu1 %v4423_v44, %s12435_s4  ;;  %v12041_v30 = vld [vmem:[#allocation2 + $0x38] ss:$0 sps:$4 sm:$0x11]   ;;  %v12043_v42 = vld [vmem:[#allocation2 + $0xb0] ss:$0 sps:$4 sm:$0x33]  }
 0x110   : > { %v422_v62 = vsel %vm12669_vm7, %v420_v28, %v421_v22  ;;  %6355 = vrot.lane.b32.xlu0 %v6298_v27, %s12436_s5  ;;  %527 = vst.msk [vmem:[#allocation2 + $0xd4] sm:$0x3] %vm487_vm6, %v423_v26  ;;  %v5713_v2 = vshll.u32 %v12041_v30, 16  ;;  %v5703_v40 = vrot.slane %v5701_v32, 1  ;;  %v6300_v51 = vrot.slane %v12043_v42, 2 }
 0x111   : > { %526 = vst.msk [vmem:[#allocation2 + $0xd0] sm:$0xf] %vm214_vm0, %v422_v62  ;;  %v12044_v11 = vld [vmem:[#allocation2 + $0x9c] sm:$0xf8]   ;;  %v12045_v38 = vld [vmem:[#allocation2 + $0xa4] ss:$0 sps:$4 sm:$0xff]  }
 0x112   : > { %v5715_v13 = vrot.slane %v5713_v2, 1  ;;  %v5704_v49 = vsel %vm5656_vm3, %v5699_v31, %v5703_v40  ;;  %v6301_v37 = vsel %vm1562_vm2, %v6299_v47, %v6300_v51  ;;  %v6912_v45 = vshrl.u32 %v12044_v11, 16  ;;  %v12048_v14 = vld [vmem:[#allocation2 + $0xa8] sm:$0xf8]  }
 0x113   : > { %5972 = vst.msk [vmem:[#allocation3 + $0x18] sm:$0xff] %vm1273_vm10, %v5704_v49  ;;  %v6915_v53 = vshll.u32 %v12044_v11, 16  ;;  %v6920_v3 = vshrl.u32 %v12045_v38, 16  ;;  %v6923_v5 = vshll.u32 %v12045_v38, 16  ;;  %v6929_v23 = vshrl.u32 %v12048_v14, 16 }
 0x114   : > { %v5716_v8 = vsel %vm5656_vm3, %v5711_v55, %v5715_v13  ;;  %6404 = vst.msk [vmem:[#allocation3 + $0x18] sm:$0xff] %vm1707_vm12, %v13134_v7  ;;  %6357 = vrot.lane.b32.xlu0 %v6301_v37, %s12436_s5  ;;  %v6914_v59 = vrot.slane %v6912_v45, 3  ;;  %v13204_v7 = vpop.permute.xlu0 %4026  ;;  %v6932_v22 = vshll.u32 %v12048_v14, 16  ;;  %v12050_v55 = vld [vmem:[#allocation2 + $0x6c] sm:$0xfe]  }
 0x115   : > { %5973 = vst.msk [vmem:[#allocation3 + $0x20] sm:$0xff] %vm1273_vm10, %v5716_v8  ;;  %v6917_v61 = vrot.slane %v6915_v53, 4  ;;  %v6922_v56 = vrot.slane %v6920_v3, 3  ;;  %v6925_v57 = vrot.slane %v6923_v5, 4  ;;  %v6931_v26 = vrot.slane %v6929_v23, 3 }
 0x116   : > { %6405 = vst.msk [vmem:[#allocation3 + $0x20] sm:$0xff] %vm1707_vm12, %v13140_v48  ;;  %v13206_v48 = vpop.permute.xlu1 %4028  ;;  %v6934_v32 = vrot.slane %v6932_v22, 4  ;;  %v12051_v13 = vld [vmem:[#allocation2 + $0x74] ss:$0 sps:$4 sm:$0x33]   ;;  %v995_v11 = vshrl.u32 %v12050_v55, 16 }
 0x117   : > { %7173 = vst.msk [vmem:[#allocation3 + $0x18] sm:$0xff] %vm2477_vm13, %v13152_v63  ;;  %v12037_v58 = vld [vmem:[#allocation2 + $0xd4] ss:$0 sps:$4 sm:$0x33]   ;;  %7174 = vst.msk [vmem:[#allocation3 + $0x20] sm:$0xff] %vm2477_vm13, %v7107_v12  ;;  %v6918_v46 = vor.u32 %v6917_v61, %v6914_v59  ;;  %v6926_v12 = vor.u32 %v6925_v57, %v6922_v56  ;;  %v998_v8 = vshll.u32 %v12050_v55, 16 }
 0x118   : > { %v12036_v54 = vld [vmem:[#allocation2 + $0xcc] sm:$0xfc]   ;;  %v1615_v6 = vrot.slane %v12037_v58, 2  ;;  %v12047_v18 = vld [vmem:[#allocation2 + $0xd4] ss:$0 sps:$4 sm:$0x77]   ;;  %v13210_v27 = vpop.permute.xlu0 %4459  ;;  %v6935_v38 = vor.u32 %v6934_v32, %v6931_v26 }
 0x119   : > { %v1614_v4 = vrot.slane %v12036_v54, 2  ;;  %v12046_v9 = vld [vmem:[#allocation2 + $0xcc] sm:$0xfc]   ;;  %v2295_v44 = vshrl.u32 %v12047_v18, 16  ;;  %v2298_v17 = vshll.u32 %v12047_v18, 16  ;;  %v6927_v62 = vsel %vm6689_vm9, %v6918_v46, %v6926_v12  ;;  %v13218_v54 = vld [vmem:[#allocation2 + $0x3c] sm:$0xff]  }
 0x11a   : > { %v12049_v63 = vld [vmem:[#allocation2 + $0xb0] ss:$0 sps:$4 sm:$0xff]   ;;  %v2287_v16 = vshrl.u32 %v12046_v9, 16  ;;  %v2290_v21 = vshll.u32 %v12046_v9, 16  ;;  %v13214_v49 = vpop.permute.xlu1 %4461  ;;  %v1003_v45 = vshrl.u32 %v12051_v13, 16  ;;  %v1006_v53 = vshll.u32 %v12051_v13, 16 }
 0x11b   : > { %v1616_v19 = vsel %vm1562_vm2, %v1614_v4, %v1615_v6  ;;  %v6937_v34 = vshrl.u32 %v12049_v63, 16  ;;  %v2297_v30 = vrot.slane %v2295_v44, 2  ;;  %v2300_v31 = vrot.slane %v2298_v17, 3  ;;  %v12052_v3 = vld [vmem:[#allocation2 + $0x78] sm:$0xfe]  }
 0x11c   : > { %1669 = vrot.lane.b32.xlu1 %v1616_v19, %s12436_s5  ;;  %v2289_v15 = vrot.slane %v2287_v16, 2  ;;  %v2292_v28 = vrot.slane %v2290_v21, 3  ;;  %v6940_v42 = vshll.u32 %v12049_v63, 16  ;;  %v997_v59 = vrot.slane %v995_v11, 1  ;;  %v315_v4 = vld [vmem:[%s12664_s30 + $0x70] sm:$0xf]  ;;  %v13223_v46 = vpop.permute.xlu0 %6339 }
 0x11d   : > { %v6939_v40 = vrot.slane %v6937_v34, 3  ;;  %v2301_v51 = vor.u32 %v2300_v31, %v2297_v30  ;;  %v1000_v61 = vrot.slane %v998_v8, 2  ;;  %v1005_v6 = vrot.slane %v1003_v45, 1  ;;  %v12053_v9 = vld [vmem:[#allocation2 + $0x80] ss:$0 sps:$4 sm:$0x33]  }
 0x11e   : > { %v7197_v2 = vld [vmem:[#allocation3 + $0x18] sm:$0xff]  ;;  %v2293_v25 = vor.u32 %v2292_v28, %v2289_v15  ;;  %v7198_v47 = vld [vmem:[#allocation3 + $0x20] sm:$0xff]  ;;  %v6942_v37 = vrot.slane %v6940_v42, 4  ;;  %v1008_v56 = vrot.slane %v1006_v53, 2  ;;  %v424_v14 = vrot.slane %v315_v4, 6  ;;  %v13228_v44 = vpop.permute.xlu1 %6341 }
 0x11f   : > { %11204 = vmatprep.mubr.msk.bf16.mxu0 %vm2562_vm15, %v7197_v2  ;;  %v1001_v57 = vor.u32 %v1000_v61, %v997_v59  ;;  %v1012_v18 = vshrl.u32 %v12052_v3, 16  ;;  %v1015_v63 = vshll.u32 %v12052_v3, 16  ;;  %v316_v19 = vld [vmem:[%s12664_s30 + $0x74] sm:$0xf]  ;;  %v1020_v23 = vshrl.u32 %v12053_v9, 16 }
 0x120   : > { %7124 = vrot.lane.b32.xlu1 %v6927_v62, %s12435_s4  ;;  %11205 = vmatmul.mubr.msk.bf16.gmra.mrb[4].mxu0 %vm2562_vm15, %v7198_v47  ;;  %v2302_v58 = vsel %vm1996_vm8, %v2293_v25, %v2301_v51  ;;  %v6943_v5 = vor.u32 %v6942_v37, %v6939_v40  ;;  %v1009_v21 = vor.u32 %v1008_v56, %v1005_v6  ;;  %v1023_v12 = vshll.u32 %v12053_v9, 16  ;;  %v12056_v26 = vld [vmem:[#allocation2 + $0xb4] sm:$0xfc]   ;;  %v12057_v31 = vld [vmem:[#allocation2 + $0xbc] ss:$0 sps:$4 sm:$0x33]  }
 0x121   : > { %2439 = vrot.lane.b32.xlu0 %v2302_v58, %s12435_s4  ;;  %528 = vst.msk [vmem:[#allocation2 + $0xd8] sm:$0xc] %vm483_vm5, %v424_v14  ;;  %v1014_v17 = vrot.slane %v1012_v18, 1  ;;  %v1017_v22 = vrot.slane %v1015_v63, 2  ;;  %v425_v15 = vrot.slane %v424_v14, 4  ;;  %v426_v28 = vrot.slane %v316_v19, 6 }
 0x122   : > { %v6944_v16 = vsel %vm6689_vm9, %v6935_v38, %v6943_v5  ;;  %v1010_v34 = vsel %vm840_vm11, %v1001_v57, %v1009_v21  ;;  %v1022_v62 = vrot.slane %v1020_v23, 1  ;;  %v1025_v30 = vrot.slane %v1023_v12, 2  ;;  %v317_v42 = vld [vmem:[%s12664_s30 + $0x78] sm:$0xf]  ;;  %v318_v13 = vld [vmem:[%s12664_s30 + $0x7c] sm:$0xf]  ;;  %v13241_v38 = vpop.permute.xlu0 %7108  ;;  %v13251_v3 = vpop.permute.xlu1 %7110 }
 0x123   : > { %v5720_v32 = vshll.u32 %v13218_v54, 16  ;;  %1283 = vst.msk [vmem:[#allocation3 + $0x48] sm:$0xff] %vm1273_vm10, %v1010_v34  ;;  %v1018_v55 = vor.u32 %v1017_v22, %v1014_v17  ;;  %v427_v2 = vsel %vm12669_vm7, %v425_v15, %v426_v28  ;;  %v428_v25 = vrot.slane %v426_v28, 4  ;;  %v12062_v37 = vld [vmem:[#allocation2 + $0x54] sm:$0xfe]   ;;  %v13249_v61 = vld [vmem:[#allocation2 + $0x48] sm:$0xff]  }
 0x124   : > { %7126 = vrot.lane.b32.xlu1 %v6944_v16, %s12435_s4  ;;  %v6302_v40 = vrot.slane %v12056_v26, 2  ;;  %1717 = vst.msk [vmem:[#allocation3 + $0x48] sm:$0xff] %vm1707_vm12, %v13168_v24  ;;  %v1026_v47 = vor.u32 %v1025_v30, %v1022_v62  ;;  %v6303_v51 = vrot.slane %v12057_v31, 2  ;;  %v429_v11 = vrot.slane %v317_v42, 6  ;;  %v12064_v9 = vld [vmem:[#allocation2 + $0x60] sm:$0xfe]  }
 0x125   : > { %529 = vst.msk [vmem:[#allocation2 + $0xdc] sm:$0xf] %vm214_vm0, %v427_v2  ;;  %v431_v8 = vrot.slane %v318_v13, 6  ;;  %v12063_v59 = vld [vmem:[#allocation2 + $0x5c] ss:$0 sps:$4 sm:$0x11]  }
 0x126   : > { %530 = vst.msk [vmem:[#allocation2 + $0xe0] sm:$0x3] %vm487_vm6, %v428_v25  ;;  %v1027_v45 = vsel %vm840_vm11, %v1018_v55, %v1026_v47  ;;  %v6304_v53 = vsel %vm1562_vm2, %v6302_v40, %v6303_v51  ;;  %v430_v58 = vrot.slane %v429_v11, 4  ;;  %v3577_v4 = vrot.slane %v12062_v37, 1  ;;  %v13273_v16 = vpop.permute.xlu1 %1659  ;;  %v13277_v22 = vld [vmem:[#allocation2 + $0x54] sm:$0xff]  }
 0x127   : > { %2487 = vst.msk [vmem:[#allocation3 + $0x48] sm:$0xff] %vm2477_vm13, %v13185_v43  ;;  %v433_v24 = vrot.slane %v431_v8, 4  ;;  %v5718_v43 = vshrl.u32 %v13218_v54, 16  ;;  %v3578_v6 = vrot.slane %v12063_v59, 1  ;;  %v13261_v56 = vrot.slane %v5720_v32, 1 }
 0x128   : > { %531 = vst.msk [vmem:[#allocation2 + $0xe4] sm:$0xc] %vm483_vm5, %v429_v11  ;;  %6359 = vrot.lane.b32.xlu1 %v6304_v53, %s12436_s5  ;;  %v432_v5 = vsel %vm12669_vm7, %v430_v58, %v431_v8  ;;  %v12065_v57 = vld [vmem:[#allocation2 + $0x68] ss:$0 sps:$4 sm:$0x11]   ;;  %v5732_v18 = vshll.u32 %v13249_v61, 16 }
 0x129   : > { %1284 = vst.msk [vmem:[#allocation3 + $0x50] sm:$0xff] %vm1273_vm10, %v1027_v45  ;;  %v3579_v14 = vsel %vm3555_vm14, %v3577_v4, %v3578_v6  ;;  %v3580_v19 = vrot.slane %v12064_v9, 1  ;;  %v3581_v21 = vrot.slane %v12065_v57, 1  ;;  %v12066_v13 = vld [vmem:[#allocation2 + $0xc0] sm:$0xfc]   ;;  %v5730_v47 = vshrl.u32 %v13249_v61, 16 }
 0x12a   : > { %1718 = vst.msk [vmem:[#allocation3 + $0x50] sm:$0xff] %vm1707_vm12, %v13172_v29  ;;  %v13268_v29 = vpop.permute.xlu0 %1657  ;;  %v13298_v51 = vpop.permute.xlu1 %2429  ;;  %v12067_v37 = vld [vmem:[#allocation2 + $0xc8] ss:$0 sps:$4 sm:$0x33]   ;;  %v6305_v58 = vrot.slane %v12066_v13, 2 }
 0x12b   : > { %533 = vst.msk [vmem:[#allocation2 + $0xec] sm:$0x3] %vm487_vm6, %v433_v24  ;;  %v3582_v28 = vsel %vm3555_vm14, %v3580_v19, %v3581_v21  ;;  %v5744_v24 = vshll.u32 %v13277_v22, 16  ;;  %v6306_v59 = vrot.slane %v12067_v37, 2  ;;  %v12068_v4 = vld [vmem:[#allocation2 + $0xb4] sm:$0xf8]  }
 0x12c   : > { %2488 = vst.msk [vmem:[#allocation3 + $0x50] sm:$0xff] %vm2477_vm13, %v13190_v36  ;;  %v12054_v10 = vld [vmem:[#allocation2 + $0xd8] sm:$0xfc]   ;;  %v12073_v37 = vld [vmem:[#allocation2 + $0xc8] ss:$0 sps:$4 sm:$0xff]  }
 0x12d   : > { %532 = vst.msk [vmem:[#allocation2 + $0xe8] sm:$0xf] %vm214_vm0, %v432_v5  ;;  %v12055_v63 = vld [vmem:[#allocation2 + $0xe0] ss:$0 sps:$4 sm:$0x33]   ;;  %v1617_v36 = vrot.slane %v12054_v10, 2  ;;  %v6307_v57 = vsel %vm1562_vm2, %v6305_v58, %v6306_v59 }
 0x12e   : > { %3659 = vst.msk [vmem:[#allocation3 + $0x38] sm:$0xff] %vm1273_vm10, %v3579_v14  ;;  %v1618_v23 = vrot.slane %v12055_v63, 2  ;;  %v12060_v12 = vld [vmem:[#allocation2 + $0xd8] sm:$0xfc]   ;;  %v13280_v26 = vld [vmem:[#allocation3 + $0x48] sm:$0xff]  ;;  %3660 = vst.msk [vmem:[#allocation3 + $0x40] sm:$0xff] %vm1273_vm10, %v3582_v28 }
 0x12f   : > { %4091 = vst.msk [vmem:[#allocation3 + $0x38] sm:$0xff] %vm1707_vm12, %v13204_v7  ;;  %v12061_v17 = vld [vmem:[#allocation2 + $0xe0] ss:$0 sps:$4 sm:$0x77]   ;;  %v2304_v62 = vshrl.u32 %v12060_v12, 16  ;;  %v2307_v30 = vshll.u32 %v12060_v12, 16  ;;  %11005 = vmatmul.mubr.msk.bf16.gmra.mrb[8].mxu1 %vm2562_vm15, %v13280_v26 }
 0x130   : > { %4524 = vst.msk [vmem:[#allocation3 + $0x38] sm:$0xff] %vm2477_vm13, %v13210_v27  ;;  %v1619_v7 = vsel %vm1562_vm2, %v1617_v36, %v1618_v23  ;;  %v13286_v27 = vpop.permute.xlu0 %2427  ;;  %v2312_v32 = vshrl.u32 %v12061_v17, 16  ;;  %v2315_v55 = vshll.u32 %v12061_v17, 16  ;;  %v5742_v5 = vshrl.u32 %v13277_v22, 16  ;;  %v12069_v6 = vld [vmem:[#allocation2 + $0xbc] ss:$0 sps:$4 sm:$0xff]   ;;  %v13311_v23 = vpop.permute.xlu1 %4032 }
 0x131   : > { %1671 = vrot.lane.b32.xlu0 %v1619_v7, %s12436_s5  ;;  %4092 = vst.msk [vmem:[#allocation3 + $0x40] sm:$0xff] %vm1707_vm12, %v13206_v48  ;;  %v2306_v40 = vrot.slane %v2304_v62, 2  ;;  %v2309_v42 = vrot.slane %v2307_v30, 3  ;;  %v13300_v48 = vrot.slane %v5732_v18, 1  ;;  %v6946_v18 = vshrl.u32 %v12068_v4, 16 }
 0x132   : > { %v12059_v15 = vld [vmem:[#allocation2 + $0xec] ss:$0 sps:$4 sm:$0x33]   ;;  %4525 = vst.msk [vmem:[#allocation3 + $0x40] sm:$0xff] %vm2477_vm13, %v13214_v49  ;;  %v2314_v11 = vrot.slane %v2312_v32, 2  ;;  %v2317_v8 = vrot.slane %v2315_v55, 3 }
 0x133   : > { %v1621_v31 = vrot.slane %v12059_v15, 2  ;;  %v13291_v2 = vld [vmem:[#allocation3 + $0x50] sm:$0xff]  ;;  %v2310_v53 = vor.u32 %v2309_v42, %v2306_v40  ;;  %v6949_v10 = vshll.u32 %v12068_v4, 16  ;;  %v6954_v19 = vshrl.u32 %v12069_v6, 16  ;;  %v12072_v40 = vld [vmem:[#allocation2 + $0xc0] sm:$0xf8]  }
 0x134   : > { %v12058_v34 = vld [vmem:[#allocation2 + $0xe4] sm:$0xfc]   ;;  %11008 = vmatprep.mubr.msk.bf16.mxu1 %vm2562_vm15, %v13291_v2  ;;  %v2318_v49 = vor.u32 %v2317_v8, %v2314_v11  ;;  %v13306_v9 = vpop.permute.xlu0 %4030  ;;  %v6957_v36 = vshll.u32 %v12069_v6, 16  ;;  %v12071_v21 = vld [vmem:[#allocation2 + $0xec] ss:$0 sps:$4 sm:$0x77]   ;;  %v5735_v54 = vor.u32 %v13300_v48, %v5730_v47 }
 0x135   : > { %v1620_v25 = vrot.slane %v12058_v34, 2  ;;  %v12070_v63 = vld [vmem:[#allocation2 + $0xe4] sm:$0xfc]   ;;  %v13313_v12 = vrot.slane %v5744_v24, 1  ;;  %v6948_v17 = vrot.slane %v6946_v18, 3  ;;  %v6951_v15 = vrot.slane %v6949_v10, 4 }
 0x136   : > { %v2319_v14 = vsel %vm1996_vm8, %v2310_v53, %v2318_v49  ;;  %v2321_v28 = vshrl.u32 %v12070_v63, 16  ;;  %v2324_v7 = vshll.u32 %v12070_v63, 16  ;;  %v6956_v34 = vrot.slane %v6954_v19, 3  ;;  %v13316_v42 = vld [vmem:[#allocation2 + $0x60] sm:$0xff]   ;;  %v12080_v61 = vld [vmem:[#allocation2 + $0x90] sm:$0xfe]  }
 0x137   : > { %v1622_v45 = vsel %vm1562_vm2, %v1620_v25, %v1621_v31  ;;  %2441 = vrot.lane.b32.xlu1 %v2319_v14, %s12435_s4  ;;  %v6959_v62 = vrot.slane %v6957_v36, 4  ;;  %v2329_v30 = vshrl.u32 %v12071_v21, 16  ;;  %v2332_v31 = vshll.u32 %v12071_v21, 16  ;;  %v12075_v14 = vld [vmem:[#allocation2 + $0x44] ss:$0 sps:$4 sm:$0x11]  }
 0x138   : > { %1673 = vrot.lane.b32.xlu0 %v1622_v45, %s12436_s5  ;;  %v6952_v32 = vor.u32 %v6951_v15, %v6948_v17  ;;  %v2323_v55 = vrot.slane %v2321_v28, 2  ;;  %v2326_v25 = vrot.slane %v2324_v7, 3  ;;  %v13318_v45 = vpop.permute.xlu0 %4463  ;;  %v6963_v58 = vshrl.u32 %v12072_v40, 16  ;;  %v12077_v28 = vld [vmem:[#allocation2 + $0x50] ss:$0 sps:$4 sm:$0x11]  }
 0x139   : > { %v6960_v13 = vor.u32 %v6959_v62, %v6956_v34  ;;  %v2331_v11 = vrot.slane %v2329_v30, 2  ;;  %v2334_v8 = vrot.slane %v2332_v31, 3  ;;  %v6966_v24 = vshll.u32 %v12072_v40, 16  ;;  %v13330_v30 = vld [vmem:[#allocation3 + $0x28] sm:$0xff] }
 0x13a   : > { %v2327_v53 = vor.u32 %v2326_v25, %v2323_v55  ;;  %v6971_v4 = vshrl.u32 %v12073_v37, 16  ;;  %v6974_v6 = vshll.u32 %v12073_v37, 16  ;;  %v6965_v18 = vrot.slane %v6963_v58, 3  ;;  %v12081_v48 = vld [vmem:[#allocation2 + $0x98] ss:$0 sps:$4 sm:$0x33]  }
 0x13b   : > { %v6961_v49 = vsel %vm6689_vm9, %v6952_v32, %v6960_v13  ;;  %v2335_v59 = vor.u32 %v2334_v8, %v2331_v11  ;;  %v6968_v10 = vrot.slane %v6966_v24, 4  ;;  %v5723_v63 = vor.u32 %v13261_v56, %v5718_v43  ;;  %v12078_v56 = vld [vmem:[#allocation2 + $0x84] sm:$0xfe]   ;;  %v12079_v32 = vld [vmem:[#allocation2 + $0x8c] ss:$0 sps:$4 sm:$0x33]  }
 0x13c   : > { %6361 = vrot.lane.b32.xlu0 %v6307_v57, %s12436_s5  ;;  %v13321_v57 = vpop.permute.xlu1 %4465  ;;  %7128 = vrot.lane.b32.xlu1 %v6961_v49, %s12435_s4  ;;  %v6973_v36 = vrot.slane %v6971_v4, 3  ;;  %v6976_v21 = vrot.slane %v6974_v6, 4  ;;  %v5725_v17 = vshll.u32 %v12075_v14, 16  ;;  %v5756_v7 = vshll.u32 %v13316_v42, 16  ;;  %v13332_v31 = vpop.permute.xlu0 %6343 }
 0x13d   : > { %v2336_v19 = vsel %vm1996_vm8, %v2327_v53, %v2335_v59  ;;  %v6969_v15 = vor.u32 %v6968_v10, %v6965_v18  ;;  %v5737_v43 = vshll.u32 %v12077_v28, 16  ;;  %v1029_v11 = vshrl.u32 %v12078_v56, 16  ;;  %v13345_v53 = vld [vmem:[#allocation3 + $0x30] sm:$0xff]  ;;  %v12091_v22 = vld [vmem:[#allocation2 + $0xa4] ss:$0 sps:$4 sm:$0x33]  }
 0x13e   : > { %v6977_v34 = vor.u32 %v6976_v21, %v6973_v36  ;;  %v5727_v62 = vrot.slane %v5725_v17, 1  ;;  %v1032_v8 = vshll.u32 %v12078_v56, 16  ;;  %v1037_v37 = vshrl.u32 %v12079_v32, 16  ;;  %v12083_v36 = vld [vmem:[#allocation2 + $0x74] ss:$0 sps:$4 sm:$0x11]  }
 0x13f   : > { %v5739_v13 = vrot.slane %v5737_v43, 1  ;;  %v1040_v47 = vshll.u32 %v12079_v32, 16  ;;  %v1031_v24 = vrot.slane %v1029_v11, 1  ;;  %v1046_v6 = vshrl.u32 %v12080_v61, 16  ;;  %v12084_v32 = vld [vmem:[#allocation2 + $0x78] sm:$0xfe]  }
 0x140   : > { %2443 = vrot.lane.b32.xlu0 %v2336_v19, %s12435_s4  ;;  %v6978_v55 = vsel %vm6689_vm9, %v6969_v15, %v6977_v34  ;;  %v5728_v25 = vsel %vm5656_vm3, %v5723_v63, %v5727_v62  ;;  %v13339_v40 = vpop.permute.xlu1 %6345  ;;  %v1034_v49 = vrot.slane %v1032_v8, 2  ;;  %v1039_v59 = vrot.slane %v1037_v37, 1  ;;  %v13351_v10 = vpop.permute.xlu0 %7112  ;;  %v12082_v19 = vld [vmem:[#allocation2 + $0x6c] sm:$0xfe]  }
 0x141   : > { %7130 = vrot.lane.b32.xlu1 %v6978_v55, %s12435_s4  ;;  %5974 = vst.msk [vmem:[#allocation3 + $0x28] sm:$0xff] %vm1273_vm10, %v5728_v25  ;;  %v5740_v58 = vsel %vm5656_vm3, %v5735_v54, %v5739_v13  ;;  %v1042_v4 = vrot.slane %v1040_v47, 2  ;;  %v1049_v14 = vshll.u32 %v12080_v61, 16  ;;  %v1054_v18 = vshrl.u32 %v12081_v48, 16 }
 0x142   : > { %6406 = vst.msk [vmem:[#allocation3 + $0x28] sm:$0xff] %vm1707_vm12, %v13223_v46  ;;  %v1035_v46 = vor.u32 %v1034_v49, %v1031_v24  ;;  %v1057_v63 = vshll.u32 %v12081_v48, 16  ;;  %v1048_v21 = vrot.slane %v1046_v6, 1  ;;  %v3583_v62 = vrot.slane %v12082_v19, 1  ;;  %v12090_v49 = vld [vmem:[#allocation2 + $0x9c] sm:$0xfe]  }
 0x143   : > { %7175 = vst.msk [vmem:[#allocation3 + $0x28] sm:$0xff] %vm2477_vm13, %v13241_v38  ;;  %v1043_v38 = vor.u32 %v1042_v4, %v1039_v59  ;;  %v1051_v17 = vrot.slane %v1049_v14, 2  ;;  %v1056_v15 = vrot.slane %v1054_v18, 1  ;;  %v3584_v54 = vrot.slane %v12083_v36, 1 }
 0x144   : > { %5975 = vst.msk [vmem:[#allocation3 + $0x30] sm:$0xff] %vm1273_vm10, %v5740_v58  ;;  %v13357_v28 = vpop.permute.xlu1 %7114  ;;  %v1059_v34 = vrot.slane %v1057_v63, 2  ;;  %v5754_v43 = vshrl.u32 %v13316_v42, 16  ;;  %v12085_v25 = vld [vmem:[#allocation2 + $0x80] ss:$0 sps:$4 sm:$0x11]   ;;  %v13366_v37 = vpop.permute.xlu0 %1661 }
 0x145   : > { %6407 = vst.msk [vmem:[#allocation3 + $0x30] sm:$0xff] %vm1707_vm12, %v13228_v44  ;;  %v1044_v44 = vsel %vm840_vm11, %v1035_v46, %v1043_v38  ;;  %v1052_v56 = vor.u32 %v1051_v17, %v1048_v21  ;;  %v5758_v13 = vrot.slane %v5756_v7, 1  ;;  %v3586_v8 = vrot.slane %v12084_v32, 1  ;;  %v12087_v61 = vld [vmem:[#allocation2 + $0x5c] ss:$0 sps:$4 sm:$0x11]  }
 0x146   : > { %7176 = vst.msk [vmem:[#allocation3 + $0x30] sm:$0xff] %vm2477_vm13, %v13251_v3  ;;  %v1060_v55 = vor.u32 %v1059_v34, %v1056_v15  ;;  %v3585_v3 = vsel %vm3555_vm14, %v3583_v62, %v3584_v54  ;;  %v3587_v7 = vrot.slane %v12085_v25, 1  ;;  %v5749_v58 = vshll.u32 %v12087_v61, 16  ;;  %v12092_v63 = vld [vmem:[#allocation2 + $0xa8] sm:$0xfe]  }
 0x147   : > { %1285 = vst.msk [vmem:[#allocation3 + $0x58] sm:$0xff] %vm1273_vm10, %v1044_v44  ;;  %3661 = vst.msk [vmem:[#allocation3 + $0x48] sm:$0xff] %vm1273_vm10, %v3585_v3  ;;  %v1066_v4 = vshll.u32 %v12090_v49, 16  ;;  %v1071_v18 = vshrl.u32 %v12091_v22, 16  ;;  %v1074_v46 = vshll.u32 %v12091_v22, 16  ;;  %v1080_v34 = vshrl.u32 %v12092_v63, 16 }
 0x148   : > { %1719 = vst.msk [vmem:[#allocation3 + $0x58] sm:$0xff] %vm1707_vm12, %v13268_v29  ;;  %v1061_v42 = vsel %vm840_vm11, %v1052_v56, %v1060_v55  ;;  %4093 = vst.msk [vmem:[#allocation3 + $0x48] sm:$0xff] %vm1707_vm12, %v13306_v9  ;;  %v12089_v29 = vld [vmem:[#allocation2 + $0x68] ss:$0 sps:$4 sm:$0x11]   ;;  %v13377_v47 = vpop.permute.xlu1 %1663  ;;  %v5747_v9 = vor.u32 %v13313_v12, %v5742_v5  ;;  %v5751_v59 = vrot.slane %v5749_v58, 1  ;;  %v2432_v6 = vpop.permute.xlu0 %2431 }
 0x149   : > { %2489 = vst.msk [vmem:[#allocation3 + $0x58] sm:$0xff] %vm2477_vm13, %v13286_v27  ;;  %4526 = vst.msk [vmem:[#allocation3 + $0x48] sm:$0xff] %vm2477_vm13, %v13318_v45  ;;  %v3588_v27 = vsel %vm3555_vm14, %v3586_v8, %v3587_v7  ;;  %v5759_v45 = vor.u32 %v5758_v13, %v5754_v43  ;;  %v5761_v24 = vshll.u32 %v12089_v29, 16  ;;  %v13395_v5 = vld [vmem:[#allocation3 + $0x40] sm:$0xff]  ;;  %v1063_v12 = vshrl.u32 %v12090_v49, 16 }
 0x14a   : > { %v7199_v11 = vld [vmem:[#allocation3 + $0x28] sm:$0xff]  ;;  %1286 = vst.msk [vmem:[#allocation3 + $0x60] sm:$0xff] %vm1273_vm10, %v1061_v42  ;;  %3662 = vst.msk [vmem:[#allocation3 + $0x50] sm:$0xff] %vm1273_vm10, %v3588_v27  ;;  %v5752_v14 = vsel %vm5656_vm3, %v5747_v9, %v5751_v59  ;;  %v1068_v38 = vrot.slane %v1066_v4, 2  ;;  %v1073_v17 = vrot.slane %v1071_v18, 1  ;;  %v1076_v15 = vrot.slane %v1074_v46, 2 }
 0x14b   : > { %11208 = vmatprep.mubr.msk.bf16.mxu0 %vm2562_vm15, %v7199_v11  ;;  %1720 = vst.msk [vmem:[#allocation3 + $0x60] sm:$0xff] %vm1707_vm12, %v13273_v16  ;;  %4094 = vst.msk [vmem:[#allocation3 + $0x50] sm:$0xff] %vm1707_vm12, %v13311_v23  ;;  %v13391_v16 = vld [vmem:[#allocation3 + $0x38] sm:$0xff]  ;;  %v1065_v36 = vrot.slane %v1063_v12, 1  ;;  %v1083_v62 = vshll.u32 %v12092_v63, 16  ;;  %v1082_v32 = vrot.slane %v1080_v34, 1 }
 0x14c   : > { %2490 = vst.msk [vmem:[#allocation3 + $0x60] sm:$0xff] %vm2477_vm13, %v13298_v51  ;;  %4527 = vst.msk [vmem:[#allocation3 + $0x50] sm:$0xff] %vm2477_vm13, %v13321_v57  ;;  %v5763_v51 = vrot.slane %v5761_v24, 1  ;;  %v12093_v57 = vld [vmem:[#allocation2 + $0xb0] ss:$0 sps:$4 sm:$0x33]   ;;  %v2434_v21 = vpop.permute.xlu1 %2433  ;;  %v4035_v11 = vpop.permute.xlu0 %4034 }
 0x14d   : > { %v7200_v48 = vld [vmem:[#allocation3 + $0x30] sm:$0xff]  ;;  %5976 = vst.msk [vmem:[#allocation3 + $0x38] sm:$0xff] %vm1273_vm10, %v5752_v14  ;;  %v1069_v54 = vor.u32 %v1068_v38, %v1065_v36  ;;  %v1088_v43 = vshrl.u32 %v12093_v57, 16  ;;  %v1091_v44 = vshll.u32 %v12093_v57, 16  ;;  %v1085_v55 = vrot.slane %v1083_v62, 2  ;;  %v12110_v46 = vld [vmem:[#allocation2 + $0x78] sm:$0xff]  }
 0x14e   : > { %11209 = vmatmul.mubr.msk.bf16.gmra.mrb[8].mxu0 %vm2562_vm15, %v7200_v48  ;;  %v5764_v23 = vsel %vm5656_vm3, %v5759_v45, %v5763_v51  ;;  %6408 = vst.msk [vmem:[#allocation3 + $0x38] sm:$0xff] %vm1707_vm12, %v13332_v31  ;;  %v1077_v31 = vor.u32 %v1076_v15, %v1073_v17  ;;  %v12094_v3 = vld [vmem:[#allocation2 + $0xcc] sm:$0xfc]   ;;  %v12095_v13 = vld [vmem:[#allocation2 + $0xd4] ss:$0 sps:$4 sm:$0x33]  }
 0x14f   : > { %5977 = vst.msk [vmem:[#allocation3 + $0x40] sm:$0xff] %vm1273_vm10, %v5764_v23  ;;  %v1090_v25 = vrot.slane %v1088_v43, 1  ;;  %v1086_v42 = vor.u32 %v1085_v55, %v1082_v32  ;;  %v3991_v7 = vrot.slane %v12094_v3, 2  ;;  %v3992_v61 = vrot.slane %v12095_v13, 2  ;;  %v12096_v29 = vld [vmem:[#allocation2 + $0x84] sm:$0xfe]  }
 0x150   : > { %v13398_v19 = vld [vmem:[#allocation3 + $0x58] sm:$0xff]  ;;  %6409 = vst.msk [vmem:[#allocation3 + $0x40] sm:$0xff] %vm1707_vm12, %v13339_v40  ;;  %v1093_v40 = vrot.slane %v1091_v44, 2  ;;  %v1078_v8 = vsel %vm840_vm11, %v1069_v54, %v1077_v31  ;;  %v4037_v48 = vpop.permute.xlu1 %4036  ;;  %v12097_v27 = vld [vmem:[#allocation2 + $0x8c] ss:$0 sps:$4 sm:$0x11]   ;;  %v4468_v12 = vpop.permute.xlu0 %4467 }
 0x151   : > { %11009 = vmatmul.mubr.msk.bf16.gmra.mrb[12].mxu1 %vm2562_vm15, %v13398_v19  ;;  %7177 = vst.msk [vmem:[#allocation3 + $0x38] sm:$0xff] %vm2477_vm13, %v13351_v10  ;;  %7178 = vst.msk [vmem:[#allocation3 + $0x40] sm:$0xff] %vm2477_vm13, %v13357_v28  ;;  %v13417_v10 = vld [vmem:[#allocation2 + $0x6c] sm:$0xff]   ;;  %v3993_v58 = vsel %vm1562_vm2, %v3991_v7, %v3992_v61  ;;  %v3589_v45 = vrot.slane %v12096_v29, 1  ;;  %v3590_v59 = vrot.slane %v12097_v27, 1  ;;  %v5778_v32 = vshrl.u32 %v12110_v46, 16 }
 0x152   : > { %1287 = vst.msk [vmem:[#allocation3 + $0x68] sm:$0xff] %vm1273_vm10, %v1078_v8  ;;  %v1094_v28 = vor.u32 %v1093_v40, %v1090_v25  ;;  %v5768_v24 = vshll.u32 %v13417_v10, 16  ;;  %4046 = vrot.lane.b32.xlu0 %v3993_v58, %s12436_s5  ;;  %v12098_v22 = vld [vmem:[#allocation2 + $0x90] sm:$0xfe]   ;;  %v5766_v18 = vshrl.u32 %v13417_v10, 16  ;;  %v5780_v3 = vshll.u32 %v12110_v46, 16 }
 0x153   : > { %v13411_v56 = vld [vmem:[#allocation3 + $0x60] sm:$0xff]  ;;  %1721 = vst.msk [vmem:[#allocation3 + $0x68] sm:$0xff] %vm1707_vm12, %v13366_v37  ;;  %v12099_v51 = vld [vmem:[#allocation2 + $0x98] ss:$0 sps:$4 sm:$0x11]   ;;  %v3591_v4 = vsel %vm3555_vm14, %v3589_v45, %v3590_v59 }
 0x154   : > { %11012 = vmatprep.mubr.msk.bf16.mxu1 %vm2562_vm15, %v13411_v56  ;;  %v1095_v9 = vsel %vm840_vm11, %v1086_v42, %v1094_v28  ;;  %2491 = vst.msk [vmem:[#allocation3 + $0x68] sm:$0xff] %vm2477_vm13, %v2432_v6  ;;  %v3592_v6 = vrot.slane %v12098_v22, 1  ;;  %v12100_v14 = vld [vmem:[#allocation2 + $0xcc] sm:$0xf8]   ;;  %v3593_v63 = vrot.slane %v12099_v51, 1  ;;  %v4470_v23 = vpop.permute.xlu1 %4469  ;;  %v5770_v38 = vrot.slane %v5768_v24, 1  ;;  %v6348_v31 = vpop.permute.xlu0 %6347 }
 0x155   : > { %1288 = vst.msk [vmem:[#allocation3 + $0x70] sm:$0xff] %vm1273_vm10, %v1095_v9  ;;  %3663 = vst.msk [vmem:[#allocation3 + $0x58] sm:$0xff] %vm1273_vm10, %v3591_v4  ;;  %v4424_v36 = vrot.slane %v12100_v14, 3  ;;  %v12102_v17 = vld [vmem:[#allocation2 + $0xd8] sm:$0xfc]   ;;  %v13456_v27 = vld [vmem:[#allocation2 + $0x84] sm:$0xff]  }
 0x156   : > { %1722 = vst.msk [vmem:[#allocation3 + $0x70] sm:$0xff] %vm1707_vm12, %v13377_v47  ;;  %v12101_v47 = vld [vmem:[#allocation2 + $0xd4] ss:$0 sps:$4 sm:$0x77]   ;;  %4095 = vst.msk [vmem:[#allocation3 + $0x58] sm:$0xff] %vm1707_vm12, %v4035_v11  ;;  %v3594_v57 = vsel %vm3555_vm14, %v3592_v6, %v3593_v63  ;;  %v3994_v62 = vrot.slane %v12102_v17, 2  ;;  %v5771_v45 = vor.u32 %v5770_v38, %v5766_v18 }
 0x157   : > { %2492 = vst.msk [vmem:[#allocation3 + $0x70] sm:$0xff] %vm2477_vm13, %v2434_v21  ;;  %v4425_v21 = vrot.slane %v12101_v47, 3  ;;  %v12103_v15 = vld [vmem:[#allocation2 + $0xe0] ss:$0 sps:$4 sm:$0x33]   ;;  %4528 = vst.msk [vmem:[#allocation3 + $0x58] sm:$0xff] %vm2477_vm13, %v4468_v12 }
 0x158   : > { %v7201_v49 = vld [vmem:[#allocation3 + $0x38] sm:$0xff]  ;;  %v7202_v37 = vld [vmem:[#allocation3 + $0x40] sm:$0xff]  ;;  %3664 = vst.msk [vmem:[#allocation3 + $0x60] sm:$0xff] %vm1273_vm10, %v3594_v57  ;;  %v3995_v54 = vrot.slane %v12103_v15, 2  ;;  %v6350_v11 = vpop.permute.xlu1 %6349  ;;  %v7117_v9 = vpop.permute.xlu0 %7116  ;;  %v5790_v6 = vshrl.u32 %v13456_v27, 16  ;;  %v13462_v14 = vld [vmem:[#allocation3 + $0x48] sm:$0xff] }
 0x159   : > { %11212 = vmatprep.mubr.msk.bf16.mxu0 %vm2562_vm15, %v7201_v49  ;;  %4096 = vst.msk [vmem:[#allocation3 + $0x60] sm:$0xff] %vm1707_vm12, %v4037_v48  ;;  %v4426_v34 = vsel %vm4372_vm1, %v4424_v36, %v4425_v21  ;;  %v12104_v43 = vld [vmem:[#allocation2 + $0xe4] sm:$0xfc]   ;;  %v12105_v55 = vld [vmem:[#allocation2 + $0xec] ss:$0 sps:$4 sm:$0x33]  }
 0x15a   : > { %11213 = vmatmul.mubr.msk.bf16.gmra.mrb[12].mxu0 %vm2562_vm15, %v7202_v37  ;;  %4479 = vrot.lane.b32.xlu1 %v4426_v34, %s12435_s4  ;;  %4529 = vst.msk [vmem:[#allocation3 + $0x60] sm:$0xff] %vm2477_vm13, %v4470_v23  ;;  %v3996_v25 = vsel %vm1562_vm2, %v3994_v62, %v3995_v54  ;;  %v3997_v40 = vrot.slane %v12104_v43, 2  ;;  %v3998_v10 = vrot.slane %v12105_v55, 2  ;;  %v12106_v8 = vld [vmem:[#allocation2 + $0xd8] sm:$0xf8]   ;;  %v5782_v48 = vrot.slane %v5780_v3, 1 }
 0x15b   : > { %v13443_v44 = vld [vmem:[#allocation3 + $0x68] sm:$0xff]  ;;  %4048 = vrot.lane.b32.xlu0 %v3996_v25, %s12436_s5  ;;  %v12107_v42 = vld [vmem:[#allocation2 + $0xe0] ss:$0 sps:$4 sm:$0x77]   ;;  %v4427_v28 = vrot.slane %v12106_v8, 3  ;;  %v13464_v63 = vld [vmem:[#allocation2 + $0x90] sm:$0xff]  }
 0x15c   : > { %11013 = vmatmul.mubr.msk.bf16.gmra.mrb[16].mxu1 %vm2562_vm15, %v13443_v44  ;;  %v3999_v7 = vsel %vm1562_vm2, %v3997_v40, %v3998_v10  ;;  %v4428_v61 = vrot.slane %v12107_v42, 3  ;;  %v12109_v29 = vld [vmem:[#allocation2 + $0x74] ss:$0 sps:$4 sm:$0x11]   ;;  %v12112_v59 = vld [vmem:[#allocation2 + $0xe4] sm:$0xf8]   ;;  %v7119_v22 = vpop.permute.xlu1 %7118  ;;  %v5783_v51 = vor.u32 %v5782_v48, %v5778_v32  ;;  %v13468_v57 = vpop.permute.xlu0 %1665 }
 0x15d   : > { %v5773_v24 = vshll.u32 %v12109_v29, 16  ;;  %v12111_v49 = vld [vmem:[#allocation2 + $0x80] ss:$0 sps:$4 sm:$0x11]   ;;  %v4430_v46 = vrot.slane %v12112_v59, 3  ;;  %v5792_v21 = vshll.u32 %v13456_v27, 16 }
 0x15e   : > { %v13450_v13 = vld [vmem:[#allocation3 + $0x70] sm:$0xff]  ;;  %4050 = vrot.lane.b32.xlu1 %v3999_v7, %s12436_s5  ;;  %v4429_v58 = vsel %vm4372_vm1, %v4427_v28, %v4428_v61  ;;  %v5785_v12 = vshll.u32 %v12111_v49, 16  ;;  %v12113_v4 = vld [vmem:[#allocation2 + $0xec] ss:$0 sps:$4 sm:$0x77]  }
 0x15f   : > { %11016 = vmatprep.mubr.msk.bf16.mxu1 %vm2562_vm15, %v13450_v13  ;;  %4481 = vrot.lane.b32.xlu0 %v4429_v58, %s12435_s4  ;;  %v5775_v37 = vrot.slane %v5773_v24, 1  ;;  %v4431_v23 = vrot.slane %v12113_v4, 3  ;;  %v12114_v36 = vld [vmem:[#allocation2 + $0xcc] sm:$0xfc]   ;;  %v12117_v32 = vld [vmem:[#allocation2 + $0xd4] ss:$0 sps:$4 sm:$0xff]  }
 0x160   : > { %v5787_v18 = vrot.slane %v5785_v12, 1  ;;  %v12115_v38 = vld [vmem:[#allocation2 + $0xd4] ss:$0 sps:$4 sm:$0x33]   ;;  %v6308_v62 = vrot.slane %v12114_v36, 2  ;;  %v6988_v10 = vshrl.u32 %v12117_v32, 16 }
 0x161   : > { %v5776_v47 = vsel %vm5656_vm3, %v5771_v45, %v5775_v37  ;;  %v13472_v17 = vld [vmem:[#allocation3 + $0x50] sm:$0xff]  ;;  %v4432_v34 = vsel %vm4372_vm1, %v4430_v46, %v4431_v23  ;;  %v6309_v54 = vrot.slane %v12115_v38, 2  ;;  %v6991_v42 = vshll.u32 %v12117_v32, 16  ;;  %v12119_v7 = vld [vmem:[#allocation2 + $0xbc] ss:$0 sps:$4 sm:$0x33]  }
 0x162   : > { %5978 = vst.msk [vmem:[#allocation3 + $0x48] sm:$0xff] %vm1273_vm10, %v5776_v47  ;;  %v5788_v15 = vsel %vm5656_vm3, %v5783_v51, %v5787_v18  ;;  %4483 = vrot.lane.b32.xlu1 %v4432_v34, %s12435_s4  ;;  %v12116_v43 = vld [vmem:[#allocation2 + $0xcc] sm:$0xf8]   ;;  %v13479_v55 = vpop.permute.xlu1 %1667  ;;  %v12118_v8 = vld [vmem:[#allocation2 + $0xb4] sm:$0xfe]   ;;  %v6990_v29 = vrot.slane %v6988_v10, 3 }
 0x163   : > { %6410 = vst.msk [vmem:[#allocation3 + $0x48] sm:$0xff] %vm1707_vm12, %v6348_v31  ;;  %v5802_v31 = vshrl.u32 %v13464_v63, 16  ;;  %v6310_v3 = vsel %vm1562_vm2, %v6308_v62, %v6309_v54  ;;  %v6980_v25 = vshrl.u32 %v12116_v43, 16  ;;  %v6983_v40 = vshll.u32 %v12116_v43, 16  ;;  %v12122_v43 = vld [vmem:[#allocation2 + $0xd8] sm:$0xfc]  }
 0x164   : > { %5979 = vst.msk [vmem:[#allocation3 + $0x50] sm:$0xff] %vm1273_vm10, %v5788_v15  ;;  %6363 = vrot.lane.b32.xlu0 %v6310_v3, %s12436_s5  ;;  %v1097_v48 = vshrl.u32 %v12118_v8, 16  ;;  %v6993_v58 = vrot.slane %v6991_v42, 4  ;;  %v1100_v45 = vshll.u32 %v12118_v8, 16  ;;  %v1108_v24 = vshll.u32 %v12119_v7, 16 }
 0x165   : > { %7179 = vst.msk [vmem:[#allocation3 + $0x48] sm:$0xff] %vm2477_vm13, %v7117_v9  ;;  %v6982_v28 = vrot.slane %v6980_v25, 3  ;;  %v6985_v61 = vrot.slane %v6983_v40, 4  ;;  %v2436_v9 = vpop.permute.xlu0 %2435  ;;  %v12121_v37 = vld [vmem:[#allocation2 + $0xc8] ss:$0 sps:$4 sm:$0x33]  }
 0x166   : > { %6411 = vst.msk [vmem:[#allocation3 + $0x50] sm:$0xff] %vm1707_vm12, %v6350_v11  ;;  %v1105_v11 = vshrl.u32 %v12119_v7, 16  ;;  %v1099_v59 = vrot.slane %v1097_v48, 1  ;;  %v6994_v12 = vor.u32 %v6993_v58, %v6990_v29  ;;  %v1102_v4 = vrot.slane %v1100_v45, 2  ;;  %v12124_v29 = vld [vmem:[#allocation2 + $0xe4] sm:$0xfc]  }
 0x167   : > { %7180 = vst.msk [vmem:[#allocation3 + $0x50] sm:$0xff] %vm2477_vm13, %v7119_v22  ;;  %v6986_v49 = vor.u32 %v6985_v61, %v6982_v28  ;;  %v12120_v22 = vld [vmem:[#allocation2 + $0xc0] sm:$0xfe]   ;;  %v2438_v51 = vpop.permute.xlu1 %2437  ;;  %v1110_v47 = vrot.slane %v1108_v24, 2  ;;  %v1122_v38 = vshrl.u32 %v12121_v37, 16  ;;  %v1125_v15 = vshll.u32 %v12121_v37, 16 }
 0x168   : > { %v1107_v46 = vrot.slane %v1105_v11, 1  ;;  %v1114_v23 = vshrl.u32 %v12120_v22, 16  ;;  %v1117_v36 = vshll.u32 %v12120_v22, 16  ;;  %v1103_v62 = vor.u32 %v1102_v4, %v1099_v59  ;;  %v12123_v42 = vld [vmem:[#allocation2 + $0xe0] ss:$0 sps:$4 sm:$0x33]  }
 0x169   : > { %v6995_v34 = vsel %vm6689_vm9, %v6986_v49, %v6994_v12  ;;  %v1124_v25 = vrot.slane %v1122_v38, 1  ;;  %v1127_v40 = vrot.slane %v1125_v15, 2  ;;  %v13489_v10 = vpop.permute.xlu0 %4038  ;;  %v6311_v7 = vrot.slane %v12122_v43, 2  ;;  %v12125_v48 = vld [vmem:[#allocation2 + $0xec] ss:$0 sps:$4 sm:$0x33]  }
 0x16a   : > { %v1111_v54 = vor.u32 %v1110_v47, %v1107_v46  ;;  %7132 = vrot.lane.b32.xlu1 %v6995_v34, %s12435_s4  ;;  %v1116_v32 = vrot.slane %v1114_v23, 1  ;;  %v1119_v3 = vrot.slane %v1117_v36, 2  ;;  %v6312_v11 = vrot.slane %v12123_v42, 2  ;;  %v12126_v37 = vld [vmem:[#allocation2 + $0xd8] sm:$0xf8]  }
 0x16b   : > { %v1128_v61 = vor.u32 %v1127_v40, %v1124_v25  ;;  %v13493_v45 = vpop.permute.xlu1 %4040  ;;  %v5804_v24 = vshll.u32 %v13464_v63, 16  ;;  %v6314_v59 = vrot.slane %v12124_v29, 2  ;;  %v6315_v22 = vrot.slane %v12125_v48, 2  ;;  %v12127_v4 = vld [vmem:[#allocation2 + $0xe0] ss:$0 sps:$4 sm:$0xff]  }
 0x16c   : > { %v7203_v18 = vld [vmem:[#allocation3 + $0x48] sm:$0xff]  ;;  %v1112_v8 = vsel %vm840_vm11, %v1103_v62, %v1111_v54  ;;  %v1120_v28 = vor.u32 %v1119_v3, %v1116_v32  ;;  %v6313_v12 = vsel %vm1562_vm2, %v6311_v7, %v6312_v11  ;;  %v6997_v46 = vshrl.u32 %v12126_v37, 16  ;;  %v2520_v43 = vld [vmem:[%s14655_s1 + $0x2] sm:$0x3] }
 0x16d   : > { %11216 = vmatprep.mubr.msk.bf16.mxu0 %vm2562_vm15, %v7203_v18  ;;  %1289 = vst.msk [vmem:[#allocation3 + $0x78] sm:$0xff] %vm1273_vm10, %v1112_v8  ;;  %6365 = vrot.lane.b32.xlu0 %v6313_v12, %s12436_s5  ;;  %v7000_v47 = vshll.u32 %v12126_v37, 16  ;;  %v12128_v18 = vld [vmem:[#allocation2 + $0xe4] sm:$0xf8]   ;;  %v13507_v23 = vpop.permute.xlu0 %4471  ;;  %v7008_v36 = vshll.u32 %v12127_v4, 16 }
 0x16e   : > { %v7204_v58 = vld [vmem:[#allocation3 + $0x50] sm:$0xff]  ;;  %1723 = vst.msk [vmem:[#allocation3 + $0x78] sm:$0xff] %vm1707_vm12, %v13468_v57  ;;  %v1129_v49 = vsel %vm840_vm11, %v1120_v28, %v1128_v61  ;;  %v6316_v57 = vsel %vm1562_vm2, %v6314_v59, %v6315_v22  ;;  %v12129_v38 = vld [vmem:[#allocation2 + $0xec] ss:$0 sps:$4 sm:$0xff]   ;;  %v6999_v15 = vrot.slane %v6997_v46, 3  ;;  %v7014_v62 = vshrl.u32 %v12128_v18, 16 }
 0x16f   : > { %11217 = vmatmul.mubr.msk.bf16.gmra.mrb[16].mxu0 %vm2562_vm15, %v7204_v58  ;;  %2493 = vst.msk [vmem:[#allocation3 + $0x78] sm:$0xff] %vm2477_vm13, %v2436_v9  ;;  %6367 = vrot.lane.b32.xlu1 %v6316_v57, %s12436_s5  ;;  %v7005_v9 = vshrl.u32 %v12127_v4, 16  ;;  %v7002_v34 = vrot.slane %v7000_v47, 4  ;;  %v7017_v54 = vshll.u32 %v12128_v18, 16  ;;  %v13517_v32 = vpop.permute.xlu1 %4473  ;;  %v7010_v25 = vrot.slane %v7008_v36, 4 }
 0x170   : > { %1290 = vst.msk [vmem:[#allocation3 + $0x80] sm:$0xff] %vm1273_vm10, %v1129_v49  ;;  %v7025_v40 = vshll.u32 %v12129_v38, 16  ;;  %v10587_v8 = vld [vmem:[%s14655_s1 + $0x2a] sm:$0x3]  ;;  %v7016_v7 = vrot.slane %v7014_v62, 3 }
 0x171   : > { %1724 = vst.msk [vmem:[#allocation3 + $0x80] sm:$0xff] %vm1707_vm12, %v13479_v55  ;;  %v2519_v55 = vld [vmem:[%s14655_s1] sm:$0x3]  ;;  %v7007_v3 = vrot.slane %v7005_v9, 3  ;;  %v7003_v42 = vor.u32 %v7002_v34, %v6999_v15  ;;  %v7019_v28 = vrot.slane %v7017_v54, 4  ;;  %v6352_v4 = vpop.permute.xlu0 %6351 }
 0x172   : > { %2494 = vst.msk [vmem:[#allocation3 + $0x80] sm:$0xff] %vm2477_vm13, %v2438_v51  ;;  %v7022_v51 = vshrl.u32 %v12129_v38, 16  ;;  %v10182_v61 = vld.sshfl [vmem:[%s14655_s1 + $0x4] sm:$0x3 pattern:$0x76325410]  ;;  %v2779_v29 = vcombine.low %v2519_v55, %v2520_v43 }
 0x173   : > { %v7011_v48 = vor.u32 %v7010_v25, %v7007_v3  ;;  %v7027_v11 = vrot.slane %v7025_v40, 4  ;;  %v10588_v49 = vld [vmem:[%s14655_s1 + $0x2c] sm:$0x3]  ;;  %v7020_v59 = vor.u32 %v7019_v28, %v7016_v7  ;;  %v12130_v47 = vld [vmem:[#allocation2 + $0x9c] sm:$0xfe]   ;;  %v6354_v55 = vpop.permute.xlu1 %6353  ;;  %v5794_v40 = vrot.slane %v5792_v21, 1 }
 0x174   : > { %v7024_v58 = vrot.slane %v7022_v51, 3  ;;  %v2786_v22 = vrot.slane %v2779_v29, %v13027_v35  ;;  %v10590_v37 = vld.sshfl [vmem:[%s14655_s1 + $0x2e] sm:$0x3 pattern:$0x76325410]  ;;  %v7501_v12 = vcombine.low %v10587_v8, %v10588_v49  ;;  %v3595_v34 = vrot.slane %v12130_v47, 1 }
 0x175   : > { %v7012_v57 = vsel %vm6689_vm9, %v7003_v42, %v7011_v48  ;;  %v12131_v36 = vld [vmem:[#allocation2 + $0xa4] ss:$0 sps:$4 sm:$0x11]   ;;  %v12132_v62 = vld [vmem:[#allocation2 + $0xa8] sm:$0xfe]   ;;  %v5806_v42 = vrot.slane %v5804_v24, 1  ;;  %v5795_v24 = vor.u32 %v5794_v40, %v5790_v6 }
 0x176   : > { %v7028_v46 = vor.u32 %v7027_v11, %v7024_v58  ;;  %7134 = vrot.lane.b32.xlu0 %v7012_v57, %s12435_s4  ;;  %v2794_v18 = vcombine.low %v2786_v22, %v10182_v61  ;;  %v7508_v9 = vrot.slane %v7501_v12, %v13027_v35  ;;  %v13535_v38 = vld [vmem:[#allocation3 + $0x78] sm:$0xff]  ;;  %v3596_v3 = vrot.slane %v12131_v36, 1  ;;  %v12133_v25 = vld [vmem:[#allocation2 + $0xb0] ss:$0 sps:$4 sm:$0x11]   ;;  %v7121_v29 = vpop.permute.xlu0 %7120 }
 0x177   : > { %11017 = vmatmul.mubr.msk.bf16.gmra.mrb[20].mxu1 %vm2562_vm15, %v13535_v38  ;;  %v3598_v8 = vrot.slane %v12132_v62, 1  ;;  %v3599_v28 = vrot.slane %v12133_v25, 1  ;;  %v12135_v21 = vld [vmem:[#allocation2 + $0x8c] ss:$0 sps:$4 sm:$0x11]  }
 0x178   : > { %v7029_v15 = vsel %vm6689_vm9, %v7020_v59, %v7028_v46  ;;  %11755 = vmatprep.subr.msk.bf16.mxu1 %vm1562_vm2, %v2794_v18  ;;  %v7516_v43 = vcombine.low %v7508_v9, %v10590_v37  ;;  %v2844_v51 = vsel %vm1562_vm2, %v2794_v18, 0  ;;  %v3597_v7 = vsel %vm3555_vm14, %v3595_v34, %v3596_v3  ;;  %v12137_v58 = vld [vmem:[#allocation2 + $0x98] ss:$0 sps:$4 sm:$0x11]   ;;  %v12138_v22 = vld [vmem:[#allocation2 + $0xf0] sm:$0xfc]  }
 0x179   : > { %v13540_v54 = vld [vmem:[#allocation3 + $0x80] sm:$0xff]  ;;  %7136 = vrot.lane.b32.xlu1 %v7029_v15, %s12435_s4  ;;  %11029 = vmatpush3.bf16.msra.mxu1 %v2844_v51  ;;  %3665 = vst.msk [vmem:[#allocation3 + $0x68] sm:$0xff] %vm1273_vm10, %v3597_v7  ;;  %v3600_v48 = vsel %vm3555_vm14, %v3598_v8, %v3599_v28  ;;  %v7123_v11 = vpop.permute.xlu1 %7122  ;;  %v5797_v49 = vshll.u32 %v12135_v21, 16  ;;  %v5807_v59 = vor.u32 %v5806_v42, %v5802_v31  ;;  %v13569_v37 = vld [vmem:[#allocation3 + $0x58] sm:$0xff]  ;;  %v1623_v6 = vrot.slane %v12138_v22, 2 }
 0x17a   : > { %11020 = vmatprep.mubr.msk.bf16.mxu1 %vm2562_vm15, %v13540_v54  ;;  %11761 = vmatprep.subr.msk.bf16.mxu0 %vm1562_vm2, %v7516_v43  ;;  %v7566_v61 = vsel %vm1562_vm2, %v7516_v43, 0  ;;  %4097 = vst.msk [vmem:[#allocation3 + $0x68] sm:$0xff] %vm1707_vm12, %v13489_v10  ;;  %v5809_v10 = vshll.u32 %v12137_v58, 16  ;;  %v12139_v57 = vld [vmem:[#allocation2 + $0xf8] ss:$0 sps:$4 sm:$0x33]   ;;  %v4043_v46 = vpop.permute.xlu0 %4042 }
 0x17b   : > { %11233 = vmatpush3.bf16.msra.mxu0 %v7566_v61  ;;  %3666 = vst.msk [vmem:[#allocation3 + $0x70] sm:$0xff] %vm1273_vm10, %v3600_v48  ;;  %v5799_v12 = vrot.slane %v5797_v49, 1  ;;  %v12140_v18 = vld [vmem:[#allocation2 + $0xf0] sm:$0xfc]   ;;  %v12150_v43 = vld [vmem:[#allocation2 + $0x9c] sm:$0xff]  }
 0x17c   : > { %4530 = vst.msk [vmem:[#allocation3 + $0x68] sm:$0xff] %vm2477_vm13, %v13507_v23  ;;  %v13571_v23 = vld [vmem:[#allocation3 + $0x60] sm:$0xff]  ;;  %v5811_v27 = vrot.slane %v5809_v10, 1  ;;  %v12141_v63 = vld [vmem:[#allocation2 + $0xf8] ss:$0 sps:$4 sm:$0x77]  }
 0x17d   : > { %4098 = vst.msk [vmem:[#allocation3 + $0x70] sm:$0xff] %vm1707_vm12, %v13493_v45  ;;  %v5800_v47 = vsel %vm5656_vm3, %v5795_v24, %v5799_v12  ;;  %v1624_v45 = vrot.slane %v12139_v57, 2  ;;  %v4045_v9 = vpop.permute.xlu1 %4044  ;;  %v2338_v36 = vshrl.u32 %v12140_v18, 16  ;;  %v2341_v15 = vshll.u32 %v12140_v18, 16  ;;  %v12142_v62 = vld [vmem:[#allocation2 + $0xb4] sm:$0xfe]  }
 0x17e   : > { %4531 = vst.msk [vmem:[#allocation3 + $0x70] sm:$0xff] %vm2477_vm13, %v13517_v32  ;;  %v5812_v31 = vsel %vm5656_vm3, %v5807_v59, %v5811_v27  ;;  %v2346_v34 = vshrl.u32 %v12141_v63, 16  ;;  %v2349_v3 = vshll.u32 %v12141_v63, 16  ;;  %v12143_v25 = vld [vmem:[#allocation2 + $0xbc] ss:$0 sps:$4 sm:$0x11]   ;;  %v4476_v61 = vpop.permute.xlu0 %4475 }
 0x17f   : > { %5980 = vst.msk [vmem:[#allocation3 + $0x58] sm:$0xff] %vm1273_vm10, %v5800_v47  ;;  %5981 = vst.msk [vmem:[#allocation3 + $0x60] sm:$0xff] %vm1273_vm10, %v5812_v31  ;;  %v1625_v32 = vsel %vm1562_vm2, %v1623_v6, %v1624_v45  ;;  %v2340_v51 = vrot.slane %v2338_v36, 2  ;;  %v2343_v40 = vrot.slane %v2341_v15, 3  ;;  %v3601_v8 = vrot.slane %v12142_v62, 1 }
 0x180   : > { %6412 = vst.msk [vmem:[#allocation3 + $0x58] sm:$0xff] %vm1707_vm12, %v6352_v4  ;;  %6413 = vst.msk [vmem:[#allocation3 + $0x60] sm:$0xff] %vm1707_vm12, %v6354_v55  ;;  %1675 = vrot.lane.b32.xlu0 %v1625_v32, %s12436_s5  ;;  %v2348_v4 = vrot.slane %v2346_v34, 2  ;;  %v2351_v42 = vrot.slane %v2349_v3, 3  ;;  %v3602_v7 = vrot.slane %v12143_v25, 1  ;;  %v5816_v58 = vshll.u32 %v12150_v43, 16 }
 0x181   : > { %7181 = vst.msk [vmem:[#allocation3 + $0x58] sm:$0xff] %vm2477_vm13, %v7121_v29  ;;  %7182 = vst.msk [vmem:[#allocation3 + $0x60] sm:$0xff] %vm2477_vm13, %v7123_v11  ;;  %v12144_v28 = vld [vmem:[#allocation2 + $0xc0] sm:$0xfe]   ;;  %v2344_v21 = vor.u32 %v2343_v40, %v2340_v51  ;;  %v13583_v55 = vld [vmem:[#allocation2 + $0xa8] sm:$0xff]   ;;  %v4478_v59 = vpop.permute.xlu1 %4477  ;;  %v5814_v10 = vshrl.u32 %v12150_v43, 16 }
 0x182   : > { %v12145_v48 = vld [vmem:[#allocation2 + $0xc8] ss:$0 sps:$4 sm:$0x11]   ;;  %v2352_v24 = vor.u32 %v2351_v42, %v2348_v4  ;;  %v3603_v29 = vsel %vm3555_vm14, %v3601_v8, %v3602_v7  ;;  %v3604_v49 = vrot.slane %v12144_v28, 1  ;;  %v12146_v11 = vld [vmem:[#allocation2 + $0xf0] sm:$0xfc]   ;;  %v6356_v36 = vpop.permute.xlu0 %6355 }
 0x183   : > { %3667 = vst.msk [vmem:[#allocation3 + $0x78] sm:$0xff] %vm1273_vm10, %v3603_v29  ;;  %v3605_v22 = vrot.slane %v12145_v48, 1  ;;  %v12147_v12 = vld [vmem:[#allocation2 + $0xf8] ss:$0 sps:$4 sm:$0x33]   ;;  %v4000_v6 = vrot.slane %v12146_v11, 2 }
 0x184   : > { %v2353_v57 = vsel %vm1996_vm8, %v2344_v21, %v2352_v24  ;;  %4099 = vst.msk [vmem:[#allocation3 + $0x78] sm:$0xff] %vm1707_vm12, %v4043_v46  ;;  %v4001_v47 = vrot.slane %v12147_v12, 2  ;;  %v12148_v18 = vld [vmem:[#allocation2 + $0xf0] sm:$0xf8]   ;;  %v5818_v63 = vrot.slane %v5816_v58, 1  ;;  %v5828_v34 = vshll.u32 %v13583_v55, 16 }
 0x185   : > { %2445 = vrot.lane.b32.xlu1 %v2353_v57, %s12435_s4  ;;  %v3606_v27 = vsel %vm3555_vm14, %v3604_v49, %v3605_v22  ;;  %4532 = vst.msk [vmem:[#allocation3 + $0x78] sm:$0xff] %vm2477_vm13, %v4476_v61  ;;  %v12149_v31 = vld [vmem:[#allocation2 + $0xf8] ss:$0 sps:$4 sm:$0x77]   ;;  %v4433_v15 = vrot.slane %v12148_v18, 3  ;;  %v13605_v22 = vld [vmem:[#allocation3 + $0x68] sm:$0xff] }
 0x186   : > { %3668 = vst.msk [vmem:[#allocation3 + $0x80] sm:$0xff] %vm1273_vm10, %v3606_v27  ;;  %v4002_v46 = vsel %vm1562_vm2, %v4000_v6, %v4001_v47  ;;  %v4434_v62 = vrot.slane %v12149_v31, 3  ;;  %v12151_v43 = vld [vmem:[#allocation2 + $0xa4] ss:$0 sps:$4 sm:$0x11]   ;;  %v5819_v40 = vor.u32 %v5818_v63, %v5814_v10  ;;  %v6358_v48 = vpop.permute.xlu0 %6357  ;;  %v13602_v58 = vld [vmem:[#allocation2 + $0xb4] sm:$0xff]  }
 0x187   : > { %4100 = vst.msk [vmem:[#allocation3 + $0x80] sm:$0xff] %vm1707_vm12, %v4045_v9  ;;  %4052 = vrot.lane.b32.xlu0 %v4002_v46, %s12436_s5  ;;  %v12152_v25 = vld [vmem:[#allocation2 + $0xcc] sm:$0xfe]   ;;  %v5821_v4 = vshll.u32 %v12151_v43, 16  ;;  %v12154_v21 = vld [vmem:[#allocation2 + $0xfc] sm:$0xfc]  }
 0x188   : > { %v7205_v45 = vld [vmem:[#allocation3 + $0x58] sm:$0xff]  ;;  %v7206_v32 = vld [vmem:[#allocation3 + $0x60] sm:$0xff]  ;;  %4533 = vst.msk [vmem:[#allocation3 + $0x80] sm:$0xff] %vm2477_vm13, %v4478_v59  ;;  %v4435_v51 = vsel %vm4372_vm1, %v4433_v15, %v4434_v62  ;;  %v12153_v9 = vld [vmem:[#allocation2 + $0xd4] ss:$0 sps:$4 sm:$0x33]  }
 0x189   : > { %11220 = vmatprep.mubr.msk.bf16.mxu0 %vm2562_vm15, %v7205_v45  ;;  %4485 = vrot.lane.b32.xlu1 %v4435_v51, %s12435_s4  ;;  %v1131_v8 = vshrl.u32 %v12152_v25, 16  ;;  %v1134_v42 = vshll.u32 %v12152_v25, 16  ;;  %v5823_v7 = vrot.slane %v5821_v4, 1  ;;  %v1139_v28 = vshrl.u32 %v12153_v9, 16  ;;  %v12156_v63 = vld [vmem:[#allocation2 + $0xfc] sm:$0xfc]  }
 0x18a   : > { %11221 = vmatmul.mubr.msk.bf16.gmra.mrb[20].mxu0 %vm2562_vm15, %v7206_v32  ;;  %v1142_v61 = vshll.u32 %v12153_v9, 16  ;;  %v12155_v49 = vld [vmem:[#allocation2 + $0x104] ss:$0 sps:$4 sm:$0x33]   ;;  %v5826_v59 = vshrl.u32 %v13583_v55, 16  ;;  %v1626_v57 = vrot.slane %v12154_v21, 2 }
 0x18b   : > { %v1133_v24 = vrot.slane %v1131_v8, 1  ;;  %v1136_v29 = vrot.slane %v1134_v42, 2  ;;  %v5824_v10 = vsel %vm5656_vm3, %v5819_v40, %v5823_v7  ;;  %v1141_v11 = vrot.slane %v1139_v28, 1  ;;  %v12157_v31 = vld [vmem:[#allocation2 + $0x104] ss:$0 sps:$4 sm:$0x77]  }
 0x18c   : > { %v1144_v12 = vrot.slane %v1142_v61, 2  ;;  %5982 = vst.msk [vmem:[#allocation3 + $0x68] sm:$0xff] %vm1273_vm10, %v5824_v10  ;;  %v1627_v47 = vrot.slane %v12155_v49, 2  ;;  %v5830_v45 = vrot.slane %v5828_v34, 1  ;;  %v5838_v55 = vshrl.u32 %v13602_v58, 16 }
 0x18d   : > { %v1137_v6 = vor.u32 %v1136_v29, %v1133_v24  ;;  %6414 = vst.msk [vmem:[#allocation3 + $0x68] sm:$0xff] %vm1707_vm12, %v6356_v36  ;;  %v2355_v15 = vshrl.u32 %v12156_v63, 16  ;;  %v2358_v62 = vshll.u32 %v12156_v63, 16  ;;  %v2363_v43 = vshrl.u32 %v12157_v31, 16  ;;  %v12160_v28 = vld [vmem:[#allocation2 + $0xfc] sm:$0xfc]  }
 0x18e   : > { %v1670_v3 = vpop.permute.xlu1 %1669  ;;  %v1145_v18 = vor.u32 %v1144_v12, %v1141_v11  ;;  %v1628_v32 = vsel %vm1562_vm2, %v1626_v57, %v1627_v47  ;;  %v12159_v25 = vld [vmem:[#allocation2 + $0xb0] ss:$0 sps:$4 sm:$0x11]   ;;  %v2366_v36 = vshll.u32 %v12157_v31, 16  ;;  %v5831_v51 = vor.u32 %v5830_v45, %v5826_v59  ;;  %v12162_v12 = vld [vmem:[#allocation2 + $0xfc] sm:$0xf8]  }
 0x18f   : > { %1677 = vrot.lane.b32.xlu0 %v1628_v32, %s12436_s5  ;;  %v5840_v40 = vshll.u32 %v13602_v58, 16  ;;  %v2357_v4 = vrot.slane %v2355_v15, 2  ;;  %v2360_v9 = vrot.slane %v2358_v62, 3  ;;  %v2365_v8 = vrot.slane %v2363_v43, 2  ;;  %v13619_v29 = vld [vmem:[#allocation3 + $0x70] sm:$0xff] }
 0x190   : > { %v1146_v46 = vsel %vm840_vm11, %v1137_v6, %v1145_v18  ;;  %v5833_v42 = vshll.u32 %v12159_v25, 16  ;;  %v2368_v7 = vrot.slane %v2366_v36, 3  ;;  %v12161_v61 = vld [vmem:[#allocation2 + $0x104] ss:$0 sps:$4 sm:$0x33]   ;;  %v4003_v59 = vrot.slane %v12160_v28, 2 }
 0x191   : > { %1291 = vst.msk [vmem:[#allocation3 + $0x88] sm:$0xff] %vm1273_vm10, %v1146_v46  ;;  %v2361_v21 = vor.u32 %v2360_v9, %v2357_v4  ;;  %v4004_v11 = vrot.slane %v12161_v61, 2  ;;  %v12163_v57 = vld [vmem:[#allocation2 + $0x104] ss:$0 sps:$4 sm:$0x77]   ;;  %v4436_v45 = vrot.slane %v12162_v12, 3 }
 0x192   : > { %v7125_v27 = vpop.permute.xlu1 %7124  ;;  %1725 = vst.msk [vmem:[#allocation3 + $0x88] sm:$0xff] %vm1707_vm12, %v1670_v3  ;;  %v5835_v24 = vrot.slane %v5833_v42, 1  ;;  %v2369_v10 = vor.u32 %v2368_v7, %v2365_v8  ;;  %v5842_v18 = vrot.slane %v5840_v40, 1  ;;  %v4437_v63 = vrot.slane %v12163_v57, 3  ;;  %v12164_v31 = vld [vmem:[#allocation2 + $0xf0] sm:$0xfc]  }
 0x193   : > { %7183 = vst.msk [vmem:[#allocation3 + $0x68] sm:$0xff] %vm2477_vm13, %v7125_v27  ;;  %v2440_v34 = vpop.permute.xlu0 %2439  ;;  %v4005_v47 = vsel %vm1562_vm2, %v4003_v59, %v4004_v11  ;;  %v12165_v32 = vld [vmem:[#allocation2 + $0xf8] ss:$0 sps:$4 sm:$0x33]   ;;  %v6317_v15 = vrot.slane %v12164_v31, 2  ;;  %v13641_v7 = vld [vmem:[#allocation2 + $0xc0] sm:$0xff]  }
 0x194   : > { %2495 = vst.msk [vmem:[#allocation3 + $0x88] sm:$0xff] %vm2477_vm13, %v2440_v34  ;;  %v5836_v3 = vsel %vm5656_vm3, %v5831_v51, %v5835_v24  ;;  %v2370_v6 = vsel %vm1996_vm8, %v2361_v21, %v2369_v10  ;;  %4054 = vrot.lane.b32.xlu0 %v4005_v47, %s12436_s5  ;;  %v4438_v46 = vsel %vm4372_vm1, %v4436_v45, %v4437_v63  ;;  %v6318_v62 = vrot.slane %v12165_v32, 2  ;;  %v12166_v43 = vld [vmem:[#allocation2 + $0xf0] sm:$0xf8]   ;;  %v12167_v25 = vld [vmem:[#allocation2 + $0xf8] ss:$0 sps:$4 sm:$0xff]  }
 0x195   : > { %5983 = vst.msk [vmem:[#allocation3 + $0x70] sm:$0xff] %vm1273_vm10, %v5836_v3  ;;  %2447 = vrot.lane.b32.xlu1 %v2370_v6, %s12435_s4  ;;  %v7031_v51 = vshrl.u32 %v12166_v43, 16  ;;  %v7039_v40 = vshrl.u32 %v12167_v25, 16  ;;  %v12168_v4 = vld [vmem:[#allocation2 + $0xd8] sm:$0xfe]   ;;  %v7042_v8 = vshll.u32 %v12167_v25, 16 }
 0x196   : > { %v7127_v49 = vpop.permute.xlu1 %7126  ;;  %6415 = vst.msk [vmem:[#allocation3 + $0x70] sm:$0xff] %vm1707_vm12, %v6358_v48  ;;  %v6319_v36 = vsel %vm1562_vm2, %v6317_v15, %v6318_v62  ;;  %v7034_v48 = vshll.u32 %v12166_v43, 16  ;;  %v12169_v42 = vld [vmem:[#allocation2 + $0xe0] ss:$0 sps:$4 sm:$0x33]   ;;  %v1148_v24 = vshrl.u32 %v12168_v4, 16  ;;  %v5843_v15 = vor.u32 %v5842_v18, %v5838_v55 }
 0x197   : > { %7184 = vst.msk [vmem:[#allocation3 + $0x70] sm:$0xff] %vm2477_vm13, %v7127_v49  ;;  %v7033_v28 = vrot.slane %v7031_v51, 3  ;;  %v7041_v21 = vrot.slane %v7039_v40, 3  ;;  %v7044_v10 = vrot.slane %v7042_v8, 4  ;;  %v1151_v59 = vshll.u32 %v12168_v4, 16  ;;  %v13653_v8 = vld [vmem:[#allocation3 + $0x78] sm:$0xff] }
 0x198   : > { %6369 = vrot.lane.b32.xlu0 %v6319_v36, %s12436_s5  ;;  %v7036_v61 = vrot.slane %v7034_v48, 4  ;;  %v1156_v11 = vshrl.u32 %v12169_v42, 16  ;;  %v1159_v12 = vshll.u32 %v12169_v42, 16  ;;  %v1150_v57 = vrot.slane %v1148_v24, 1  ;;  %v12172_v43 = vld [vmem:[#allocation2 + $0x108] sm:$0xfc]  }
 0x199   : > { %4487 = vrot.lane.b32.xlu1 %v4438_v46, %s12435_s4  ;;  %v12171_v6 = vld [vmem:[#allocation2 + $0xbc] ss:$0 sps:$4 sm:$0x11]   ;;  %v7045_v45 = vor.u32 %v7044_v10, %v7041_v21  ;;  %v1153_v63 = vrot.slane %v1151_v59, 2  ;;  %v5850_v25 = vshrl.u32 %v13641_v7, 16  ;;  %v5852_v4 = vshll.u32 %v13641_v7, 16 }
 0x19a   : > { %v13622_v27 = vld [vmem:[#allocation3 + $0x68] sm:$0xff]  ;;  %v6360_v34 = vpop.permute.xlu1 %6359  ;;  %v7037_v3 = vor.u32 %v7036_v61, %v7033_v28  ;;  %v1158_v31 = vrot.slane %v1156_v11, 1  ;;  %v1161_v32 = vrot.slane %v1159_v12, 2  ;;  %v5845_v62 = vshll.u32 %v12171_v6, 16  ;;  %14667 = vst [vmem:[#allocation7_spill] sm:$0xff] %v13653_v8 }
 0x19b   : > { %11224 = vmatprep.mubr.msk.bf16.mxu0 %vm2562_vm15, %v13622_v27  ;;  %v13636_v9 = vld [vmem:[#allocation3 + $0x88] sm:$0xff]  ;;  %v1154_v51 = vor.u32 %v1153_v63, %v1150_v57  ;;  %v12173_v40 = vld [vmem:[#allocation2 + $0x110] ss:$0 sps:$4 sm:$0x33]   ;;  %v1629_v55 = vrot.slane %v12172_v43, 2 }
 0x19c   : > { %11021 = vmatmul.mubr.msk.bf16.gmra.mrb[24].mxu1 %vm2562_vm15, %v13636_v9  ;;  %v7046_v36 = vsel %vm6689_vm9, %v7037_v3, %v7045_v45  ;;  %v1162_v48 = vor.u32 %v1161_v32, %v1158_v31  ;;  %v5847_v58 = vrot.slane %v5845_v62, 1  ;;  %v1630_v28 = vrot.slane %v12173_v40, 2  ;;  %v12174_v61 = vld [vmem:[#allocation2 + $0x108] sm:$0xfc]  }
 0x19d   : > { %7138 = vrot.lane.b32.xlu1 %v7046_v36, %s12435_s4  ;;  %v12175_v21 = vld [vmem:[#allocation2 + $0x110] ss:$0 sps:$4 sm:$0x77]   ;;  %v2372_v11 = vshrl.u32 %v12174_v61, 16  ;;  %v2375_v12 = vshll.u32 %v12174_v61, 16 }
 0x19e   : > { %v13643_v46 = vld [vmem:[#allocation3 + $0x70] sm:$0xff]  ;;  %v1163_v42 = vsel %vm840_vm11, %v1154_v51, %v1162_v48  ;;  %v5848_v24 = vsel %vm5656_vm3, %v5843_v15, %v5847_v58  ;;  %v1631_v59 = vsel %vm1562_vm2, %v1629_v55, %v1630_v28  ;;  %v2380_v3 = vshrl.u32 %v12175_v21, 16  ;;  %v12176_v57 = vld [vmem:[#allocation2 + $0xe4] sm:$0xfe]  }
 0x19f   : > { %11225 = vmatmul.mubr.msk.bf16.gmra.mrb[24].mxu0 %vm2562_vm15, %v13643_v46  ;;  %1292 = vst.msk [vmem:[#allocation3 + $0x90] sm:$0xff] %vm1273_vm10, %v1163_v42  ;;  %5984 = vst.msk [vmem:[#allocation3 + $0x78] sm:$0xff] %vm1273_vm10, %v5848_v24  ;;  %1679 = vrot.lane.b32.xlu0 %v1631_v59, %s12436_s5  ;;  %v2383_v6 = vshll.u32 %v12175_v21, 16  ;;  %v12177_v45 = vld [vmem:[#allocation2 + $0xec] ss:$0 sps:$4 sm:$0x33]  }
 0x1a0   : > { %6416 = vst.msk [vmem:[#allocation3 + $0x78] sm:$0xff] %vm1707_vm12, %v6360_v34  ;;  %v2374_v63 = vrot.slane %v2372_v11, 2  ;;  %v2377_v31 = vrot.slane %v2375_v12, 3  ;;  %v2382_v32 = vrot.slane %v2380_v3, 2  ;;  %v1168_v62 = vshll.u32 %v12176_v57, 16 }
 0x1a1   : > { %v2385_v15 = vrot.slane %v2383_v6, 3  ;;  %v1173_v43 = vshrl.u32 %v12177_v45, 16  ;;  %v1176_v36 = vshll.u32 %v12177_v45, 16  ;;  %v12178_v34 = vld [vmem:[#allocation2 + $0x108] sm:$0xfc]   ;;  %v5854_v3 = vrot.slane %v5852_v4, 1 }
 0x1a2   : > { %v2378_v48 = vor.u32 %v2377_v31, %v2374_v63  ;;  %v12179_v58 = vld [vmem:[#allocation2 + $0x110] ss:$0 sps:$4 sm:$0x33]   ;;  %v1170_v42 = vrot.slane %v1168_v62, 2 }
 0x1a3   : > { %v1672_v49 = vpop.permute.xlu0 %1671  ;;  %v2386_v55 = vor.u32 %v2385_v15, %v2382_v32  ;;  %v1175_v28 = vrot.slane %v1173_v43, 1  ;;  %v1178_v61 = vrot.slane %v1176_v36, 2  ;;  %v4007_v21 = vrot.slane %v12179_v58, 2  ;;  %v12181_v12 = vld [vmem:[#allocation2 + $0x8] ss:$0 sps:$4 sm:$0x33]  }
 0x1a4   : > { %1726 = vst.msk [vmem:[#allocation3 + $0x90] sm:$0xff] %vm1707_vm12, %v1672_v49  ;;  %v1165_v49 = vshrl.u32 %v12176_v57, 16  ;;  %v1564_v63 = vrot.slane %v12181_v12, 2  ;;  %v12183_v31 = vld [vmem:[#allocation2 + $0xc8] ss:$0 sps:$4 sm:$0x11]   ;;  %v5855_v15 = vor.u32 %v5854_v3, %v5850_v25 }
 0x1a5   : > { %v2387_v24 = vsel %vm1996_vm8, %v2378_v48, %v2386_v55  ;;  %v1179_v11 = vor.u32 %v1178_v61, %v1175_v28  ;;  %v5857_v62 = vshll.u32 %v12183_v31, 16  ;;  %v12184_v43 = vld [vmem:[#allocation2 + $0x108] sm:$0xf8]   ;;  %v12185_v36 = vld [vmem:[#allocation2 + $0x110] ss:$0 sps:$4 sm:$0x77]  }
 0x1a6   : > { %v1167_v40 = vrot.slane %v1165_v49, 1  ;;  %2449 = vrot.lane.b32.xlu1 %v2387_v24, %s12435_s4  ;;  %v12186_v58 = vld [vmem:[#allocation2] sm:$0xfc]   ;;  %v12190_v31 = vld [vmem:[#allocation2 + $0x108] sm:$0xfc]  }
 0x1a7   : > { %v5859_v48 = vrot.slane %v5857_v62, 1  ;;  %v1998_v28 = vshrl.u32 %v12186_v58, 16  ;;  %v2001_v61 = vshll.u32 %v12186_v58, 16  ;;  %v12189_v12 = vld [vmem:[#allocation2 + $0x104] ss:$0 sps:$4 sm:$0x33]  }
 0x1a8   : > { %v1171_v59 = vor.u32 %v1170_v42, %v1167_v40  ;;  %v4439_v40 = vrot.slane %v12184_v43, 3  ;;  %v13683_v42 = vld [vmem:[#allocation3 + $0x80] sm:$0xff]  ;;  %v6323_v62 = vrot.slane %v12190_v31, 2 }
 0x1a9   : > { %v2442_v47 = vpop.permute.xlu1 %2441  ;;  %14668 = vst [vmem:[#allocation8_spill] sm:$0xff] %v13683_v42  ;;  %v5860_v7 = vsel %vm5656_vm3, %v5855_v15, %v5859_v48  ;;  %v12191_v15 = vld [vmem:[#allocation2 + $0x110] ss:$0 sps:$4 sm:$0x33]   ;;  %v12192_v48 = vld [vmem:[#allocation2 + $0xfc] sm:$0xf8]  }
 0x1aa   : > { %v1674_v18 = vpop.permute.xlu0 %1673  ;;  %2496 = vst.msk [vmem:[#allocation3 + $0x90] sm:$0xff] %vm2477_vm13, %v2442_v47  ;;  %v4006_v47 = vrot.slane %v12178_v34, 2  ;;  %v1180_v6 = vsel %vm840_vm11, %v1171_v59, %v1179_v11  ;;  %v4440_v34 = vrot.slane %v12185_v36, 3  ;;  %v12188_v59 = vld [vmem:[#allocation2 + $0xfc] sm:$0xfc]   ;;  %v2000_v11 = vrot.slane %v1998_v28, 2 }
 0x1ab   : > { %1293 = vst.msk [vmem:[#allocation3 + $0x98] sm:$0xff] %vm1273_vm10, %v1180_v6  ;;  %5985 = vst.msk [vmem:[#allocation3 + $0x80] sm:$0xff] %vm1273_vm10, %v5860_v7  ;;  %v6320_v6 = vrot.slane %v12188_v59, 2  ;;  %v6324_v36 = vrot.slane %v12191_v15, 2  ;;  %v7048_v58 = vshrl.u32 %v12192_v48, 16 }
 0x1ac   : > { %v4008_v57 = vsel %vm1562_vm2, %v4006_v47, %v4007_v21  ;;  %1727 = vst.msk [vmem:[#allocation3 + $0x98] sm:$0xff] %vm1707_vm12, %v1674_v18  ;;  %v12187_v18 = vld [vmem:[#allocation2 + $0x8] ss:$0 sps:$4 sm:$0x77]   ;;  %v4441_v25 = vsel %vm4372_vm1, %v4439_v40, %v4440_v34  ;;  %v12193_v40 = vld [vmem:[#allocation2 + $0x104] ss:$0 sps:$4 sm:$0xff]  }
 0x1ad   : > { %4056 = vrot.lane.b32.xlu0 %v4008_v57, %s12436_s5  ;;  %v2006_v21 = vshrl.u32 %v12187_v18, 16  ;;  %v2009_v24 = vshll.u32 %v12187_v18, 16  ;;  %v6325_v34 = vsel %vm1562_vm2, %v6323_v62, %v6324_v36  ;;  %v7051_v18 = vshll.u32 %v12192_v48, 16  ;;  %v12198_v62 = vld [vmem:[#allocation2] sm:$0xf8]  }
 0x1ae   : > { %v7129_v10 = vpop.permute.xlu1 %7128  ;;  %v6362_v51 = vpop.permute.xlu0 %6361  ;;  %v7056_v7 = vshrl.u32 %v12193_v40, 16  ;;  %v7059_v28 = vshll.u32 %v12193_v40, 16  ;;  %v12199_v48 = vld [vmem:[#allocation2 + $0x8] ss:$0 sps:$4 sm:$0x77]  }
 0x1af   : > { %7185 = vst.msk [vmem:[#allocation3 + $0x78] sm:$0xff] %vm2477_vm13, %v7129_v10  ;;  %v12180_v10 = vld [vmem:[#allocation2] sm:$0xfc]   ;;  %v2008_v3 = vrot.slane %v2006_v21, 2  ;;  %v2011_v57 = vrot.slane %v2009_v24, 3  ;;  %v7053_v21 = vrot.slane %v7051_v18, 4 }
 0x1b0   : > { %v1563_v45 = vrot.slane %v12180_v10, 2  ;;  %6417 = vst.msk [vmem:[#allocation3 + $0x80] sm:$0xff] %vm1707_vm12, %v6362_v51  ;;  %v2003_v10 = vrot.slane %v2001_v61, 3  ;;  %v12195_v61 = vld [vmem:[#allocation2 + $0x8] ss:$0 sps:$4 sm:$0x33]  }
 0x1b1   : > { %v13670_v49 = vld [vmem:[#allocation3 + $0x90] sm:$0xff]  ;;  %4489 = vrot.lane.b32.xlu0 %v4441_v25, %s12435_s4  ;;  %v12194_v25 = vld [vmem:[#allocation2] sm:$0xfc]   ;;  %v7061_v59 = vrot.slane %v7059_v28, 4 }
 0x1b2   : > { %v2444_v32 = vpop.permute.xlu0 %2443  ;;  %11024 = vmatprep.mubr.msk.bf16.mxu1 %vm2562_vm15, %v13670_v49  ;;  %v1565_v4 = vsel %vm1562_vm2, %v1563_v45, %v1564_v63  ;;  %v2004_v45 = vor.u32 %v2003_v10, %v2000_v11  ;;  %v6321_v63 = vrot.slane %v12189_v12, 2  ;;  %v3940_v24 = vrot.slane %v12194_v25, 2  ;;  %v12196_v10 = vld [vmem:[#allocation2 + $0x108] sm:$0xf8]   ;;  %v7478_v12 = vld [vmem:[#allocation3 + $0x20] sm:$0xff] }
 0x1b3   : > { %1635 = vrot.lane.b32.xlu1 %v1565_v4, %s12436_s5  ;;  %2497 = vst.msk [vmem:[#allocation3 + $0x98] sm:$0xff] %vm2477_vm13, %v2444_v32  ;;  %v7131_v47 = vpop.permute.xlu1 %7130  ;;  %v2012_v4 = vor.u32 %v2011_v57, %v2008_v3  ;;  %v3941_v11 = vrot.slane %v12195_v61, 2  ;;  %v12197_v57 = vld [vmem:[#allocation2 + $0x110] ss:$0 sps:$4 sm:$0xff]   ;;  %v7065_v31 = vshrl.u32 %v12196_v10, 16 }
 0x1b4   : > { %7186 = vst.msk [vmem:[#allocation3 + $0x80] sm:$0xff] %vm2477_vm13, %v7131_v47  ;;  %v6322_v51 = vsel %vm1562_vm2, %v6320_v6, %v6321_v63  ;;  %v7050_v47 = vrot.slane %v7048_v58, 3  ;;  %v7073_v15 = vshrl.u32 %v12197_v57, 16  ;;  %v4373_v58 = vrot.slane %v12198_v62, 3  ;;  %v12200_v25 = vld [vmem:[#allocation2] sm:$0xfc]  }
 0x1b5   : > { %v2013_v43 = vsel %vm1996_vm8, %v2004_v45, %v2012_v4  ;;  %6371 = vrot.lane.b32.xlu0 %v6322_v51, %s12436_s5  ;;  %v3942_v63 = vsel %vm1562_vm2, %v3940_v24, %v3941_v11  ;;  %v7068_v4 = vshll.u32 %v12196_v10, 16  ;;  %v7076_v51 = vshll.u32 %v12197_v57, 16  ;;  %v12201_v61 = vld [vmem:[#allocation2 + $0x8] ss:$0 sps:$4 sm:$0x33]  }
 0x1b6   : > { %v13681_v55 = vld [vmem:[#allocation3 + $0x78] sm:$0xff]  ;;  %v7054_v3 = vor.u32 %v7053_v21, %v7050_v47  ;;  %v7075_v40 = vrot.slane %v7073_v15, 3  ;;  %v6257_v21 = vrot.slane %v12200_v25, 2  ;;  %v12202_v11 = vld [vmem:[#allocation2] sm:$0xf8]  }
 0x1b7   : > { %11228 = vmatprep.mubr.msk.bf16.mxu0 %vm2562_vm15, %v13681_v55  ;;  %2405 = vrot.lane.b32.xlu1 %v2013_v43, %s12435_s4  ;;  %v7070_v36 = vrot.slane %v7068_v4, 4  ;;  %v12203_v10 = vld [vmem:[#allocation2 + $0x8] ss:$0 sps:$4 sm:$0xff]   ;;  %v10200_v57 = vld [vmem:[%s14655_s1 + $0xe] sm:$0x3]  ;;  %v6694_v4 = vshll.u32 %v12202_v11, 16 }
 0x1b8   : > { %v6699_v15 = vshrl.u32 %v12203_v10, 16  ;;  %v6702_v62 = vshll.u32 %v12203_v10, 16  ;;  %v12232_v42 = vld [vmem:[#allocation2 + $0xe4] sm:$0xfe]  }
 0x1ba   : > { %v13693_v32 = vld [vmem:[#allocation3 + $0x98] sm:$0xff] }
 0x1bb   : > { %11025 = vmatmul.mubr.msk.bf16.gmra.mrb[28].mxu1 %vm2562_vm15, %v13693_v32  ;;  %6373 = vrot.lane.b32.xlu1 %v6325_v34, %s12436_s5  ;;  %v13705_v6 = vld [vmem:[#allocation3 + $0x80] sm:$0xff]  ;;  %v7078_v34 = vrot.slane %v7076_v51, 4  ;;  %v10608_v51 = vld [vmem:[%s14655_s1 + $0x32] sm:$0x3] }
 0x1bc   : > { %11030 = vmatprep.mubr.msk.bf16.mxu1 %vm2562_vm15, %v12946_v20  ;;  %v7058_v20 = vrot.slane %v7056_v7, 3  ;;  %11229 = vmatmul.mubr.msk.bf16.gmra.mrb[28].mxu0 %vm2562_vm15, %v13705_v6  ;;  %v4374_v7 = vrot.slane %v12199_v48, 3 }
 0x1bd   : > { %11234 = vmatprep.mubr.msk.bf16.mxu0 %vm2562_vm15, %v7478_v12  ;;  %v7079_v28 = vor.u32 %v7078_v34, %v7075_v40  ;;  %v7480_v12 = vld [vmem:[#allocation3 + $0x30] sm:$0xff]  ;;  %v6696_v40 = vrot.slane %v6694_v4, 4  ;;  %v6701_v34 = vrot.slane %v6699_v15, 3 }
 0x1be   : > { %v7062_v45 = vor.u32 %v7061_v59, %v7058_v20  ;;  %v4375_v47 = vsel %vm4372_vm1, %v4373_v58, %v4374_v7  ;;  %v7479_v20 = vld [vmem:[#allocation3 + $0x28] sm:$0xff]  ;;  %v6258_v59 = vrot.slane %v12201_v61, 2  ;;  %v6704_v58 = vrot.slane %v6702_v62, 4  ;;  %v12204_v61 = vld [vmem:[#allocation2] sm:$0xfc]  }
 0x1bf   : > { %4012 = vrot.lane.b32.xlu1 %v3942_v63, %s12436_s5  ;;  %v10610_v7 = vld.sshfl [vmem:[%s14655_s1 + $0x34] sm:$0x3 pattern:$0x76325410] }
 0x1c0   : > { %v7063_v43 = vsel %vm6689_vm9, %v7054_v3, %v7062_v45  ;;  %v10199_v3 = vld [vmem:[%s14655_s1 + $0xc] sm:$0x3]  ;;  %v10607_v45 = vld [vmem:[%s14655_s1 + $0x30] sm:$0x3]  ;;  %v6259_v63 = vsel %vm1562_vm2, %v6257_v21, %v6258_v59  ;;  %v8525_v59 = vrot.slane %v12204_v61, 2 }
 0x1c1   : > { %7140 = vrot.lane.b32.xlu0 %v7063_v43, %s12435_s4  ;;  %v10202_v43 = vld.sshfl [vmem:[%s14655_s1 + $0x10] sm:$0x3 pattern:$0x76325410] }
 0x1c3   : > { %11031 = vmatmul.mubr.msk.bf16.vlgmr.msra.gmra.mrb[0].mxu1 %vm2562_vm15, %v12991_v1  ;;  %v7067_v1 = vrot.slane %v7065_v31, 3  ;;  %4445 = vrot.lane.b32.xlu1 %v4375_v47, %s12435_s4  ;;  %v6691_v31 = vshrl.u32 %v12202_v11, 16  ;;  %v6705_v47 = vor.u32 %v6704_v58, %v6701_v34 }
 0x1c4   : > { %11034 = vmatprep.mubr.msk.bf16.mxu1 %vm2562_vm15, %v13043_v60  ;;  %11235 = vmatmul.mubr.msk.bf16.vlgmr.msra.gmra.mrb[0].mxu0 %vm2562_vm15, %v7479_v20 }
 0x1c5   : > { %v7071_v18 = vor.u32 %v7070_v36, %v7067_v1  ;;  %11238 = vmatprep.mubr.msk.bf16.mxu0 %vm2562_vm15, %v7480_v12  ;;  %v3031_v1 = vcombine.low %v10199_v3, %v10200_v57  ;;  %v7785_v36 = vcombine.low %v10607_v45, %v10608_v51  ;;  %v6693_v48 = vrot.slane %v6691_v31, 3  ;;  %v12206_v57 = vld [vmem:[#allocation2 + $0xc] sm:$0xfc]   ;;  %v13757_v45 = vld [vmem:[#allocation3 + $0x38] sm:$0xff]  ;;  %v13760_v31 = vld [vmem:[#allocation3 + $0x40] sm:$0xff] }
 0x1c6   : > { %v8528_v15 = vrot.slane %v12206_v57, 2  ;;  %v12208_v51 = vld [vmem:[#allocation2 + $0x4] sm:$0xff]  }
 0x1c7   : > { %v7080_v24 = vsel %vm6689_vm9, %v7071_v18, %v7079_v28  ;;  %v3038_v18 = vrot.slane %v3031_v1, %v13027_v35  ;;  %v7792_v25 = vrot.slane %v7785_v36, %v13027_v35  ;;  %v6697_v28 = vor.u32 %v6696_v40, %v6693_v48  ;;  %v12210_v1 = vld [vmem:[#allocation2 + $0x18] sm:$0xfc]   ;;  %v12209_v48 = vld [vmem:[#allocation2 + $0x10] sm:$0xff]   ;;  %v12211_v40 = vld [vmem:[#allocation2 + $0x20] ss:$0 sps:$4 sm:$0x33]  }
 0x1c8   : > { %7142 = vrot.lane.b32.xlu0 %v7080_v24, %s12435_s4  ;;  %v12205_v24 = vld [vmem:[#allocation2 + $0x8] ss:$0 sps:$4 sm:$0x33]   ;;  %v8531_v34 = vrot.slane %v12210_v1, 2 }
 0x1c9   : > { %v3046_v21 = vcombine.low %v3038_v18, %v10202_v43  ;;  %v7800_v20 = vcombine.low %v7792_v25, %v10610_v7  ;;  %v6706_v11 = vsel %vm6689_vm9, %v6697_v28, %v6705_v47  ;;  %v8526_v10 = vrot.slane %v12205_v24, 2  ;;  %v13768_v43 = vld [vmem:[#allocation2 + $0xcc] sm:$0xff]   ;;  %v12212_v7 = vld [vmem:[#allocation2 + $0x24] sm:$0xfc]  }
 0x1ca   : > { %7098 = vrot.lane.b32.xlu1 %v6706_v11, %s12435_s4  ;;  %v8532_v18 = vrot.slane %v12211_v40, 2  ;;  %v12213_v25 = vld [vmem:[#allocation2 + $0x2c] ss:$0 sps:$4 sm:$0x33]   ;;  %v8534_v47 = vrot.slane %v12212_v7, 2  ;;  %v13783_v24 = vld [vmem:[#allocation3 + $0x50] sm:$0xff] }
 0x1cb   : > { %11035 = vmatmul.mubr.msk.bf16.gmra.mrb[4].mxu1 %vm2562_vm15, %v13046_v0  ;;  %11756 = vmatprep.subr.msk.bf16.mxu1 %vm1562_vm2, %v3046_v21  ;;  %v3096_v12 = vsel %vm1562_vm2, %v3046_v21, 0  ;;  %v7850_v3 = vsel %vm1562_vm2, %v7800_v20, 0  ;;  %v8527_v4 = vsel %vm1562_vm2, %v8525_v59, %v8526_v10  ;;  %v13778_v28 = vld [vmem:[#allocation3 + $0x48] sm:$0xff]  ;;  %v8535_v21 = vrot.slane %v12213_v25, 2  ;;  %v12216_v59 = vld [vmem:[#allocation2 + $0x30] sm:$0xfc]  }
 0x1cc   : > { %11038 = vmatprep.mubr.msk.bf16.mxu1 %vm2562_vm15, %v13132_v41  ;;  %6329 = vrot.lane.b32.xlu0 %v6259_v63, %s12436_s5  ;;  %v12207_v63 = vld [vmem:[#allocation2 + $0x14] ss:$0 sps:$4 sm:$0x33]   ;;  %v8533_v61 = vsel %vm1562_vm2, %v8531_v34, %v8532_v18  ;;  %v12217_v10 = vld [vmem:[#allocation2 + $0x38] ss:$0 sps:$4 sm:$0x33]  }
 0x1cd   : > { %11762 = vmatprep.subr.msk.bf16.mxu0 %vm1562_vm2, %v7800_v20  ;;  %11063 = vmatpush3.bf16.msra.mxu1 %v3096_v12  ;;  %v8529_v62 = vrot.slane %v12207_v63, 2  ;;  %v12214_v20 = vld [vmem:[#allocation2 + $0x1c] sm:$0xff]   ;;  %v8536_v11 = vsel %vm1562_vm2, %v8534_v47, %v8535_v21  ;;  %v4047_v12 = vpop.permute.xlu0 %4046  ;;  %v12215_v57 = vld [vmem:[#allocation2 + $0x28] sm:$0xff]   ;;  %v8537_v63 = vrot.slane %v12216_v59, 2  ;;  %v12220_v18 = vld [vmem:[#allocation2 + $0x34] sm:$0xff]  }
 0x1ce   : > { %11267 = vmatpush3.bf16.msra.mxu0 %v7850_v3  ;;  %v5864_v3 = vshll.u32 %v13768_v43, 16  ;;  %v12222_v40 = vld [vmem:[#allocation2 + $0x48] sm:$0xfc]   ;;  %v13800_v34 = vld [vmem:[#allocation3 + $0x58] sm:$0xff]  ;;  %v13804_v25 = vld [vmem:[#allocation3 + $0x60] sm:$0xff] }
 0x1cf   : > { %11239 = vmatmul.mubr.msk.bf16.gmra.mrb[4].mxu0 %vm2562_vm15, %v13757_v45  ;;  %v8530_v36 = vsel %vm1562_vm2, %v8528_v15, %v8529_v62  ;;  %v8538_v15 = vrot.slane %v12217_v10, 2  ;;  %v12219_v62 = vld [vmem:[#allocation2 + $0x44] ss:$0 sps:$4 sm:$0x33]   ;;  %v8543_v21 = vrot.slane %v12222_v40, 2 }
 0x1d0   : > { %8597 = vrot.lane.b32.xlu0 %v8527_v4, %s12436_s5  ;;  %11242 = vmatprep.mubr.msk.bf16.mxu0 %vm2562_vm15, %v13760_v31  ;;  %v13793_v4 = vld [vmem:[#allocation2 + $0xd8] sm:$0xff]   ;;  %v12223_v7 = vld [vmem:[#allocation2 + $0x50] ss:$0 sps:$4 sm:$0x33]   ;;  %v13808_v47 = vrot.slane %v5864_v3, 1  ;;  %v12221_v3 = vld [vmem:[#allocation2 + $0x40] sm:$0xff]  }
 0x1d1   : > { %8599 = vrot.lane.b32.xlu1 %v8530_v36, %s12436_s5  ;;  %v8541_v36 = vrot.slane %v12219_v62, 2  ;;  %v5876_v59 = vshll.u32 %v13793_v4, 16  ;;  %v8544_v10 = vrot.slane %v12223_v7, 2  ;;  %v12226_v40 = vld [vmem:[#allocation2 + $0x54] sm:$0xfc]  }
 0x1d2   : > { %v8546_v7 = vrot.slane %v12226_v40, 2 }
 0x1d3   : > { %11039 = vmatmul.mubr.msk.bf16.gmra.mrb[8].mxu1 %vm2562_vm15, %v13144_v52  ;;  %v13832_v40 = vrot.slane %v5876_v59, 1  ;;  %v12231_v59 = vld [vmem:[#allocation2 + $0x58] sm:$0xff]  }
 0x1d4   : > { %11042 = vmatprep.mubr.msk.bf16.mxu1 %vm2562_vm15, %v13280_v26  ;;  %8861 = vrot.lane.b32.xlu0 %v12208_v51, %s12435_s4  ;;  %v12218_v51 = vld [vmem:[#allocation2 + $0x3c] sm:$0xfc]  }
 0x1d5   : > { %8863 = vrot.lane.b32.xlu1 %v12209_v48, %s12435_s4  ;;  %v8540_v1 = vrot.slane %v12218_v51, 2  ;;  %v8539_v48 = vsel %vm1562_vm2, %v8537_v63, %v8538_v15  ;;  %v12224_v63 = vld [vmem:[#allocation2 + $0xcc] sm:$0xfe]   ;;  %v12225_v15 = vld [vmem:[#allocation2 + $0xd4] ss:$0 sps:$4 sm:$0x11]  }
 0x1d6   : > { %v13816_v51 = vld [vmem:[#allocation2 + $0xe4] sm:$0xff]   ;;  %v3608_v62 = vrot.slane %v12225_v15, 1 }
 0x1d7   : > { %11243 = vmatmul.mubr.msk.bf16.gmra.mrb[8].mxu0 %vm2562_vm15, %v13778_v28 }
 0x1d8   : > { %8601 = vrot.lane.b32.xlu0 %v8533_v61, %s12436_s5  ;;  %11246 = vmatprep.mubr.msk.bf16.mxu0 %vm2562_vm15, %v13783_v24  ;;  %v13806_v61 = vpop.permute.xlu0 %4048 }
 0x1d9   : > { %8603 = vrot.lane.b32.xlu1 %v8536_v11, %s12436_s5  ;;  %v8542_v11 = vsel %vm1562_vm2, %v8540_v1, %v8541_v36  ;;  %v12233_v1 = vld [vmem:[#allocation2 + $0xec] ss:$0 sps:$4 sm:$0x11]  }
 0x1db   : > { %11043 = vmatmul.mubr.msk.bf16.gmra.mrb[12].mxu1 %vm2562_vm15, %v13291_v2 }
 0x1dc   : > { %11046 = vmatprep.mubr.msk.bf16.mxu1 %vm2562_vm15, %v13398_v19  ;;  %8865 = vrot.lane.b32.xlu0 %v12214_v20, %s12435_s4  ;;  %v4480_v20 = vpop.permute.xlu1 %4479  ;;  %v4482_v58 = vpop.permute.xlu0 %4481 }
 0x1dd   : > { %8867 = vrot.lane.b32.xlu1 %v12215_v57, %s12435_s4  ;;  %v3607_v57 = vrot.slane %v12224_v63, 1  ;;  %v8545_v63 = vsel %vm1562_vm2, %v8543_v21, %v8544_v10  ;;  %v5888_v10 = vshll.u32 %v13816_v51, 16 }
 0x1df   : > { %11247 = vmatmul.mubr.msk.bf16.gmra.mrb[12].mxu0 %vm2562_vm15, %v13800_v34  ;;  %v3609_v36 = vsel %vm3555_vm14, %v3607_v57, %v3608_v62  ;;  %v12228_v57 = vld [vmem:[#allocation2 + $0x4c] sm:$0xff]   ;;  %v12230_v62 = vld [vmem:[#allocation2 + $0xe0] ss:$0 sps:$4 sm:$0x11]  }
 0x1e0   : > { %8605 = vrot.lane.b32.xlu0 %v8539_v48, %s12436_s5  ;;  %11250 = vmatprep.mubr.msk.bf16.mxu0 %vm2562_vm15, %v13804_v25  ;;  %v12227_v48 = vld [vmem:[#allocation2 + $0x5c] ss:$0 sps:$4 sm:$0x33]   ;;  %3669 = vst.msk [vmem:[#allocation3 + $0x88] sm:$0xff] %vm1273_vm10, %v3609_v36  ;;  %v4051_v8 = vpop.permute.xlu1 %4050  ;;  %v3611_v36 = vrot.slane %v12230_v62, 1  ;;  %v13856_v62 = vrot.slane %v5888_v10, 1 }
 0x1e1   : > { %8607 = vrot.lane.b32.xlu1 %v8542_v11, %s12436_s5  ;;  %v8547_v15 = vrot.slane %v12227_v48, 2  ;;  %v12229_v11 = vld [vmem:[#allocation2 + $0xd8] sm:$0xfe]   ;;  %4101 = vst.msk [vmem:[#allocation3 + $0x88] sm:$0xff] %vm1707_vm12, %v4047_v12 }
 0x1e2   : > { %4534 = vst.msk [vmem:[#allocation3 + $0x88] sm:$0xff] %vm2477_vm13, %v4480_v20  ;;  %v3610_v21 = vrot.slane %v12229_v11, 1  ;;  %v12300_v12 = vld [vmem:[#allocation2 + $0x18] sm:$0xff]   ;;  %v13844_v20 = vld [vmem:[#allocation2 + $0xf0] sm:$0xff]  }
 0x1e3   : > { %11047 = vmatmul.mubr.msk.bf16.gmra.mrb[16].mxu1 %vm2562_vm15, %v13411_v56  ;;  %v8548_v48 = vsel %vm1562_vm2, %v8546_v7, %v8547_v15  ;;  %8239 = vst.msk [vmem:[#allocation3 + $0x10] sm:$0xff] %vm1273_vm10, %v12300_v12  ;;  %v3614_v7 = vrot.slane %v12233_v1, 1  ;;  %v5900_v12 = vshll.u32 %v13844_v20, 16  ;;  %v14020_v1 = vld [vmem:[#allocation2 + $0x108] sm:$0xff]  }
 0x1e4   : > { %11050 = vmatprep.mubr.msk.bf16.mxu1 %vm2562_vm15, %v13443_v44  ;;  %8869 = vrot.lane.b32.xlu0 %v12220_v18, %s12435_s4  ;;  %v12293_v18 = vld [vmem:[#allocation2 + $0xc] sm:$0xff]   ;;  %v3612_v11 = vsel %vm3555_vm14, %v3610_v21, %v3611_v36  ;;  %v4484_v15 = vpop.permute.xlu1 %4483  ;;  %v12238_v36 = vld [vmem:[#allocation2 + $0x64] sm:$0xff]  }
 0x1e5   : > { %8871 = vrot.lane.b32.xlu1 %v12221_v3, %s12435_s4  ;;  %8238 = vst.msk [vmem:[#allocation3 + $0x8] sm:$0xff] %vm1273_vm10, %v12293_v18  ;;  %v12301_v3 = vld [vmem:[#allocation2 + $0x24] sm:$0xff]   ;;  %v13847_v18 = vpop.permute.xlu0 %6363  ;;  %3670 = vst.msk [vmem:[#allocation3 + $0x90] sm:$0xff] %vm1273_vm10, %v3612_v11 }
 0x1e6   : > { %8240 = vst.msk [vmem:[#allocation3 + $0x18] sm:$0xff] %vm1273_vm10, %v12301_v3 }
 0x1e7   : > { %11251 = vmatmul.mubr.msk.bf16.gmra.mrb[16].mxu0 %vm2562_vm15, %v13622_v27  ;;  %v3613_v27 = vrot.slane %v12232_v42, 1  ;;  %4102 = vst.msk [vmem:[#allocation3 + $0x90] sm:$0xff] %vm1707_vm12, %v13806_v61  ;;  %v12236_v42 = vld [vmem:[#allocation2 + $0x6c] sm:$0xfc]  }
 0x1e8   : > { %8609 = vrot.lane.b32.xlu0 %v8545_v63, %s12436_s5  ;;  %11254 = vmatprep.mubr.msk.bf16.mxu0 %vm2562_vm15, %v13643_v46  ;;  %v12234_v63 = vld [vmem:[#allocation2 + $0x60] sm:$0xfc]   ;;  %v12235_v46 = vld [vmem:[#allocation2 + $0x68] ss:$0 sps:$4 sm:$0x33]   ;;  %4535 = vst.msk [vmem:[#allocation3 + $0x90] sm:$0xff] %vm2477_vm13, %v4482_v58 }
 0x1e9   : > { %8611 = vrot.lane.b32.xlu1 %v8548_v48, %s12436_s5  ;;  %v3615_v21 = vsel %vm3555_vm14, %v3613_v27, %v3614_v7  ;;  %v8549_v48 = vrot.slane %v12234_v63, 2  ;;  %v8550_v61 = vrot.slane %v12235_v46, 2  ;;  %v8552_v10 = vrot.slane %v12236_v42, 2  ;;  %v13873_v11 = vpop.permute.xlu0 %6365  ;;  %v12304_v27 = vld [vmem:[#allocation2 + $0x30] sm:$0xff]   ;;  %v7133_v7 = vpop.permute.xlu1 %7132  ;;  %v12305_v46 = vld [vmem:[#allocation2 + $0x3c] sm:$0xff]  }
 0x1ea   : > { %3671 = vst.msk [vmem:[#allocation3 + $0x98] sm:$0xff] %vm1273_vm10, %v3615_v21  ;;  %v12241_v63 = vld [vmem:[#allocation2 + $0xd4] ss:$0 sps:$4 sm:$0x11]   ;;  %8241 = vst.msk [vmem:[#allocation3 + $0x20] sm:$0xff] %vm1273_vm10, %v12304_v27  ;;  %v13893_v27 = vld [vmem:[#allocation3 + $0x88] sm:$0xff] }
 0x1eb   : > { %11051 = vmatmul.mubr.msk.bf16.gmra.mrb[20].mxu1 %vm2562_vm15, %v13450_v13  ;;  %4103 = vst.msk [vmem:[#allocation3 + $0x98] sm:$0xff] %vm1707_vm12, %v4051_v8  ;;  %v8551_v58 = vsel %vm1562_vm2, %v8549_v48, %v8550_v61  ;;  %v5869_v48 = vshll.u32 %v12241_v63, 16  ;;  %v12243_v42 = vld [vmem:[#allocation2 + $0x80] ss:$0 sps:$4 sm:$0x33]   ;;  %14670 = vst [vmem:[#allocation9_spill] sm:$0xff] %v13893_v27 }
 0x1ec   : > { %11054 = vmatprep.mubr.msk.bf16.mxu1 %vm2562_vm15, %v13535_v38  ;;  %8873 = vrot.lane.b32.xlu0 %v12228_v57, %s12435_s4  ;;  %v12237_v57 = vld [vmem:[#allocation2 + $0x74] ss:$0 sps:$4 sm:$0x33]   ;;  %4536 = vst.msk [vmem:[#allocation3 + $0x98] sm:$0xff] %vm2477_vm13, %v4484_v15  ;;  %v12242_v15 = vld [vmem:[#allocation2 + $0x78] sm:$0xfc]  }
 0x1ed   : > { %8875 = vrot.lane.b32.xlu1 %v12231_v59, %s12435_s4  ;;  %v8553_v3 = vrot.slane %v12237_v57, 2  ;;  %v12239_v59 = vld [vmem:[#allocation2 + $0x70] sm:$0xff]   ;;  %8242 = vst.msk [vmem:[#allocation3 + $0x28] sm:$0xff] %vm1273_vm10, %v12305_v46  ;;  %v12244_v61 = vld [vmem:[#allocation2 + $0x84] sm:$0xfc]   ;;  %v13890_v57 = vrot.slane %v5900_v12, 1  ;;  %v6368_v63 = vpop.permute.xlu1 %6367 }
 0x1ee   : > { %v12250_v46 = vld [vmem:[#allocation2 + $0x7c] sm:$0xff]   ;;  %v12251_v12 = vld [vmem:[#allocation2 + $0x88] sm:$0xff]  }
 0x1ef   : > { %11255 = vmatmul.mubr.msk.bf16.gmra.mrb[20].mxu0 %vm2562_vm15, %v13681_v55  ;;  %v8554_v8 = vsel %vm1562_vm2, %v8552_v10, %v8553_v3  ;;  %v14669_v55 = vshrl.u32 %v13768_v43, 16  ;;  %v5871_v10 = vrot.slane %v5869_v48, 1  ;;  %v8556_v43 = vrot.slane %v12243_v42, 2  ;;  %v12306_v3 = vld [vmem:[#allocation2 + $0x48] sm:$0xff]  }
 0x1f0   : > { %8613 = vrot.lane.b32.xlu0 %v8551_v58, %s12436_s5  ;;  %11258 = vmatprep.mubr.msk.bf16.mxu0 %vm2562_vm15, %v13705_v6  ;;  %v8555_v6 = vrot.slane %v12242_v15, 2  ;;  %v12245_v58 = vld [vmem:[#allocation2 + $0x8c] ss:$0 sps:$4 sm:$0x33]   ;;  %8243 = vst.msk [vmem:[#allocation3 + $0x30] sm:$0xff] %vm1273_vm10, %v12306_v3  ;;  %v14671_v48 = vshrl.u32 %v13793_v4, 16 }
 0x1f1   : > { %8615 = vrot.lane.b32.xlu1 %v8554_v8, %s12436_s5  ;;  %v5867_v21 = vor.u32 %v13808_v47, %v14669_v55  ;;  %v7135_v47 = vpop.permute.xlu0 %7134  ;;  %v8558_v8 = vrot.slane %v12244_v61, 2  ;;  %v8559_v55 = vrot.slane %v12245_v58, 2  ;;  %v12249_v61 = vld [vmem:[#allocation2 + $0xec] ss:$0 sps:$4 sm:$0x11]  }
 0x1f2   : > { %v8557_v15 = vsel %vm1562_vm2, %v8555_v6, %v8556_v43  ;;  %v13906_v6 = vld [vmem:[#allocation3 + $0x90] sm:$0xff]  ;;  %v5893_v4 = vshll.u32 %v12249_v61, 16 }
 0x1f3   : > { %11055 = vmatmul.mubr.msk.bf16.gmra.mrb[24].mxu1 %vm2562_vm15, %v13540_v54  ;;  %14672 = vst [vmem:[#allocation10_spill] sm:$0xff] %v13906_v6  ;;  %v13912_v58 = vld [vmem:[#allocation3 + $0x98] sm:$0xff]  ;;  %v12274_v6 = vld [vmem:[#allocation2 + $0x108] sm:$0xfe]  }
 0x1f4   : > { %11058 = vmatprep.mubr.msk.bf16.mxu1 %vm2562_vm15, %v13636_v9  ;;  %8877 = vrot.lane.b32.xlu0 %v12238_v36, %s12435_s4  ;;  %v5872_v36 = vsel %vm5656_vm3, %v5867_v21, %v5871_v10  ;;  %v5879_v21 = vor.u32 %v13832_v40, %v14671_v48  ;;  %14673 = vst [vmem:[#allocation11_spill] sm:$0xff] %v13912_v58  ;;  %v7137_v40 = vpop.permute.xlu1 %7136  ;;  %v12256_v48 = vld [vmem:[#allocation2 + $0x94] sm:$0xff]  }
 0x1f5   : > { %8879 = vrot.lane.b32.xlu1 %v12239_v59, %s12435_s4  ;;  %5986 = vst.msk [vmem:[#allocation3 + $0x88] sm:$0xff] %vm1273_vm10, %v5872_v36  ;;  %v8560_v59 = vsel %vm1562_vm2, %v8558_v8, %v8559_v55  ;;  %v13908_v10 = vpop.permute.xlu0 %1675  ;;  %v12252_v8 = vld [vmem:[#allocation2 + $0x90] sm:$0xfc]   ;;  %v5895_v36 = vrot.slane %v5893_v4, 1 }
 0x1f6   : > { %6418 = vst.msk [vmem:[#allocation3 + $0x88] sm:$0xff] %vm1707_vm12, %v13847_v18  ;;  %v14674_v18 = vshrl.u32 %v13816_v51, 16  ;;  %v8561_v51 = vrot.slane %v12252_v8, 2  ;;  %v12309_v4 = vld [vmem:[#allocation2 + $0x6c] sm:$0xff]   ;;  %v12323_v58 = vld [vmem:[#allocation2 + $0xb4] sm:$0xff]  }
 0x1f7   : > { %7187 = vst.msk [vmem:[#allocation3 + $0x88] sm:$0xff] %vm2477_vm13, %v7133_v7 }
 0x1f8   : > { %8617 = vrot.lane.b32.xlu0 %v8557_v15, %s12436_s5  ;;  %v5891_v3 = vor.u32 %v13856_v62, %v14674_v18  ;;  %v12253_v15 = vld [vmem:[#allocation2 + $0x98] ss:$0 sps:$4 sm:$0x33]   ;;  %v12254_v62 = vld [vmem:[#allocation2 + $0x9c] sm:$0xfc]   ;;  %8246 = vst.msk [vmem:[#allocation3 + $0x48] sm:$0xff] %vm1273_vm10, %v12309_v4 }
 0x1f9   : > { %8619 = vrot.lane.b32.xlu1 %v8560_v59, %s12436_s5  ;;  %v13923_v55 = vpop.permute.xlu0 %4052  ;;  %v8564_v59 = vrot.slane %v12254_v62, 2  ;;  %v12313_v4 = vld [vmem:[#allocation2 + $0x9c] sm:$0xff]  }
 0x1fb   : > { %11059 = vmatmul.mubr.msk.bf16.gmra.mrb[28].mxu1 %vm2562_vm15, %v13670_v49 }
 0x1fc   : > { %11064 = vmatprep.mubr.msk.bf16.mxu1 %vm2562_vm15, %v13043_v60  ;;  %v12247_v60 = vld [vmem:[#allocation2 + $0xe0] ss:$0 sps:$4 sm:$0x11]   ;;  %8881 = vrot.lane.b32.xlu0 %v12250_v46, %s12435_s4  ;;  %v5896_v46 = vsel %vm5656_vm3, %v5891_v3, %v5895_v36  ;;  %v12259_v3 = vld [vmem:[#allocation2 + $0xb0] ss:$0 sps:$4 sm:$0x33]  }
 0x1fd   : > { %v5881_v42 = vshll.u32 %v12247_v60, 16  ;;  %8883 = vrot.lane.b32.xlu1 %v12251_v12, %s12435_s4  ;;  %v8562_v60 = vrot.slane %v12253_v15, 2  ;;  %5988 = vst.msk [vmem:[#allocation3 + $0x98] sm:$0xff] %vm1273_vm10, %v5896_v46  ;;  %v12308_v12 = vld [vmem:[#allocation2 + $0x60] sm:$0xff]   ;;  %v8568_v36 = vrot.slane %v12259_v3, 2 }
 0x1fe   : > { %6420 = vst.msk [vmem:[#allocation3 + $0x98] sm:$0xff] %vm1707_vm12, %v6368_v63  ;;  %v12260_v15 = vld [vmem:[#allocation2 + $0xb4] sm:$0xfc]  }
 0x1ff   : > { %v5883_v43 = vrot.slane %v5881_v42, 1  ;;  %v8563_v42 = vsel %vm1562_vm2, %v8561_v51, %v8562_v60  ;;  %7189 = vst.msk [vmem:[#allocation3 + $0x98] sm:$0xff] %vm2477_vm13, %v7137_v40  ;;  %v12261_v51 = vld [vmem:[#allocation2 + $0xbc] ss:$0 sps:$4 sm:$0x33]  }
 0x200   : > { %8621 = vrot.lane.b32.xlu0 %v8563_v42, %s12436_s5  ;;  %8245 = vst.msk [vmem:[#allocation3 + $0x40] sm:$0xff] %vm1273_vm10, %v12308_v12  ;;  %v8571_v46 = vrot.slane %v12261_v51, 2  ;;  %v12262_v60 = vld [vmem:[#allocation2 + $0xf0] sm:$0xfe]   ;;  %v13963_v12 = vld [vmem:[#allocation3 + $0x68] sm:$0xff] }
 0x201   : > { %v5884_v7 = vsel %vm5656_vm3, %v5879_v21, %v5883_v43  ;;  %v13932_v21 = vpop.permute.xlu1 %2445  ;;  %v12258_v43 = vld [vmem:[#allocation2 + $0xa8] sm:$0xfc]   ;;  %v13947_v63 = vpop.permute.xlu0 %1677  ;;  %8250 = vst.msk [vmem:[#allocation3 + $0x68] sm:$0xff] %vm1273_vm10, %v12313_v4 }
 0x202   : > { %5987 = vst.msk [vmem:[#allocation3 + $0x90] sm:$0xff] %vm1273_vm10, %v5884_v7  ;;  %v8567_v40 = vrot.slane %v12258_v43, 2  ;;  %v12310_v7 = vld [vmem:[#allocation2 + $0x78] sm:$0xff]   ;;  %v1182_v43 = vshrl.u32 %v12262_v60, 16 }
 0x203   : > { %11065 = vmatmul.mubr.msk.bf16.vlgmr.msra.gmra.mrb[0].mxu1 %vm2562_vm15, %v13046_v0  ;;  %v12307_v0 = vld [vmem:[#allocation2 + $0x54] sm:$0xff]   ;;  %6419 = vst.msk [vmem:[#allocation3 + $0x90] sm:$0xff] %vm1707_vm12, %v13873_v11  ;;  %v13937_v11 = vld [vmem:[#allocation3 + $0x88] sm:$0xff] }
 0x204   : > { %11068 = vmatprep.mubr.msk.bf16.mxu1 %vm2562_vm15, %v13132_v41  ;;  %v12255_v41 = vld [vmem:[#allocation2 + $0xa4] ss:$0 sps:$4 sm:$0x33]   ;;  %7188 = vst.msk [vmem:[#allocation3 + $0x90] sm:$0xff] %vm2477_vm13, %v7135_v47  ;;  %11259 = vmatmul.mubr.msk.bf16.gmra.mrb[24].mxu0 %vm2562_vm15, %v13937_v11  ;;  %v8569_v62 = vsel %vm1562_vm2, %v8567_v40, %v8568_v36 }
 0x205   : > { %8244 = vst.msk [vmem:[#allocation3 + $0x38] sm:$0xff] %vm1273_vm10, %v12307_v0  ;;  %v8565_v61 = vrot.slane %v12255_v41, 2  ;;  %v12257_v47 = vld [vmem:[#allocation2 + $0xa0] sm:$0xff]   ;;  %v13950_v8 = vpop.permute.xlu1 %4485  ;;  %8885 = vrot.lane.b32.xlu0 %v12256_v48, %s12435_s4  ;;  %8247 = vst.msk [vmem:[#allocation3 + $0x50] sm:$0xff] %vm1273_vm10, %v12310_v7  ;;  %v8570_v0 = vrot.slane %v12260_v15, 2  ;;  %v12312_v48 = vld [vmem:[#allocation2 + $0x90] sm:$0xff]  }
 0x206   : > { %v12311_v41 = vld [vmem:[#allocation2 + $0x84] sm:$0xff]   ;;  %v13965_v42 = vld [vmem:[#allocation3 + $0x98] sm:$0xff]  ;;  %v13968_v3 = vpop.permute.xlu0 %4054  ;;  %8249 = vst.msk [vmem:[#allocation3 + $0x60] sm:$0xff] %vm1273_vm10, %v12312_v48  ;;  %v1184_v15 = vrot.slane %v1182_v43, 1 }
 0x207   : > { %v8566_v18 = vsel %vm1562_vm2, %v8564_v59, %v8565_v61  ;;  %v12264_v59 = vld [vmem:[#allocation2 + $0xac] sm:$0xff]   ;;  %v8572_v61 = vsel %vm1562_vm2, %v8570_v0, %v8571_v46  ;;  %8248 = vst.msk [vmem:[#allocation3 + $0x58] sm:$0xff] %vm1273_vm10, %v12311_v41  ;;  %v12265_v7 = vld [vmem:[#allocation2 + $0xb8] sm:$0xff]   ;;  %v10363_v0 = vld [vmem:[%s14655_s1 + $0x12] sm:$0x3] }
 0x208   : > { %8623 = vrot.lane.b32.xlu1 %v8566_v18, %s12436_s5  ;;  %v1185_v18 = vshll.u32 %v12262_v60, 16 }
 0x209   : > { %8625 = vrot.lane.b32.xlu0 %v8569_v62, %s12436_s5  ;;  %v13974_v36 = vpop.permute.xlu1 %2447  ;;  %v10364_v62 = vld [vmem:[%s14655_s1 + $0x14] sm:$0x3] }
 0x20a   : > { %v1187_v51 = vrot.slane %v1185_v18, 2  ;;  %v4565_v41 = vcombine.low %v10363_v0, %v10364_v62 }
 0x20b   : > { %11069 = vmatmul.mubr.msk.bf16.gmra.mrb[4].mxu1 %vm2562_vm15, %v13144_v52  ;;  %v13957_v52 = vld [vmem:[#allocation3 + $0x90] sm:$0xff] }
 0x20c   : > { %11072 = vmatprep.mubr.msk.bf16.mxu1 %vm2562_vm15, %v13280_v26  ;;  %8887 = vrot.lane.b32.xlu1 %v12257_v47, %s12435_s4  ;;  %v12263_v26 = vld [vmem:[#allocation2 + $0xf8] ss:$0 sps:$4 sm:$0x33]   ;;  %v1188_v48 = vor.u32 %v1187_v51, %v1184_v15  ;;  %v4572_v18 = vrot.slane %v4565_v41, %v13027_v35  ;;  %v14009_v15 = vld [vmem:[#allocation3 + $0x70] sm:$0xff]  ;;  %v12322_v41 = vld [vmem:[#allocation2 + $0xa8] sm:$0xff]  }
 0x20d   : > { %11262 = vmatprep.mubr.msk.bf16.mxu0 %vm2562_vm15, %v13957_v52  ;;  %v1190_v47 = vshrl.u32 %v12263_v26, 16  ;;  %v1193_v40 = vshll.u32 %v12263_v26, 16  ;;  %v13994_v26 = vld [vmem:[#allocation2 + $0xfc] sm:$0xff]   ;;  %8889 = vrot.lane.b32.xlu0 %v12264_v59, %s12435_s4  ;;  %v12267_v59 = vld [vmem:[#allocation2 + $0xf8] ss:$0 sps:$4 sm:$0x11]  }
 0x20e   : > { %11263 = vmatmul.mubr.msk.bf16.gmra.mrb[28].mxu0 %vm2562_vm15, %v13965_v42  ;;  %8251 = vst.msk [vmem:[#allocation3 + $0x70] sm:$0xff] %vm1273_vm10, %v12322_v41 }
 0x20f   : > { %11268 = vmatprep.mubr.msk.bf16.mxu0 %vm2562_vm15, %v13757_v45  ;;  %v1192_v46 = vrot.slane %v1190_v47, 1  ;;  %v1195_v60 = vrot.slane %v1193_v40, 2  ;;  %v10366_v45 = vld.sshfl [vmem:[%s14655_s1 + $0x16] sm:$0x3 pattern:$0x76325410]  ;;  %v14007_v40 = vpop.permute.xlu0 %6369 }
 0x210   : > { %8627 = vrot.lane.b32.xlu1 %v8572_v61, %s12436_s5  ;;  %v10724_v61 = vld [vmem:[%s14655_s1 + $0x38] sm:$0x3]  ;;  %v4580_v0 = vcombine.low %v4572_v18, %v10366_v45  ;;  %v5912_v18 = vshll.u32 %v13994_v26, 16 }
 0x211   : > { %v1196_v43 = vor.u32 %v1195_v60, %v1192_v46  ;;  %v12266_v47 = vld [vmem:[#allocation2 + $0xf0] sm:$0xfe]   ;;  %v14014_v46 = vpop.permute.xlu1 %4487  ;;  %v14016_v60 = vld [vmem:[#allocation3 + $0x78] sm:$0xff] }
 0x212   : > { %11757 = vmatprep.subr.msk.bf16.mxu1 %vm1562_vm2, %v4580_v0  ;;  %v4630_v45 = vsel %vm1562_vm2, %v4580_v0, 0  ;;  %8252 = vst.msk [vmem:[#allocation3 + $0x78] sm:$0xff] %vm1273_vm10, %v12323_v58 }
 0x213   : > { %11073 = vmatmul.mubr.msk.bf16.gmra.mrb[8].mxu1 %vm2562_vm15, %v13291_v2  ;;  %v10723_v2 = vld [vmem:[%s14655_s1 + $0x36] sm:$0x3]  ;;  %v1197_v51 = vsel %vm840_vm11, %v1188_v48, %v1196_v43  ;;  %v3616_v48 = vrot.slane %v12266_v47, 1  ;;  %v12269_v43 = vld [vmem:[#allocation2 + $0x104] ss:$0 sps:$4 sm:$0x33]   ;;  %v14039_v41 = vpop.permute.xlu0 %1679 }
 0x214   : > { %11076 = vmatprep.mubr.msk.bf16.mxu1 %vm2562_vm15, %v13398_v19  ;;  %v10726_v19 = vld.sshfl [vmem:[%s14655_s1 + $0x3a] sm:$0x3 pattern:$0x76325410]  ;;  %v8980_v4 = vcombine.low %v10723_v2, %v10724_v61  ;;  %8891 = vrot.lane.b32.xlu1 %v12265_v7, %s12435_s4  ;;  %1294 = vst.msk [vmem:[#allocation3 + $0xa0] sm:$0xff] %vm1273_vm10, %v1197_v51  ;;  %v1207_v47 = vshrl.u32 %v12269_v43, 16 }
 0x215   : > { %v12268_v2 = vld [vmem:[#allocation2 + $0xfc] sm:$0xfe]   ;;  %1728 = vst.msk [vmem:[#allocation3 + $0xa0] sm:$0xff] %vm1707_vm12, %v13908_v10  ;;  %11097 = vmatpush3.bf16.msra.mxu1 %v4630_v45  ;;  %v1210_v51 = vshll.u32 %v12269_v43, 16  ;;  %v14043_v45 = vpop.permute.xlu1 %7138 }
 0x216   : > { %v8987_v62 = vrot.slane %v8980_v4, %v13027_v35  ;;  %11269 = vmatmul.mubr.msk.bf16.vlgmr.msra.gmra.mrb[0].mxu0 %vm2562_vm15, %v13760_v31  ;;  %2498 = vst.msk [vmem:[#allocation3 + $0xa0] sm:$0xff] %vm2477_vm13, %v13932_v21  ;;  %v1199_v10 = vshrl.u32 %v12268_v2, 16  ;;  %v3617_v4 = vrot.slane %v12267_v59, 1  ;;  %v12273_v61 = vld [vmem:[#allocation2 + $0xf8] ss:$0 sps:$4 sm:$0x11]  }
 0x217   : > { %11272 = vmatprep.mubr.msk.bf16.mxu0 %vm2562_vm15, %v13778_v28  ;;  %v1209_v28 = vrot.slane %v1207_v47, 1  ;;  %v1212_v58 = vrot.slane %v1210_v51, 2  ;;  %v5905_v47 = vshll.u32 %v12273_v61, 16  ;;  %v12275_v51 = vld [vmem:[#allocation2 + $0x110] ss:$0 sps:$4 sm:$0x33]  }
 0x218   : > { %v8995_v7 = vcombine.low %v8987_v62, %v10726_v19  ;;  %v1202_v19 = vshll.u32 %v12268_v2, 16  ;;  %v1201_v21 = vrot.slane %v1199_v10, 1  ;;  %v12270_v62 = vld [vmem:[#allocation2 + $0xfc] sm:$0xfe]   ;;  %v3618_v10 = vsel %vm3555_vm14, %v3616_v48, %v3617_v4 }
 0x219   : > { %v12271_v2 = vld [vmem:[#allocation2 + $0x104] ss:$0 sps:$4 sm:$0x11]   ;;  %v3619_v43 = vrot.slane %v12270_v62, 1  ;;  %v1216_v4 = vshrl.u32 %v12274_v6, 16  ;;  %v1227_v61 = vshll.u32 %v12275_v51, 16  ;;  %v2450_v62 = vpop.permute.xlu1 %2449 }
 0x21a   : > { %11763 = vmatprep.subr.msk.bf16.mxu0 %vm1562_vm2, %v8995_v7  ;;  %v9045_v31 = vsel %vm1562_vm2, %v8995_v7, 0  ;;  %v1204_v0 = vrot.slane %v1202_v19, 2  ;;  %v1213_v19 = vor.u32 %v1212_v58, %v1209_v28  ;;  %v14053_v59 = vld [vmem:[#allocation2] sm:$0xff]  }
 0x21b   : > { %11077 = vmatmul.mubr.msk.bf16.gmra.mrb[12].mxu1 %vm2562_vm15, %v13411_v56  ;;  %11301 = vmatpush3.bf16.msra.mxu0 %v9045_v31  ;;  %v5924_v56 = vshll.u32 %v14020_v1, 16  ;;  %v3620_v31 = vrot.slane %v12271_v2, 1 }
 0x21c   : > { %11080 = vmatprep.mubr.msk.bf16.mxu1 %vm2562_vm15, %v13443_v44  ;;  %v1205_v7 = vor.u32 %v1204_v0, %v1201_v21  ;;  %v1219_v21 = vshll.u32 %v12274_v6, 16  ;;  %v1218_v6 = vrot.slane %v1216_v4, 1 }
 0x21d   : > { %v14048_v27 = vld [vmem:[#allocation3 + $0xa0] sm:$0xff]  ;;  %v3621_v48 = vsel %vm3555_vm14, %v3619_v43, %v3620_v31  ;;  %v5926_v28 = vrot.slane %v5924_v56, 1  ;;  %v12277_v43 = vld [vmem:[#allocation2 + $0x110] ss:$0 sps:$4 sm:$0x11]   ;;  %v5660_v56 = vshll.u32 %v14053_v59, 16 }
 0x21e   : > { %11273 = vmatmul.mubr.msk.bf16.gmra.mrb[4].mxu0 %vm2562_vm15, %v13783_v24  ;;  %v1214_v44 = vsel %vm840_vm11, %v1205_v7, %v1213_v19  ;;  %3672 = vst.msk [vmem:[#allocation3 + $0xa0] sm:$0xff] %vm1273_vm10, %v3618_v10  ;;  %v1224_v24 = vshrl.u32 %v12275_v51, 16  ;;  %v1221_v58 = vrot.slane %v1219_v21, 2  ;;  %v1229_v7 = vrot.slane %v1227_v61, 2  ;;  %v12278_v19 = vld [vmem:[#allocation2] sm:$0xfe]  }
 0x21f   : > { %11276 = vmatprep.mubr.msk.bf16.mxu0 %vm2562_vm15, %v13800_v34  ;;  %1295 = vst.msk [vmem:[#allocation3 + $0xa8] sm:$0xff] %vm1273_vm10, %v1214_v44  ;;  %v4057_v0 = vpop.permute.xlu0 %4056  ;;  %v5914_v34 = vrot.slane %v5912_v18, 1  ;;  %v5907_v18 = vrot.slane %v5905_v47, 1  ;;  %v3623_v10 = vrot.slane %v12277_v43, 1  ;;  %v845_v47 = vshll.u32 %v12278_v19, 16 }
 0x220   : > { %4104 = vst.msk [vmem:[#allocation3 + $0xa0] sm:$0xff] %vm1707_vm12, %v13923_v55  ;;  %1729 = vst.msk [vmem:[#allocation3 + $0xa8] sm:$0xff] %vm1707_vm12, %v13947_v63  ;;  %v12276_v55 = vld [vmem:[#allocation2 + $0x108] sm:$0xfe]   ;;  %v14675_v63 = vshrl.u32 %v13844_v20, 16  ;;  %v1226_v2 = vrot.slane %v1224_v24, 1 }
 0x221   : > { %4537 = vst.msk [vmem:[#allocation3 + $0xa0] sm:$0xff] %vm2477_vm13, %v13950_v8  ;;  %2499 = vst.msk [vmem:[#allocation3 + $0xa8] sm:$0xff] %vm2477_vm13, %v13974_v36  ;;  %v1222_v8 = vor.u32 %v1221_v58, %v1218_v6  ;;  %v3622_v36 = vrot.slane %v12276_v55, 1  ;;  %v12279_v20 = vld [vmem:[#allocation2 + $0x8] ss:$0 sps:$4 sm:$0x33]  }
 0x222   : > { %3673 = vst.msk [vmem:[#allocation3 + $0xa8] sm:$0xff] %vm1273_vm10, %v3621_v48  ;;  %v12281_v48 = vld [vmem:[#allocation2 + $0x104] ss:$0 sps:$4 sm:$0x11]   ;;  %v850_v4 = vshrl.u32 %v12279_v20, 16  ;;  %v853_v21 = vshll.u32 %v12279_v20, 16 }
 0x223   : > { %11081 = vmatmul.mubr.msk.bf16.gmra.mrb[16].mxu1 %vm2562_vm15, %v13450_v13  ;;  %v5903_v13 = vor.u32 %v13890_v57, %v14675_v63  ;;  %4105 = vst.msk [vmem:[#allocation3 + $0xa8] sm:$0xff] %vm1707_vm12, %v13968_v3  ;;  %v4490_v31 = vpop.permute.xlu0 %4489  ;;  %v842_v3 = vshrl.u32 %v12278_v19, 16  ;;  %v847_v61 = vrot.slane %v845_v47, 2  ;;  %v14676_v6 = vshrl.u32 %v13994_v26, 16 }
 0x224   : > { %11084 = vmatprep.mubr.msk.bf16.mxu1 %vm2562_vm15, %v13535_v38  ;;  %4538 = vst.msk [vmem:[#allocation3 + $0xa8] sm:$0xff] %vm2477_vm13, %v14014_v46  ;;  %v1230_v38 = vor.u32 %v1229_v7, %v1226_v2  ;;  %v3624_v46 = vsel %vm3555_vm14, %v3622_v36, %v3623_v10  ;;  %v5917_v55 = vshll.u32 %v12281_v48, 16  ;;  %v855_v63 = vrot.slane %v853_v21, 2  ;;  %v12284_v7 = vld [vmem:[#allocation2] sm:$0xfe]  }
 0x225   : > { %v5908_v57 = vsel %vm5656_vm3, %v5903_v13, %v5907_v18  ;;  %v1636_v51 = vpop.permute.xlu1 %1635  ;;  %v5915_v58 = vor.u32 %v5914_v34, %v14676_v6  ;;  %v12283_v13 = vld [vmem:[#allocation2 + $0x110] ss:$0 sps:$4 sm:$0x11]   ;;  %v5658_v34 = vshrl.u32 %v14053_v59, 16  ;;  %v14677_v18 = vshrl.u32 %v14020_v1, 16 }
 0x226   : > { %11277 = vmatmul.mubr.msk.bf16.gmra.mrb[8].mxu0 %vm2562_vm15, %v13804_v25  ;;  %v1231_v44 = vsel %vm840_vm11, %v1222_v8, %v1230_v38  ;;  %v844_v25 = vrot.slane %v842_v3, 1  ;;  %v5662_v43 = vrot.slane %v5660_v56, 1  ;;  %v12285_v59 = vld [vmem:[#allocation2 + $0x8] ss:$0 sps:$4 sm:$0x11]   ;;  %v3556_v38 = vrot.slane %v12284_v7, 1 }
 0x227   : > { %11280 = vmatprep.mubr.msk.bf16.mxu0 %vm2562_vm15, %v13963_v12  ;;  %1296 = vst.msk [vmem:[#allocation3 + $0xb0] sm:$0xff] %vm1273_vm10, %v1231_v44  ;;  %v852_v12 = vrot.slane %v850_v4, 1  ;;  %v5927_v2 = vor.u32 %v5926_v28, %v14677_v18  ;;  %v3557_v1 = vrot.slane %v12285_v59, 1  ;;  %v12287_v28 = vld [vmem:[#allocation2 + $0x8] ss:$0 sps:$4 sm:$0x11]  }
 0x228   : > { %v14089_v24 = vld [vmem:[#allocation3 + $0xa0] sm:$0xff]  ;;  %1730 = vst.msk [vmem:[#allocation3 + $0xb0] sm:$0xff] %vm1707_vm12, %v14039_v41  ;;  %v848_v26 = vor.u32 %v847_v61, %v844_v25  ;;  %v5919_v41 = vrot.slane %v5917_v55, 1  ;;  %v5665_v20 = vshll.u32 %v12287_v28, 16  ;;  %v12290_v44 = vld [vmem:[#allocation2 + $0xcc] sm:$0xfc]   ;;  %v5663_v48 = vor.u32 %v5662_v43, %v5658_v34 }
 0x229   : > { %5989 = vst.msk [vmem:[#allocation3 + $0xa0] sm:$0xff] %vm1273_vm10, %v5908_v57  ;;  %v12288_v10 = vld [vmem:[#allocation2 + $0xc0] sm:$0xfc]   ;;  %v12291_v47 = vld [vmem:[#allocation2 + $0xd4] ss:$0 sps:$4 sm:$0x33]  }
 0x22a   : > { %2500 = vst.msk [vmem:[#allocation3 + $0xb0] sm:$0xff] %vm2477_vm13, %v2450_v62  ;;  %v6372_v62 = vpop.permute.xlu0 %6371  ;;  %v5920_v8 = vsel %vm5656_vm3, %v5915_v58, %v5919_v41  ;;  %v7771_v3 = vld [vmem:[#allocation3 + $0x80] sm:$0xff]  ;;  %v8576_v21 = vrot.slane %v12290_v44, 2  ;;  %v12296_v55 = vld [vmem:[#allocation2 + $0xd8] sm:$0xfc]   ;;  %v12303_v7 = vld [vmem:[#allocation2 + $0xe8] sm:$0xff]  }
 0x22b   : > { %11085 = vmatmul.mubr.msk.bf16.gmra.mrb[20].mxu1 %vm2562_vm15, %v13540_v54  ;;  %6421 = vst.msk [vmem:[#allocation3 + $0xa0] sm:$0xff] %vm1707_vm12, %v14007_v40  ;;  %v856_v54 = vor.u32 %v855_v63, %v852_v12  ;;  %v2406_v40 = vpop.permute.xlu1 %2405  ;;  %v14112_v36 = vld [vmem:[#allocation3 + $0xa8] sm:$0xff]  ;;  %v12297_v12 = vld [vmem:[#allocation2 + $0xe0] ss:$0 sps:$4 sm:$0x33]  }
 0x22c   : > { %11088 = vmatprep.mubr.msk.bf16.mxu1 %vm2562_vm15, %v13636_v9  ;;  %3674 = vst.msk [vmem:[#allocation3 + $0xb0] sm:$0xff] %vm1273_vm10, %v3624_v46  ;;  %v5929_v9 = vshll.u32 %v12283_v13, 16  ;;  %5990 = vst.msk [vmem:[#allocation3 + $0xa8] sm:$0xff] %vm1273_vm10, %v5920_v8  ;;  %v5667_v46 = vrot.slane %v5665_v20, 1  ;;  %v12294_v61 = vld [vmem:[#allocation2 + $0xc4] sm:$0xff]   ;;  %v8580_v41 = vrot.slane %v12297_v12, 2 }
 0x22d   : > { %7190 = vst.msk [vmem:[#allocation3 + $0xa0] sm:$0xff] %vm2477_vm13, %v14043_v45  ;;  %v857_v45 = vsel %vm840_vm11, %v848_v26, %v856_v54  ;;  %v12340_v63 = vld [vmem:[#allocation2 + $0xc0] sm:$0xff]   ;;  %v12341_v54 = vld [vmem:[#allocation2 + $0xcc] sm:$0xff]  }
 0x22e   : > { %4106 = vst.msk [vmem:[#allocation3 + $0xb0] sm:$0xff] %vm1707_vm12, %v4057_v0  ;;  %v5931_v0 = vrot.slane %v5929_v9, 1  ;;  %11281 = vmatmul.mubr.msk.bf16.gmra.mrb[12].mxu0 %vm2562_vm15, %v14009_v15  ;;  %6422 = vst.msk [vmem:[#allocation3 + $0xa8] sm:$0xff] %vm1707_vm12, %v6372_v62  ;;  %v3558_v15 = vsel %vm3555_vm14, %v3556_v38, %v3557_v1  ;;  %v5668_v58 = vsel %vm5656_vm3, %v5663_v48, %v5667_v46  ;;  %v12298_v34 = vld [vmem:[#allocation2 + $0xe4] sm:$0xfc]  }
 0x22f   : > { %4539 = vst.msk [vmem:[#allocation3 + $0xb0] sm:$0xff] %vm2477_vm13, %v4490_v31  ;;  %11284 = vmatprep.mubr.msk.bf16.mxu0 %vm2562_vm15, %v14016_v60  ;;  %v6374_v19 = vpop.permute.xlu1 %6373  ;;  %v12289_v31 = vld [vmem:[#allocation2 + $0xc8] ss:$0 sps:$4 sm:$0x33]   ;;  %v8573_v60 = vrot.slane %v12288_v10, 2  ;;  %v8582_v18 = vrot.slane %v12298_v34, 2 }
 0x230   : > { %1274 = vst.msk [vmem:[#allocation3] sm:$0xff] %vm1273_vm10, %v857_v45  ;;  %v5932_v56 = vsel %vm5656_vm3, %v5927_v2, %v5931_v0  ;;  %v8574_v57 = vrot.slane %v12289_v31, 2  ;;  %8253 = vst.msk [vmem:[#allocation3 + $0x80] sm:$0xff] %vm1273_vm10, %v12340_v63  ;;  %v12302_v2 = vld [vmem:[#allocation2 + $0xdc] sm:$0xff]   ;;  %v10383_v43 = vld [vmem:[%s14655_s1 + $0x18] sm:$0x3] }
 0x231   : > { %1708 = vst.msk [vmem:[#allocation3] sm:$0xff] %vm1707_vm12, %v1636_v51  ;;  %v10384_v59 = vld [vmem:[%s14655_s1 + $0x1a] sm:$0x3]  ;;  %v10744_v0 = vld [vmem:[%s14655_s1 + $0x3e] sm:$0x3]  ;;  %v12343_v44 = vld [vmem:[#allocation2 + $0xe4] sm:$0xff]  }
 0x232   : > { %2478 = vst.msk [vmem:[#allocation3] sm:$0xff] %vm2477_vm13, %v2406_v40  ;;  %v8575_v4 = vsel %vm1562_vm2, %v8573_v60, %v8574_v57  ;;  %v12292_v40 = vld [vmem:[#allocation2] sm:$0xff]   ;;  %v4848_v45 = vcombine.low %v10383_v43, %v10384_v59  ;;  %v10746_v38 = vld.sshfl [vmem:[%s14655_s1 + $0x40] sm:$0x3 pattern:$0x76325410] }
 0x233   : > { %5991 = vst.msk [vmem:[#allocation3 + $0xb0] sm:$0xff] %vm1273_vm10, %v5932_v56  ;;  %11089 = vmatmul.mubr.msk.bf16.gmra.mrb[24].mxu1 %vm2562_vm15, %v13670_v49  ;;  %3652 = vst.msk [vmem:[#allocation3] sm:$0xff] %vm1273_vm10, %v3558_v15  ;;  %v4013_v51 = vpop.permute.xlu1 %4012  ;;  %v7141_v25 = vpop.permute.xlu0 %7140  ;;  %8629 = vrot.lane.b32.xlu0 %v8575_v4, %s12436_s5  ;;  %v8577_v49 = vrot.slane %v12291_v47, 2  ;;  %v12342_v57 = vld [vmem:[#allocation2 + $0xd8] sm:$0xff]  }
 0x234   : > { %6423 = vst.msk [vmem:[#allocation3 + $0xb0] sm:$0xff] %vm1707_vm12, %v6374_v19  ;;  %11092 = vmatprep.mubr.msk.bf16.mxu1 %vm2562_vm15, %v13693_v32  ;;  %4084 = vst.msk [vmem:[#allocation3] sm:$0xff] %vm1707_vm12, %v4013_v51  ;;  %v12295_v32 = vld [vmem:[#allocation2 + $0xd0] sm:$0xff]   ;;  %v4855_v28 = vrot.slane %v4848_v45, %v13027_v35  ;;  %v7775_v10 = vld [vmem:[#allocation3 + $0xa0] sm:$0xff] }
 0x235   : > { %7191 = vst.msk [vmem:[#allocation3 + $0xa8] sm:$0xff] %vm2477_vm13, %v7141_v25  ;;  %v8578_v6 = vsel %vm1562_vm2, %v8576_v21, %v8577_v49  ;;  %v12314_v51 = vld [vmem:[#allocation2 + $0x114] sm:$0xfc]   ;;  %v12315_v48 = vld [vmem:[#allocation2 + $0x11c] ss:$0 sps:$4 sm:$0x33]  }
 0x236   : > { %11285 = vmatmul.mubr.msk.bf16.gmra.mrb[16].mxu0 %vm2562_vm15, %v7771_v3  ;;  %8631 = vrot.lane.b32.xlu1 %v8578_v6, %s12436_s5  ;;  %8254 = vst.msk [vmem:[#allocation3 + $0x88] sm:$0xff] %vm1273_vm10, %v12341_v54  ;;  %8255 = vst.msk [vmem:[#allocation3 + $0x90] sm:$0xff] %vm1273_vm10, %v12342_v57  ;;  %v1632_v4 = vrot.slane %v12314_v51, 2  ;;  %v1633_v21 = vrot.slane %v12315_v48, 2  ;;  %v12316_v25 = vld [vmem:[#allocation2 + $0xf0] sm:$0xfc]  }
 0x237   : > { %11288 = vmatprep.mubr.msk.bf16.mxu0 %vm2562_vm15, %v13937_v11  ;;  %v4446_v13 = vpop.permute.xlu1 %4445  ;;  %8893 = vrot.lane.b32.xlu0 %v12294_v61, %s12435_s4  ;;  %v8579_v11 = vrot.slane %v12296_v55, 2  ;;  %8256 = vst.msk [vmem:[#allocation3 + $0x98] sm:$0xff] %vm1273_vm10, %v12343_v44  ;;  %v12318_v55 = vld [vmem:[#allocation2 + $0x114] sm:$0xfc]  }
 0x238   : > { %4517 = vst.msk [vmem:[#allocation3] sm:$0xff] %vm2477_vm13, %v4446_v13  ;;  %v1634_v6 = vsel %vm1562_vm2, %v1632_v4, %v1633_v21  ;;  %v12319_v63 = vld [vmem:[#allocation2 + $0x11c] ss:$0 sps:$4 sm:$0x77]   ;;  %v12328_v44 = vld [vmem:[#allocation2 + $0x114] sm:$0xf8]  }
 0x239   : > { %5969 = vst.msk [vmem:[#allocation3] sm:$0xff] %vm1273_vm10, %v5668_v58  ;;  %v8581_v62 = vsel %vm1562_vm2, %v8579_v11, %v8580_v41  ;;  %v8585_v58 = vrot.slane %v12316_v25, 2  ;;  %v2392_v11 = vshll.u32 %v12318_v55, 16  ;;  %v2397_v54 = vshrl.u32 %v12319_v63, 16  ;;  %v12330_v4 = vld [vmem:[#allocation2 + $0x114] sm:$0xfc]  }
 0x23a   : > { %v7143_v26 = vpop.permute.xlu0 %7142  ;;  %8895 = vrot.lane.b32.xlu1 %v12295_v32, %s12435_s4  ;;  %v12317_v32 = vld [vmem:[#allocation2 + $0xf8] ss:$0 sps:$4 sm:$0x33]   ;;  %v4442_v48 = vrot.slane %v12328_v44, 3  ;;  %v10764_v44 = vld [vmem:[%s14655_s1 + $0x44] sm:$0x3] }
 0x23b   : > { %11093 = vmatmul.mubr.msk.bf16.gmra.mrb[28].mxu1 %vm2562_vm15, %v14048_v27  ;;  %7192 = vst.msk [vmem:[#allocation3 + $0xb0] sm:$0xff] %vm2477_vm13, %v7143_v26  ;;  %v12299_v27 = vld [vmem:[#allocation2 + $0xec] ss:$0 sps:$4 sm:$0x33]   ;;  %8633 = vrot.lane.b32.xlu0 %v8581_v62, %s12436_s5  ;;  %v8586_v12 = vrot.slane %v12317_v32, 2  ;;  %v2389_v26 = vshrl.u32 %v12318_v55, 16 }
 0x23c   : > { %11098 = vmatprep.mubr.msk.bf16.mxu1 %vm2562_vm15, %v13071_v33  ;;  %v8583_v33 = vrot.slane %v12299_v27, 2  ;;  %v7099_v56 = vpop.permute.xlu1 %7098  ;;  %v7776_v15 = vld [vmem:[#allocation3 + $0xa8] sm:$0xff]  ;;  %v2400_v62 = vshll.u32 %v12319_v63, 16  ;;  %v2399_v43 = vrot.slane %v2397_v54, 2  ;;  %v6326_v32 = vrot.slane %v12330_v4, 2 }
 0x23d   : > { %v8587_v27 = vsel %vm1562_vm2, %v8585_v58, %v8586_v12  ;;  %v12332_v58 = vld [vmem:[#allocation2 + $0x114] sm:$0xf8]   ;;  %v12333_v55 = vld [vmem:[#allocation2 + $0x11c] ss:$0 sps:$4 sm:$0xff]  }
 0x23e   : > { %11289 = vmatmul.mubr.msk.bf16.gmra.mrb[20].mxu0 %vm2562_vm15, %v13957_v52  ;;  %v6330_v9 = vpop.permute.xlu0 %6329  ;;  %v8584_v8 = vsel %vm1562_vm2, %v8582_v18, %v8583_v33  ;;  %v10386_v52 = vld.sshfl [vmem:[%s14655_s1 + $0x1c] sm:$0x3 pattern:$0x76325410]  ;;  %v12320_v18 = vld [vmem:[#allocation2 + $0xfc] sm:$0xfc]  }
 0x23f   : > { %11292 = vmatprep.mubr.msk.bf16.mxu0 %vm2562_vm15, %v13965_v42  ;;  %6401 = vst.msk [vmem:[#allocation3] sm:$0xff] %vm1707_vm12, %v6330_v9  ;;  %8635 = vrot.lane.b32.xlu1 %v8584_v8, %s12436_s5  ;;  %v10743_v42 = vld [vmem:[%s14655_s1 + $0x3c] sm:$0x3]  ;;  %v2391_v33 = vrot.slane %v2389_v26, 2  ;;  %v8588_v8 = vrot.slane %v12320_v18, 2  ;;  %v7093_v54 = vshll.u32 %v12333_v55, 16 }
 0x240   : > { %8897 = vrot.lane.b32.xlu0 %v12302_v2, %s12435_s4  ;;  %v9263_v1 = vcombine.low %v10743_v42, %v10744_v0  ;;  %7170 = vst.msk [vmem:[#allocation3] sm:$0xff] %vm2477_vm13, %v7099_v56  ;;  %v2394_v2 = vrot.slane %v2392_v11, 3  ;;  %v12321_v9 = vld [vmem:[#allocation2 + $0x104] ss:$0 sps:$4 sm:$0x33]   ;;  %v7082_v11 = vshrl.u32 %v12332_v58, 16 }
 0x241   : > { %8237 = vst.msk [vmem:[#allocation3] sm:$0xff] %vm1273_vm10, %v12292_v40  ;;  %v2402_v40 = vrot.slane %v2400_v62, 3  ;;  %v8589_v42 = vrot.slane %v12321_v9, 2  ;;  %v12335_v62 = vld [vmem:[#allocation2 + $0x110] ss:$0 sps:$4 sm:$0x33]  }
 0x242   : > { %v9270_v19 = vrot.slane %v9263_v1, %v13027_v35  ;;  %v8598_v20 = vpop.permute.xlu0 %8597  ;;  %v7777_v49 = vld [vmem:[#allocation3 + $0xb0] sm:$0xff]  ;;  %v2395_v45 = vor.u32 %v2394_v2, %v2391_v33  ;;  %v12325_v1 = vld [vmem:[#allocation2 + $0x100] sm:$0xff]   ;;  %v7084_v18 = vrot.slane %v7082_v11, 3 }
 0x243   : > { %11099 = vmatmul.mubr.msk.bf16.vlgmr.msra.gmra.mrb[0].mxu1 %vm2562_vm15, %v13183_v39  ;;  %8899 = vrot.lane.b32.xlu1 %v12303_v7, %s12435_s4  ;;  %v4863_v39 = vcombine.low %v4855_v28, %v10386_v52  ;;  %8669 = vst.msk [vmem:[#allocation3] sm:$0xff] %vm1707_vm12, %v8598_v20  ;;  %v8600_v3 = vpop.permute.xlu1 %8599  ;;  %v8590_v28 = vsel %vm1562_vm2, %v8588_v8, %v8589_v42  ;;  %v8592_v8 = vrot.slane %v12335_v62, 2  ;;  %v14678_v11 = vld [vmem:[#allocation7_spill] sm:$0xff]  ;;  %v14679_v62 = vld [vmem:[#allocation8_spill] sm:$0xff] }
 0x244   : > { %11102 = vmatprep.mubr.msk.bf16.mxu1 %vm2562_vm15, %v13188_v50  ;;  %v9278_v31 = vcombine.low %v9270_v19, %v10746_v38  ;;  %8670 = vst.msk [vmem:[#allocation3 + $0x8] sm:$0xff] %vm1707_vm12, %v8600_v3  ;;  %1681 = vrot.lane.b32.xlu0 %v1634_v6, %s12436_s5  ;;  %v2403_v38 = vor.u32 %v2402_v40, %v2399_v43  ;;  %v12329_v3 = vld [vmem:[#allocation2 + $0x11c] ss:$0 sps:$4 sm:$0x77]   ;;  %v7095_v40 = vrot.slane %v7093_v54, 4 }
 0x245   : > { %11758 = vmatprep.subr.msk.bf16.mxu1 %vm1562_vm2, %v4863_v39  ;;  %v4913_v60 = vsel %vm1562_vm2, %v4863_v39, 0  ;;  %v12327_v39 = vld [vmem:[#allocation2 + $0x11c] ss:$0 sps:$4 sm:$0x33]  }
 0x246   : > { %11293 = vmatmul.mubr.msk.bf16.gmra.mrb[24].mxu0 %vm2562_vm15, %v7775_v10  ;;  %11764 = vmatprep.subr.msk.bf16.mxu0 %vm1562_vm2, %v9278_v31  ;;  %v8862_v47 = vpop.permute.xlu0 %8861  ;;  %v9328_v7 = vsel %vm1562_vm2, %v9278_v31, 0  ;;  %v2404_v56 = vsel %vm1996_vm8, %v2395_v45, %v2403_v38  ;;  %v12326_v10 = vld [vmem:[#allocation2 + $0x114] sm:$0xfc]   ;;  %v4010_v57 = vrot.slane %v12327_v39, 2 }
 0x247   : > { %11296 = vmatprep.mubr.msk.bf16.mxu0 %vm2562_vm15, %v7776_v15  ;;  %11131 = vmatpush3.bf16.msra.mxu1 %v4913_v60  ;;  %8933 = vst.msk [vmem:[#allocation3] sm:$0xff] %vm2477_vm13, %v8862_v47  ;;  %v8864_v46 = vpop.permute.xlu1 %8863  ;;  %v12324_v15 = vld [vmem:[#allocation2 + $0xf4] sm:$0xff]   ;;  %v4009_v60 = vrot.slane %v12326_v10, 2  ;;  %v12337_v45 = vld [vmem:[#allocation2 + $0x11c] ss:$0 sps:$4 sm:$0x33]  }
 0x248   : > { %8934 = vst.msk [vmem:[#allocation3 + $0x8] sm:$0xff] %vm2477_vm13, %v8864_v46  ;;  %8637 = vrot.lane.b32.xlu1 %v8587_v27, %s12436_s5  ;;  %2451 = vrot.lane.b32.xlu0 %v2404_v56, %s12435_s4  ;;  %v4443_v46 = vrot.slane %v12329_v3, 3  ;;  %v12334_v27 = vld [vmem:[#allocation2 + $0x108] sm:$0xfc]   ;;  %v8595_v56 = vrot.slane %v12337_v45, 2 }
 0x249   : > { %v4011_v25 = vsel %vm1562_vm2, %v4009_v60, %v4010_v57  ;;  %v8591_v9 = vrot.slane %v12334_v27, 2  ;;  %v10403_v10 = vld [vmem:[%s14655_s1 + $0x1e] sm:$0x3]  ;;  %v10404_v39 = vld [vmem:[%s14655_s1 + $0x20] sm:$0x3] }
 0x24a   : > { %v8602_v61 = vpop.permute.xlu0 %8601  ;;  %v5132_v60 = vcombine.low %v10403_v10, %v10404_v39  ;;  %v10763_v57 = vld [vmem:[%s14655_s1 + $0x42] sm:$0x3] }
 0x24b   : > { %11103 = vmatmul.mubr.msk.bf16.gmra.mrb[4].mxu1 %vm2562_vm15, %v13330_v30  ;;  %8671 = vst.msk [vmem:[#allocation3 + $0x10] sm:$0xff] %vm1707_vm12, %v8602_v61  ;;  %v8604_v13 = vpop.permute.xlu1 %8603  ;;  %v4444_v61 = vsel %vm4372_vm1, %v4442_v48, %v4443_v46  ;;  %v8593_v38 = vsel %vm1562_vm2, %v8591_v9, %v8592_v8  ;;  %v9547_v48 = vcombine.low %v10763_v57, %v10764_v44  ;;  %v12339_v46 = vld [vmem:[#allocation2 + $0x118] sm:$0xff]  }
 0x24c   : > { %11106 = vmatprep.mubr.msk.bf16.mxu1 %vm2562_vm15, %v13345_v53  ;;  %8672 = vst.msk [vmem:[#allocation3 + $0x18] sm:$0xff] %vm1707_vm12, %v8604_v13  ;;  %8639 = vrot.lane.b32.xlu1 %v8590_v28, %s12436_s5  ;;  %v5139_v4 = vrot.slane %v5132_v60, %v13027_v35 }
 0x24d   : > { %8901 = vrot.lane.b32.xlu0 %v12324_v15, %s12435_s4 }
 0x24e   : > { %11297 = vmatmul.mubr.msk.bf16.gmra.mrb[28].mxu0 %vm2562_vm15, %v7777_v49  ;;  %v8866_v41 = vpop.permute.xlu0 %8865  ;;  %v8957_v34 = vld [vmem:[#allocation3] sm:$0xff]  ;;  %v12331_v49 = vld [vmem:[#allocation2 + $0x11c] ss:$0 sps:$4 sm:$0x33]  }
 0x24f   : > { %8935 = vst.msk [vmem:[#allocation3 + $0x10] sm:$0xff] %vm2477_vm13, %v8866_v41  ;;  %11302 = vmatprep.mubr.msk.bf16.mxu0 %vm2562_vm15, %v8957_v34  ;;  %v8868_v59 = vpop.permute.xlu1 %8867  ;;  %v8958_v52 = vld [vmem:[#allocation3 + $0x8] sm:$0xff]  ;;  %v6327_v6 = vrot.slane %v12331_v49, 2  ;;  %v7085_v41 = vshll.u32 %v12332_v58, 16  ;;  %v7090_v34 = vshrl.u32 %v12333_v55, 16  ;;  %v9554_v49 = vrot.slane %v9547_v48, %v13027_v35 }
 0x250   : > { %8936 = vst.msk [vmem:[#allocation3 + $0x18] sm:$0xff] %vm2477_vm13, %v8868_v59  ;;  %8903 = vrot.lane.b32.xlu1 %v12325_v1, %s12435_s4  ;;  %v12338_v1 = vld [vmem:[#allocation2 + $0x10c] sm:$0xff]   ;;  %v12344_v58 = vld [vmem:[#allocation2 + $0x114] sm:$0xfe]  }
 0x251   : > { %4058 = vrot.lane.b32.xlu0 %v4011_v25, %s12436_s5  ;;  %v6328_v26 = vsel %vm1562_vm2, %v6326_v32, %v6327_v6  ;;  %v7087_v33 = vrot.slane %v7085_v41, 4  ;;  %v7092_v2 = vrot.slane %v7090_v34, 3  ;;  %v12345_v55 = vld [vmem:[#allocation2 + $0x11c] ss:$0 sps:$4 sm:$0x33]   ;;  %v1233_v35 = vshrl.u32 %v12344_v58, 16 }
 0x252   : > { %v8606_v0 = vpop.permute.xlu0 %8605  ;;  %v1241_v41 = vshrl.u32 %v12345_v55, 16  ;;  %v1244_v34 = vshll.u32 %v12345_v55, 16 }
 0x253   : > { %11107 = vmatmul.mubr.msk.bf16.gmra.mrb[8].mxu1 %vm2562_vm15, %v13391_v16  ;;  %8673 = vst.msk [vmem:[#allocation3 + $0x20] sm:$0xff] %vm1707_vm12, %v8606_v0  ;;  %v8608_v19 = vpop.permute.xlu1 %8607  ;;  %v7088_v59 = vor.u32 %v7087_v33, %v7084_v18  ;;  %v7096_v0 = vor.u32 %v7095_v40, %v7092_v2  ;;  %v1235_v18 = vrot.slane %v1233_v35, 1  ;;  %v12347_v2 = vld [vmem:[#allocation2 + $0xfc] sm:$0xff]  }
 0x254   : > { %11110 = vmatprep.mubr.msk.bf16.mxu1 %vm2562_vm15, %v13395_v5  ;;  %8674 = vst.msk [vmem:[#allocation3 + $0x28] sm:$0xff] %vm1707_vm12, %v8608_v19  ;;  %4491 = vrot.lane.b32.xlu1 %v4444_v61, %s12435_s4  ;;  %v1243_v9 = vrot.slane %v1241_v41, 1  ;;  %v12351_v41 = vld [vmem:[#allocation2 + $0x11c] ss:$0 sps:$4 sm:$0x11]  }
 0x255   : > { %6375 = vrot.lane.b32.xlu0 %v6328_v26, %s12436_s5  ;;  %v7097_v15 = vsel %vm6689_vm9, %v7088_v59, %v7096_v0  ;;  %v12346_v26 = vld [vmem:[#allocation2 + $0xf0] sm:$0xff]   ;;  %8258 = vst.msk [vmem:[#allocation3 + $0xa8] sm:$0xff] %vm1273_vm10, %v12347_v2  ;;  %v5941_v2 = vshll.u32 %v12351_v41, 16 }
 0x256   : > { %11303 = vmatmul.mubr.msk.bf16.vlgmr.msra.gmra.mrb[0].mxu0 %vm2562_vm15, %v8958_v52  ;;  %v8870_v20 = vpop.permute.xlu0 %8869  ;;  %v8959_v31 = vld [vmem:[#allocation3 + $0x10] sm:$0xff]  ;;  %8257 = vst.msk [vmem:[#allocation3 + $0xa0] sm:$0xff] %vm1273_vm10, %v12346_v26 }
 0x257   : > { %11335 = vmatpush3.bf16.msra.mxu0 %v9328_v7  ;;  %8937 = vst.msk [vmem:[#allocation3 + $0x20] sm:$0xff] %vm2477_vm13, %v8870_v20  ;;  %11306 = vmatprep.mubr.msk.bf16.mxu0 %vm2562_vm15, %v8959_v31  ;;  %v8872_v47 = vpop.permute.xlu1 %8871  ;;  %v8960_v51 = vld [vmem:[#allocation3 + $0x18] sm:$0xff]  ;;  %v14680_v0 = vld [vmem:[#allocation9_spill] sm:$0xff] }
 0x258   : > { %8938 = vst.msk [vmem:[#allocation3 + $0x28] sm:$0xff] %vm2477_vm13, %v8872_v47  ;;  %v12336_v52 = vld [vmem:[#allocation2 + $0x114] sm:$0xfc]   ;;  %7144 = vrot.lane.b32.xlu1 %v7097_v15, %s12435_s4 }
 0x259   : > { %v8594_v28 = vrot.slane %v12336_v52, 2  ;;  %8641 = vrot.lane.b32.xlu0 %v8593_v38, %s12436_s5  ;;  %v10406_v20 = vld.sshfl [vmem:[%s14655_s1 + $0x22] sm:$0x3 pattern:$0x76325410] }
 0x25a   : > { %v8610_v21 = vpop.permute.xlu0 %8609  ;;  %v5147_v61 = vcombine.low %v5139_v4, %v10406_v20  ;;  %v14681_v4 = vld [vmem:[#allocation10_spill] sm:$0xff] }
 0x25b   : > { %11111 = vmatmul.mubr.msk.bf16.gmra.mrb[12].mxu1 %vm2562_vm15, %v13462_v14  ;;  %8675 = vst.msk [vmem:[#allocation3 + $0x30] sm:$0xff] %vm1707_vm12, %v8610_v21  ;;  %v8612_v12 = vpop.permute.xlu1 %8611  ;;  %v8596_v47 = vsel %vm1562_vm2, %v8594_v28, %v8595_v56 }
 0x25c   : > { %11114 = vmatprep.mubr.msk.bf16.mxu1 %vm2562_vm15, %v13472_v17  ;;  %8676 = vst.msk [vmem:[#allocation3 + $0x38] sm:$0xff] %vm1707_vm12, %v8612_v12  ;;  %8643 = vrot.lane.b32.xlu1 %v8596_v47, %s12436_s5  ;;  %s194_s5 = sand.u32 1, %s12416_s13  }
 0x25d   : > { %8905 = vrot.lane.b32.xlu0 %v12338_v1, %s12435_s4  ;;  %11759 = vmatprep.subr.msk.bf16.mxu1 %vm1562_vm2, %v5147_v61  ;;  %s10014_s28 = sshll.u32 %s194_s5, 8  ;;  %s14607_s15 = scalar_lea.sflag [#allocation5], %s194_s5 }
 0x25e   : > { %11307 = vmatmul.mubr.msk.bf16.gmra.mrb[4].mxu0 %vm2562_vm15, %v8960_v51  ;;  %v8874_v63 = vpop.permute.xlu0 %8873  ;;  %v14244_v13 = vld [vmem:[#allocation3 + $0x20] sm:$0xff]  ;;  %v10766_v51 = vld.sshfl [vmem:[%s14655_s1 + $0x46] sm:$0x3 pattern:$0x76325410]  ;;  %s14532_s6 = scalar_lea.vmem [#allocation4], %s10014_s28 }
 0x25f   : > { %8939 = vst.msk [vmem:[#allocation3 + $0x30] sm:$0xff] %vm2477_vm13, %v8874_v63  ;;  %11310 = vmatprep.mubr.msk.bf16.mxu0 %vm2562_vm15, %v14244_v13  ;;  %v8876_v7 = vpop.permute.xlu1 %8875  ;;  %v14254_v43 = vld [vmem:[#allocation3 + $0x28] sm:$0xff]  ;;  %v14303_v6 = vcombine.low %v9554_v49, %v10766_v51  ;;  %v1236_v63 = vshll.u32 %v12344_v58, 16  ;;  %v14682_v49 = vld [vmem:[#allocation11_spill] sm:$0xff]  ;;  %s9917_s8 = sshll.u32 %s14532_s6, 4  ;;  %s14601_s8 = int_to_ptr.vmem [resolvable:$true] %s9917_s8 }
 0x260   : > { %8940 = vst.msk [vmem:[#allocation3 + $0x38] sm:$0xff] %vm2477_vm13, %v8876_v7  ;;  %8907 = vrot.lane.b32.xlu1 %v12339_v46, %s12435_s4  ;;  %v1246_v7 = vrot.slane %v1244_v34, 2  ;;  %v12349_v58 = vld [vmem:[#allocation2 + $0x11c] ss:$0 sps:$4 sm:$0x11]   ;;  %s12354_s18 = scalar_lea.vmem %s14601_s8, 4096  ;;  %p12361_p1 = scmp.lt.s32.totalorder %s14601_s8, %s12359_s21 }
 0x261   : > { %11765 = vmatprep.subr.msk.bf16.mxu0 %vm1562_vm2, %v14303_v6  ;;  %v1238_v33 = vrot.slane %v1236_v63, 2  ;;  %v9612_v47 = vsel %vm1562_vm2, %v14303_v6, 0  ;;  %v12348_v6 = vld [vmem:[#allocation2 + $0x114] sm:$0xfe]   ;;  %v3626_v26 = vrot.slane %v12349_v58, 1  ;;  %p12355_p12 = scmp.ne.s32.totalorder %s14601_s8, %s12354_s18  ;;  %p12362_p2 = scmp.lt.s32.totalorder %s12360_s23, %s12354_s18 }
 0x262   : > { %v8614_v42 = vpop.permute.xlu0 %8613  ;;  %v1247_v52 = vor.u32 %v1246_v7, %v1243_v9  ;;  %v3625_v63 = vrot.slane %v12348_v6, 1 }
 0x263   : > { %11115 = vmatmul.mubr.msk.bf16.gmra.mrb[16].mxu1 %vm2562_vm15, %v13569_v37  ;;  %8677 = vst.msk [vmem:[#allocation3 + $0x40] sm:$0xff] %vm1707_vm12, %v8614_v42  ;;  %v8616_v19 = vpop.permute.xlu1 %8615  ;;  %v1239_v59 = vor.u32 %v1238_v33, %v1235_v18  ;;  %p12356_p13 = pnand %p12355_p12, %p12500_p4  ;;  %p12363_p3 = por %p12362_p2, %p12361_p1 }
 0x264   : > { %11118 = vmatprep.mubr.msk.bf16.mxu1 %vm2562_vm15, %v13571_v23  ;;  %8678 = vst.msk [vmem:[#allocation3 + $0x48] sm:$0xff] %vm1707_vm12, %v8616_v19  ;;  %v5197_v19 = vsel %vm1562_vm2, %v5147_v61, 0  ;;  %v3627_v34 = vsel %vm3555_vm14, %v3625_v63, %v3626_v26 }
 0x265   : > { %v1248_v45 = vsel %vm840_vm11, %v1239_v59, %v1247_v52  ;;  %v5943_v59 = vrot.slane %v5941_v2, 1  ;;  %p12357_p0 = pneg %p12356_p13 }
 0x266   : > { %11311 = vmatmul.mubr.msk.bf16.gmra.mrb[8].mxu0 %vm2562_vm15, %v14254_v43  ;;  %v14274_v31 = vld [vmem:[#allocation3 + $0x30] sm:$0xff]  ;;  %v8878_v3 = vpop.permute.xlu0 %8877  ;;  %1297 = vst.msk [vmem:[#allocation3 + $0xb8] sm:$0xff] %vm1273_vm10, %v1248_v45 }
 0x267   : > { %11314 = vmatprep.mubr.msk.bf16.mxu0 %vm2562_vm15, %v14274_v31  ;;  %8941 = vst.msk [vmem:[#allocation3 + $0x40] sm:$0xff] %vm2477_vm13, %v8878_v3  ;;  %v8880_v21 = vpop.permute.xlu1 %8879  ;;  %v14295_v25 = vld [vmem:[#allocation3 + $0x38] sm:$0xff]  ;;  %p12364_p5 = pnand %p12363_p3, %p12357_p0 }
 0x268   : > { %8942 = vst.msk [vmem:[#allocation3 + $0x48] sm:$0xff] %vm2477_vm13, %v8880_v21 }
 0x26a   : > { %v8618_v32 = vpop.permute.xlu0 %8617 }
 0x26b   : > { %11119 = vmatmul.mubr.msk.bf16.gmra.mrb[20].mxu1 %vm2562_vm15, %v13605_v22  ;;  %8679 = vst.msk [vmem:[#allocation3 + $0x50] sm:$0xff] %vm1707_vm12, %v8618_v32  ;;  %v8620_v12 = vpop.permute.xlu1 %8619 }
 0x26c   : > { %11122 = vmatprep.mubr.msk.bf16.mxu1 %vm2562_vm15, %v13619_v29  ;;  %8680 = vst.msk [vmem:[#allocation3 + $0x58] sm:$0xff] %vm1707_vm12, %v8620_v12 }
 0x26e   : > { %11315 = vmatmul.mubr.msk.bf16.gmra.mrb[12].mxu0 %vm2562_vm15, %v14295_v25  ;;  %v8882_v27 = vpop.permute.xlu0 %8881  ;;  %v14313_v54 = vld [vmem:[#allocation3 + $0x40] sm:$0xff] }
 0x26f   : > { %8943 = vst.msk [vmem:[#allocation3 + $0x50] sm:$0xff] %vm2477_vm13, %v8882_v27  ;;  %11318 = vmatprep.mubr.msk.bf16.mxu0 %vm2562_vm15, %v14313_v54  ;;  %v8884_v40 = vpop.permute.xlu1 %8883  ;;  %v14321_v8 = vld [vmem:[#allocation3 + $0x48] sm:$0xff] }
 0x270   : > { %8944 = vst.msk [vmem:[#allocation3 + $0x58] sm:$0xff] %vm2477_vm13, %v8884_v40 }
 0x272   : > { %v8622_v42 = vpop.permute.xlu0 %8621 }
 0x273   : > { %11123 = vmatmul.mubr.msk.bf16.gmra.mrb[24].mxu1 %vm2562_vm15, %v14678_v11  ;;  %8681 = vst.msk [vmem:[#allocation3 + $0x60] sm:$0xff] %vm1707_vm12, %v8622_v42 }
 0x274   : > { %11126 = vmatprep.mubr.msk.bf16.mxu1 %vm2562_vm15, %v14679_v62 }
 0x276   : > { %11319 = vmatmul.mubr.msk.bf16.gmra.mrb[16].mxu0 %vm2562_vm15, %v14321_v8  ;;  %v14332_v1 = vld [vmem:[#allocation3 + $0x50] sm:$0xff] }
 0x277   : > { %11322 = vmatprep.mubr.msk.bf16.mxu0 %vm2562_vm15, %v14332_v1  ;;  %v8886_v28 = vpop.permute.xlu0 %8885  ;;  %v14339_v56 = vld [vmem:[#allocation3 + $0x58] sm:$0xff] }
 0x278   : > { %8945 = vst.msk [vmem:[#allocation3 + $0x60] sm:$0xff] %vm2477_vm13, %v8886_v28 }
 0x27a   : > { %v8624_v38 = vpop.permute.xlu1 %8623 }
 0x27b   : > { %11127 = vmatmul.mubr.msk.bf16.gmra.mrb[28].mxu1 %vm2562_vm15, %v14680_v0  ;;  %8682 = vst.msk [vmem:[#allocation3 + $0x68] sm:$0xff] %vm1707_vm12, %v8624_v38  ;;  %v8626_v15 = vpop.permute.xlu0 %8625 }
 0x27c   : > { %11132 = vmatprep.mubr.msk.bf16.mxu1 %vm2562_vm15, %v13188_v50  ;;  %v12352_v50 = vld [vmem:[#allocation2 + $0x108] sm:$0xff]   ;;  %8683 = vst.msk [vmem:[#allocation3 + $0x70] sm:$0xff] %vm1707_vm12, %v8626_v15 }
 0x27d   : > { %8259 = vst.msk [vmem:[#allocation3 + $0xb0] sm:$0xff] %vm1273_vm10, %v12352_v50 }
 0x27e   : > { %v8888_v10 = vpop.permute.xlu1 %8887  ;;  %11323 = vmatmul.mubr.msk.bf16.gmra.mrb[20].mxu0 %vm2562_vm15, %v14339_v56 }
 0x27f   : > { %8946 = vst.msk [vmem:[#allocation3 + $0x68] sm:$0xff] %vm2477_vm13, %v8888_v10  ;;  %v8890_v20 = vpop.permute.xlu0 %8889  ;;  %v14353_v60 = vld [vmem:[#allocation3 + $0x60] sm:$0xff] }
 0x280   : > { %8947 = vst.msk [vmem:[#allocation3 + $0x70] sm:$0xff] %vm2477_vm13, %v8890_v20  ;;  %11326 = vmatprep.mubr.msk.bf16.mxu0 %vm2562_vm15, %v14353_v60 }
 0x282   : > { %v8628_v39 = vpop.permute.xlu1 %8627 }
 0x283   : > { %11133 = vmatmul.mubr.msk.bf16.vlgmr.msra.gmra.mrb[0].mxu1 %vm2562_vm15, %v13330_v30  ;;  %8684 = vst.msk [vmem:[#allocation3 + $0x78] sm:$0xff] %vm1707_vm12, %v8628_v39 }
 0x284   : > { %11165 = vmatpush3.bf16.msra.mxu1 %v5197_v19  ;;  %11136 = vmatprep.mubr.msk.bf16.mxu1 %vm2562_vm15, %v13345_v53 }
 0x286   : > { %v8892_v57 = vpop.permute.xlu1 %8891  ;;  %v14358_v44 = vld [vmem:[#allocation3 + $0x68] sm:$0xff] }
 0x287   : > { %8948 = vst.msk [vmem:[#allocation3 + $0x78] sm:$0xff] %vm2477_vm13, %v8892_v57  ;;  %11327 = vmatmul.mubr.msk.bf16.gmra.mrb[24].mxu0 %vm2562_vm15, %v14358_v44  ;;  %v14367_v30 = vld [vmem:[#allocation3 + $0x70] sm:$0xff]  ;;  %v14528_v57 = vld [vmem:[%s14656_s2] ss:$0 sm:$0xff] }
 0x288   : > { %11330 = vmatprep.mubr.msk.bf16.mxu0 %vm2562_vm15, %v14367_v30 }
 0x28b   : > { %11137 = vmatmul.mubr.msk.bf16.gmra.mrb[4].mxu1 %vm2562_vm15, %v13391_v16 }
 0x28c   : > { %11140 = vmatprep.mubr.msk.bf16.mxu1 %vm2562_vm15, %v13395_v5 }
 0x28e   : > { %v14371_v3 = vld [vmem:[#allocation3 + $0x78] sm:$0xff] }
 0x28f   : > { %11331 = vmatmul.mubr.msk.bf16.gmra.mrb[28].mxu0 %vm2562_vm15, %v14371_v3 }
 0x290   : > { %11336 = vmatprep.mubr.msk.bf16.mxu0 %vm2562_vm15, %v14244_v13 }
 0x293   : > { %11141 = vmatmul.mubr.msk.bf16.gmra.mrb[8].mxu1 %vm2562_vm15, %v13462_v14 }
 0x294   : > { %11144 = vmatprep.mubr.msk.bf16.mxu1 %vm2562_vm15, %v13472_v17 }
 0x297   : > { %11337 = vmatmul.mubr.msk.bf16.vlgmr.msra.gmra.mrb[0].mxu0 %vm2562_vm15, %v14254_v43 }
 0x298   : > { %11369 = vmatpush3.bf16.msra.mxu0 %v9612_v47  ;;  %11340 = vmatprep.mubr.msk.bf16.mxu0 %vm2562_vm15, %v14274_v31 }
 0x29b   : > { %11145 = vmatmul.mubr.msk.bf16.gmra.mrb[12].mxu1 %vm2562_vm15, %v13569_v37 }
 0x29c   : > { %11148 = vmatprep.mubr.msk.bf16.mxu1 %vm2562_vm15, %v13571_v23 }
 0x29f   : > { %11341 = vmatmul.mubr.msk.bf16.gmra.mrb[4].mxu0 %vm2562_vm15, %v14295_v25 }
 0x2a0   : > { %11344 = vmatprep.mubr.msk.bf16.mxu0 %vm2562_vm15, %v14313_v54 }
 0x2a3   : > { %11149 = vmatmul.mubr.msk.bf16.gmra.mrb[16].mxu1 %vm2562_vm15, %v13605_v22 }
 0x2a4   : > { %11152 = vmatprep.mubr.msk.bf16.mxu1 %vm2562_vm15, %v13619_v29 }
 0x2a5   : > { %v8630_v13 = vpop.permute.xlu0 %8629 }
 0x2a6   : > { %8685 = vst.msk [vmem:[#allocation3 + $0x80] sm:$0xff] %vm1707_vm12, %v8630_v13 }
 0x2a7   : > { %11345 = vmatmul.mubr.msk.bf16.gmra.mrb[8].mxu0 %vm2562_vm15, %v14321_v8 }
 0x2a8   : > { %11348 = vmatprep.mubr.msk.bf16.mxu0 %vm2562_vm15, %v14332_v1  ;;  %v8632_v43 = vpop.permute.xlu1 %8631 }
 0x2a9   : > { %8686 = vst.msk [vmem:[#allocation3 + $0x88] sm:$0xff] %vm1707_vm12, %v8632_v43  ;;  %v8894_v31 = vpop.permute.xlu0 %8893 }
 0x2aa   : > { %8949 = vst.msk [vmem:[#allocation3 + $0x80] sm:$0xff] %vm2477_vm13, %v8894_v31 }
 0x2ab   : > { %11153 = vmatmul.mubr.msk.bf16.gmra.mrb[20].mxu1 %vm2562_vm15, %v14678_v11 }
 0x2ac   : > { %11156 = vmatprep.mubr.msk.bf16.mxu1 %vm2562_vm15, %v14679_v62  ;;  %v8896_v51 = vpop.permute.xlu1 %8895 }
 0x2ad   : > { %8950 = vst.msk [vmem:[#allocation3 + $0x88] sm:$0xff] %vm2477_vm13, %v8896_v51  ;;  %v8634_v48 = vpop.permute.xlu0 %8633 }
 0x2ae   : > { %8687 = vst.msk [vmem:[#allocation3 + $0x90] sm:$0xff] %vm1707_vm12, %v8634_v48 }
 0x2af   : > { %11349 = vmatmul.mubr.msk.bf16.gmra.mrb[12].mxu0 %vm2562_vm15, %v14339_v56 }
 0x2b0   : > { %11352 = vmatprep.mubr.msk.bf16.mxu0 %vm2562_vm15, %v14353_v60 }
 0x2b1   : > { %v8636_v46 = vpop.permute.xlu1 %8635  ;;  %v14431_v61 = vld [vmem:[#allocation3 + $0x80] sm:$0xff] }
 0x2b2   : > { %8688 = vst.msk [vmem:[#allocation3 + $0x98] sm:$0xff] %vm1707_vm12, %v8636_v46  ;;  %v8898_v21 = vpop.permute.xlu0 %8897 }
 0x2b3   : > { %11157 = vmatmul.mubr.msk.bf16.gmra.mrb[24].mxu1 %vm2562_vm15, %v14680_v0  ;;  %8951 = vst.msk [vmem:[#allocation3 + $0x90] sm:$0xff] %vm2477_vm13, %v8898_v21 }
 0x2b4   : > { %11160 = vmatprep.mubr.msk.bf16.mxu1 %vm2562_vm15, %v14681_v4  ;;  %v14442_v55 = vld [vmem:[#allocation3 + $0x88] sm:$0xff] }
 0x2b5   : > { %v8900_v25 = vpop.permute.xlu1 %8899 }
 0x2b6   : > { %8952 = vst.msk [vmem:[#allocation3 + $0x98] sm:$0xff] %vm2477_vm13, %v8900_v25  ;;  %v1682_v32 = vpop.permute.xlu0 %1681 }
 0x2b7   : > { %11353 = vmatmul.mubr.msk.bf16.gmra.mrb[16].mxu0 %vm2562_vm15, %v14358_v44  ;;  %1731 = vst.msk [vmem:[#allocation3 + $0xb8] sm:$0xff] %vm1707_vm12, %v1682_v32 }
 0x2b8   : > { %11356 = vmatprep.mubr.msk.bf16.mxu0 %vm2562_vm15, %v14367_v30 }
 0x2ba   : > { %v14444_v12 = vld [vmem:[#allocation3 + $0x90] sm:$0xff]  ;;  %v8638_v35 = vpop.permute.xlu1 %8637  ;;  %v2452_v27 = vpop.permute.xlu0 %2451 }
 0x2bb   : > { %11161 = vmatmul.mubr.msk.bf16.gmra.mrb[28].mxu1 %vm2562_vm15, %v14682_v49  ;;  %8689 = vst.msk [vmem:[#allocation3 + $0xa0] sm:$0xff] %vm1707_vm12, %v8638_v35 }
 0x2bc   : > { %11166 = vmatprep.mubr.msk.bf16.mxu1 %vm2562_vm15, %v13345_v53  ;;  %v12350_v53 = vld [vmem:[#allocation2 + $0x114] sm:$0xff]   ;;  %2501 = vst.msk [vmem:[#allocation3 + $0xb8] sm:$0xff] %vm2477_vm13, %v2452_v27 }
 0x2bd   : > { %v5934_v18 = vshrl.u32 %v12350_v53, 16  ;;  %v9255_v9 = vld [vmem:[#allocation3 + $0x98] sm:$0xff]  ;;  %3675 = vst.msk [vmem:[#allocation3 + $0xb8] sm:$0xff] %vm1273_vm10, %v3627_v34 }
 0x2bf   : > { %11357 = vmatmul.mubr.msk.bf16.gmra.mrb[20].mxu0 %vm2562_vm15, %v14371_v3  ;;  %v8902_v40 = vpop.permute.xlu0 %8901 }
 0x2c0   : > { %11360 = vmatprep.mubr.msk.bf16.mxu0 %vm2562_vm15, %v14431_v61  ;;  %8953 = vst.msk [vmem:[#allocation3 + $0xa0] sm:$0xff] %vm2477_vm13, %v8902_v40 }
 0x2c3   : > { %11167 = vmatmul.mubr.msk.bf16.vlgmr.msra.gmra.mrb[0].mxu1 %vm2562_vm15, %v13391_v16  ;;  %v5936_v16 = vshll.u32 %v12350_v53, 16  ;;  %v4059_v52 = vpop.permute.xlu0 %4058 }
 0x2c4   : > { %11170 = vmatprep.mubr.msk.bf16.mxu1 %vm2562_vm15, %v13395_v5  ;;  %v8640_v5 = vpop.permute.xlu1 %8639  ;;  %4107 = vst.msk [vmem:[#allocation3 + $0xb8] sm:$0xff] %vm1707_vm12, %v4059_v52 }
 0x2c5   : > { %8690 = vst.msk [vmem:[#allocation3 + $0xa8] sm:$0xff] %vm1707_vm12, %v8640_v5  ;;  %v5938_v33 = vrot.slane %v5936_v16, 1 }
 0x2c7   : > { %11361 = vmatmul.mubr.msk.bf16.gmra.mrb[24].mxu0 %vm2562_vm15, %v14442_v55  ;;  %v6376_v42 = vpop.permute.xlu0 %6375 }
 0x2c8   : > { %11364 = vmatprep.mubr.msk.bf16.mxu0 %vm2562_vm15, %v14444_v12  ;;  %v8904_v7 = vpop.permute.xlu1 %8903 }
 0x2c9   : > { %8954 = vst.msk [vmem:[#allocation3 + $0xa8] sm:$0xff] %vm2477_vm13, %v8904_v7 }
 0x2cb   : > { %11171 = vmatmul.mubr.msk.bf16.gmra.mrb[4].mxu1 %vm2562_vm15, %v13462_v14  ;;  %v5939_v14 = vor.u32 %v5938_v33, %v5934_v18 }
 0x2cc   : > { %11174 = vmatprep.mubr.msk.bf16.mxu1 %vm2562_vm15, %v13472_v17  ;;  %v4492_v17 = vpop.permute.xlu1 %4491 }
 0x2cd   : > { %v5944_v45 = vsel %vm5656_vm3, %v5939_v14, %v5943_v59  ;;  %4540 = vst.msk [vmem:[#allocation3 + $0xb8] sm:$0xff] %vm2477_vm13, %v4492_v17 }
 0x2ce   : > { %5992 = vst.msk [vmem:[#allocation3 + $0xb8] sm:$0xff] %vm1273_vm10, %v5944_v45 }
 0x2cf   : > { %11365 = vmatmul.mubr.msk.bf16.gmra.mrb[28].mxu0 %vm2562_vm15, %v9255_v9  ;;  %6424 = vst.msk [vmem:[#allocation3 + $0xb8] sm:$0xff] %vm1707_vm12, %v6376_v42 }
 0x2d0   : > { %11370 = vmatprep.mubr.msk.bf16.mxu0 %vm2562_vm15, %v14313_v54  ;;  %v7145_v54 = vpop.permute.xlu1 %7144 }
 0x2d1   : > { %7193 = vst.msk [vmem:[#allocation3 + $0xb8] sm:$0xff] %vm2477_vm13, %v7145_v54 }
 0x2d3   : > { %11175 = vmatmul.mubr.msk.bf16.gmra.mrb[8].mxu1 %vm2562_vm15, %v13569_v37  ;;  %v12353_v37 = vld [vmem:[#allocation2 + $0x114] sm:$0xff]  }
 0x2d4   : > { %11178 = vmatprep.mubr.msk.bf16.mxu1 %vm2562_vm15, %v13571_v23  ;;  %v8642_v23 = vpop.permute.xlu0 %8641  ;;  %8260 = vst.msk [vmem:[#allocation3 + $0xb8] sm:$0xff] %vm1273_vm10, %v12353_v37  ;;  %v8644_v38 = vpop.permute.xlu1 %8643 }
 0x2d5   : > { %8691 = vst.msk [vmem:[#allocation3 + $0xb0] sm:$0xff] %vm1707_vm12, %v8642_v23  ;;  %8692 = vst.msk [vmem:[#allocation3 + $0xb8] sm:$0xff] %vm1707_vm12, %v8644_v38 }
 0x2d7   : > { %11371 = vmatmul.mubr.msk.bf16.vlgmr.msra.gmra.mrb[0].mxu0 %vm2562_vm15, %v14321_v8 }
 0x2d8   : > { %11374 = vmatprep.mubr.msk.bf16.mxu0 %vm2562_vm15, %v14332_v1  ;;  %v8906_v8 = vpop.permute.xlu0 %8905 }
 0x2d9   : > { %8955 = vst.msk [vmem:[#allocation3 + $0xb0] sm:$0xff] %vm2477_vm13, %v8906_v8 }
 0x2db   : > { %11179 = vmatmul.mubr.msk.bf16.gmra.mrb[12].mxu1 %vm2562_vm15, %v13605_v22  ;;  %v8908_v22 = vpop.permute.xlu1 %8907 }
 0x2dc   : > { %11182 = vmatprep.mubr.msk.bf16.mxu1 %vm2562_vm15, %v13619_v29  ;;  %8956 = vst.msk [vmem:[#allocation3 + $0xb8] sm:$0xff] %vm2477_vm13, %v8908_v22  ;;  %v9536_v29 = vld [vmem:[#allocation3 + $0xa0] sm:$0xff] }
 0x2df   : > { %11375 = vmatmul.mubr.msk.bf16.gmra.mrb[4].mxu0 %vm2562_vm15, %v14339_v56 }
 0x2e0   : > { %11378 = vmatprep.mubr.msk.bf16.mxu0 %vm2562_vm15, %v14353_v60 }
 0x2e3   : > { %11183 = vmatmul.mubr.msk.bf16.gmra.mrb[16].mxu1 %vm2562_vm15, %v14678_v11  ;;  %v9538_v11 = vld [vmem:[#allocation3 + $0xb0] sm:$0xff] }
 0x2e4   : > { %11186 = vmatprep.mubr.msk.bf16.mxu1 %vm2562_vm15, %v14679_v62  ;;  %v9537_v62 = vld [vmem:[#allocation3 + $0xa8] sm:$0xff] }
 0x2e7   : > { %11379 = vmatmul.mubr.msk.bf16.gmra.mrb[8].mxu0 %vm2562_vm15, %v14358_v44 }
 0x2e8   : > { %11382 = vmatprep.mubr.msk.bf16.mxu0 %vm2562_vm15, %v14367_v30 }
 0x2eb   : > { %11187 = vmatmul.mubr.msk.bf16.gmra.mrb[20].mxu1 %vm2562_vm15, %v14680_v0 }
 0x2ec   : > { %11190 = vmatprep.mubr.msk.bf16.mxu1 %vm2562_vm15, %v14681_v4 }
 0x2ef   : > { %11383 = vmatmul.mubr.msk.bf16.gmra.mrb[12].mxu0 %vm2562_vm15, %v14371_v3 }
 0x2f0   : > { %11386 = vmatprep.mubr.msk.bf16.mxu0 %vm2562_vm15, %v14431_v61 }
 0x2f3   : > { %11191 = vmatmul.mubr.msk.bf16.gmra.mrb[24].mxu1 %vm2562_vm15, %v14682_v49 }
 0x2f4   : > { %11194 = vmatprep.mubr.msk.bf16.mxu1 %vm2562_vm15, %v14089_v24  ;;  %v9539_v24 = vld [vmem:[#allocation3 + $0xb8] sm:$0xff] }
 0x2f7   : > { %11387 = vmatmul.mubr.msk.bf16.gmra.mrb[16].mxu0 %vm2562_vm15, %v14442_v55 }
 0x2f8   : > { %11390 = vmatprep.mubr.msk.bf16.mxu0 %vm2562_vm15, %v14444_v12 }
 0x2fb   : > { %11195 = vmatmul.mubr.msk.bf16.gmra.mrb[28].mxu1 %vm2562_vm15, %v14112_v36 }
 0x2ff   : > { %11391 = vmatmul.mubr.msk.bf16.gmra.mrb[20].mxu0 %vm2562_vm15, %v9255_v9 }
 0x300   : > { %11394 = vmatprep.mubr.msk.bf16.mxu0 %vm2562_vm15, %v9536_v29 }
 0x307   : > { %11395 = vmatmul.mubr.msk.bf16.gmra.mrb[24].mxu0 %vm2562_vm15, %v9537_v62 }
 0x308   : > { %11398 = vmatprep.mubr.msk.bf16.mxu0 %vm2562_vm15, %v9538_v11 }
 0x30f   : > { %11399 = vmatmul.mubr.msk.bf16.gmra.mrb[28].mxu0 %vm2562_vm15, %v9539_v24 }
 0x396   : > { %v11168_v0 = vpop.f32.mrb[0].mxu1 }
 0x397   : > { %v5233_v1 = vpop.f32.mrb[1].mxu1 }
 0x398   : > { %v11169_v28 = vpop.f32.mrb[2].mxu1 }
 0x399   : > { %v5236_v36 = vpop.f32.mrb[3].mxu1 }
 0x39e   : > { %v11172_v56 = vpop.f32.mrb[4].mxu1 }
 0x39f   : > { %v5249_v10 = vpop.f32.mrb[5].mxu1 }
 0x3a0   : > { %v11173_v19 = vpop.f32.mrb[6].mxu1 }
 0x3a1   : > { %v5252_v15 = vpop.f32.mrb[7].mxu1 }
 0x3a6   : > { %v11176_v50 = vpop.f32.mrb[8].mxu1 }
 0x3a7   : > { %v5265_v39 = vpop.f32.mrb[9].mxu1 }
 0x3a8   : > { %v11177_v20 = vpop.f32.mrb[10].mxu1 }
 0x3a9   : > { %v5268_v60 = vpop.f32.mrb[11].mxu1 }
 0x3aa   : > { %v11372_v44 = vpop.f32.mrb[0].mxu0 }
 0x3ab   : > { %v11402_v30 = vadd.f32 %v11372_v44, %v11168_v0  ;;  %v9648_v3 = vpop.f32.mrb[1].mxu0 }
 0x3ac   : > { %v11403_v47 = vadd.f32 %v9648_v3, %v5233_v1  ;;  %v11373_v13 = vpop.f32.mrb[2].mxu0 }
 0x3ad   : > { %v9841_v31 = vadd.f32 %v11402_v30, %v14528_v57  ;;  %v11404_v51 = vadd.f32 %v11373_v13, %v11169_v28  ;;  %v9651_v48 = vpop.f32.mrb[3].mxu0 }
 0x3ae   : > { %v11180_v43 = vpop.f32.mrb[12].mxu1  ;;  %v9839_v4 = vadd.f32 %v11403_v47, %v14528_v57  ;;  %v11405_v21 = vadd.f32 %v9651_v48, %v5236_v36 }
 0x3af   : > { %v5281_v46 = vpop.f32.mrb[13].mxu1  ;;  %9873 = vst [vmem:[%s14532_s6 + $0x10] sm:$0xff] %v9841_v31  ;;  %v9842_v49 = vadd.f32 %v11404_v51, %v14528_v57 }
 0x3b0   : > { %v11181_v25 = vpop.f32.mrb[14].mxu1  ;;  %9871 = vst [vmem:[%s14532_s6] sm:$0xff] %v9839_v4  ;;  %v9840_v32 = vadd.f32 %v11405_v21, %v14528_v57 }
 0x3b1   : > { %v5284_v61 = vpop.f32.mrb[15].mxu1  ;;  %9874 = vst [vmem:[%s14532_s6 + $0x18] sm:$0xff] %v9842_v49 }
 0x3b2   : > { %9872 = vst [vmem:[%s14532_s6 + $0x8] sm:$0xff] %v9840_v32  ;;  %v11376_v6 = vpop.f32.mrb[4].mxu0 }
 0x3b3   : > { %v11406_v58 = vadd.f32 %v11376_v6, %v11172_v56  ;;  %v9664_v53 = vpop.f32.mrb[5].mxu0 }
 0x3b4   : > { %v11407_v55 = vadd.f32 %v9664_v53, %v5249_v10  ;;  %v11377_v12 = vpop.f32.mrb[6].mxu0 }
 0x3b5   : > { %v9845_v63 = vadd.f32 %v11406_v58, %v14528_v57  ;;  %v11408_v26 = vadd.f32 %v11377_v12, %v11173_v19  ;;  %v9667_v41 = vpop.f32.mrb[7].mxu0 }
 0x3b6   : > { %v11184_v35 = vpop.f32.mrb[16].mxu1  ;;  %v9843_v5 = vadd.f32 %v11407_v55, %v14528_v57  ;;  %v11409_v34 = vadd.f32 %v9667_v41, %v5252_v15 }
 0x3b7   : > { %v5297_v16 = vpop.f32.mrb[17].mxu1  ;;  %9877 = vst [vmem:[%s14532_s6 + $0x30] sm:$0xff] %v9845_v63  ;;  %v9846_v18 = vadd.f32 %v11408_v26, %v14528_v57 }
 0x3b8   : > { %v11185_v27 = vpop.f32.mrb[18].mxu1  ;;  %9875 = vst [vmem:[%s14532_s6 + $0x20] sm:$0xff] %v9843_v5  ;;  %v9844_v2 = vadd.f32 %v11409_v34, %v14528_v57 }
 0x3b9   : > { %v5300_v33 = vpop.f32.mrb[19].mxu1  ;;  %9878 = vst [vmem:[%s14532_s6 + $0x38] sm:$0xff] %v9846_v18 }
 0x3ba   : > { %9876 = vst [vmem:[%s14532_s6 + $0x28] sm:$0xff] %v9844_v2  ;;  %v11380_v9 = vpop.f32.mrb[8].mxu0 }
 0x3bb   : > { %v11410_v7 = vadd.f32 %v11380_v9, %v11176_v50  ;;  %v9680_v40 = vpop.f32.mrb[9].mxu0 }
 0x3bc   : > { %v11411_v14 = vadd.f32 %v9680_v40, %v5265_v39  ;;  %v11381_v59 = vpop.f32.mrb[10].mxu0 }
 0x3bd   : > { %v9849_v52 = vadd.f32 %v11410_v7, %v14528_v57  ;;  %v11412_v45 = vadd.f32 %v11381_v59, %v11177_v20  ;;  %v9683_v42 = vpop.f32.mrb[11].mxu0 }
 0x3be   : > { %v11188_v17 = vpop.f32.mrb[20].mxu1  ;;  %v9847_v23 = vadd.f32 %v11411_v14, %v14528_v57  ;;  %v11413_v54 = vadd.f32 %v9683_v42, %v5268_v60 }
 0x3bf   : > { %v5313_v37 = vpop.f32.mrb[21].mxu1  ;;  %9881 = vst [vmem:[%s14532_s6 + $0x50] sm:$0xff] %v9849_v52  ;;  %v9850_v38 = vadd.f32 %v11412_v45, %v14528_v57 }
 0x3c0   : > { %v11189_v8 = vpop.f32.mrb[22].mxu1  ;;  %9879 = vst [vmem:[%s14532_s6 + $0x40] sm:$0xff] %v9847_v23  ;;  %v9848_v29 = vadd.f32 %v11413_v54, %v14528_v57 }
 0x3c1   : > { %v5316_v22 = vpop.f32.mrb[23].mxu1  ;;  %9882 = vst [vmem:[%s14532_s6 + $0x58] sm:$0xff] %v9850_v38 }
 0x3c2   : > { %9880 = vst [vmem:[%s14532_s6 + $0x48] sm:$0xff] %v9848_v29  ;;  %v11384_v11 = vpop.f32.mrb[12].mxu0 }
 0x3c3   : > { %v11414_v62 = vadd.f32 %v11384_v11, %v11180_v43  ;;  %v9696_v24 = vpop.f32.mrb[13].mxu0 }
 0x3c4   : > { %v11415_v0 = vadd.f32 %v9696_v24, %v5281_v46  ;;  %v11385_v1 = vpop.f32.mrb[14].mxu0 }
 0x3c5   : > { %v9853_v36 = vadd.f32 %v11414_v62, %v14528_v57  ;;  %v11416_v56 = vadd.f32 %v11385_v1, %v11181_v25  ;;  %v9699_v10 = vpop.f32.mrb[15].mxu0 }
 0x3c6   : > { %v11192_v28 = vpop.f32.mrb[24].mxu1  ;;  %v9851_v15 = vadd.f32 %v11415_v0, %v14528_v57  ;;  %v11417_v50 = vadd.f32 %v9699_v10, %v5284_v61 }
 0x3c7   : > { %v5329_v19 = vpop.f32.mrb[25].mxu1  ;;  %9885 = vst [vmem:[%s14532_s6 + $0x70] sm:$0xff] %v9853_v36  ;;  %v9854_v20 = vadd.f32 %v11416_v56, %v14528_v57 }
 0x3c8   : > { %v11193_v39 = vpop.f32.mrb[26].mxu1  ;;  %9883 = vst [vmem:[%s14532_s6 + $0x60] sm:$0xff] %v9851_v15  ;;  %v9852_v44 = vadd.f32 %v11417_v50, %v14528_v57 }
 0x3c9   : > { %v5332_v60 = vpop.f32.mrb[27].mxu1  ;;  %9886 = vst [vmem:[%s14532_s6 + $0x78] sm:$0xff] %v9854_v20 }
 0x3ca   : > { %9884 = vst [vmem:[%s14532_s6 + $0x68] sm:$0xff] %v9852_v44  ;;  %v11388_v30 = vpop.f32.mrb[16].mxu0 }
 0x3cb   : > { %v11418_v3 = vadd.f32 %v11388_v30, %v11184_v35  ;;  %v9712_v47 = vpop.f32.mrb[17].mxu0 }
 0x3cc   : > { %v11419_v13 = vadd.f32 %v9712_v47, %v5297_v16  ;;  %v11389_v43 = vpop.f32.mrb[18].mxu0 }
 0x3cd   : > { %v9857_v51 = vadd.f32 %v11418_v3, %v14528_v57  ;;  %v11420_v48 = vadd.f32 %v11389_v43, %v11185_v27  ;;  %v9715_v46 = vpop.f32.mrb[19].mxu0 }
 0x3ce   : > { %v11196_v31 = vpop.f32.mrb[28].mxu1  ;;  %v9855_v21 = vadd.f32 %v11419_v13, %v14528_v57  ;;  %v11421_v25 = vadd.f32 %v9715_v46, %v5300_v33 }
 0x3cf   : > { %v5345_v4 = vpop.f32.mrb[29].mxu1  ;;  %9889 = vst [vmem:[%s14532_s6 + $0x90] sm:$0xff] %v9857_v51  ;;  %v9858_v61 = vadd.f32 %v11420_v48, %v14528_v57 }
 0x3d0   : > { %v11197_v49 = vpop.f32.mrb[30].mxu1  ;;  %9887 = vst [vmem:[%s14532_s6 + $0x80] sm:$0xff] %v9855_v21  ;;  %v9856_v6 = vadd.f32 %v11421_v25, %v14528_v57 }
 0x3d1   : > { %v5348_v32 = vpop.f32.mrb[31].mxu1  ;;  %9890 = vst [vmem:[%s14532_s6 + $0x98] sm:$0xff] %v9858_v61 }
 0x3d2   : > { %9888 = vst [vmem:[%s14532_s6 + $0x88] sm:$0xff] %v9856_v6  ;;  %v11392_v58 = vpop.f32.mrb[20].mxu0 }
 0x3d3   : > { %v11422_v53 = vadd.f32 %v11392_v58, %v11188_v17  ;;  %v9728_v55 = vpop.f32.mrb[21].mxu0 }
 0x3d4   : > { %v11423_v12 = vadd.f32 %v9728_v55, %v5313_v37  ;;  %v11393_v35 = vpop.f32.mrb[22].mxu0 }
 0x3d5   : > { %v9861_v63 = vadd.f32 %v11422_v53, %v14528_v57  ;;  %v11424_v26 = vadd.f32 %v11393_v35, %v11189_v8  ;;  %v9731_v41 = vpop.f32.mrb[23].mxu0 }
 0x3d6   : > { %v9859_v16 = vadd.f32 %v11423_v12, %v14528_v57  ;;  %v11425_v5 = vadd.f32 %v9731_v41, %v5316_v22 }
 0x3d7   : > { %9893 = vst [vmem:[%s14532_s6 + $0xb0] sm:$0xff] %v9861_v63  ;;  %v9862_v34 = vadd.f32 %v11424_v26, %v14528_v57 }
 0x3d8   : > { %9891 = vst [vmem:[%s14532_s6 + $0xa0] sm:$0xff] %v9859_v16  ;;  %v9860_v27 = vadd.f32 %v11425_v5, %v14528_v57 }
 0x3d9   : > { %9894 = vst [vmem:[%s14532_s6 + $0xb8] sm:$0xff] %v9862_v34 }
 0x3da   : > { %9892 = vst [vmem:[%s14532_s6 + $0xa8] sm:$0xff] %v9860_v27  ;;  %v11396_v18 = vpop.f32.mrb[24].mxu0 }
 0x3db   : > { %v11426_v33 = vadd.f32 %v11396_v18, %v11192_v28  ;;  %v9744_v2 = vpop.f32.mrb[25].mxu0 }
 0x3dc   : > { %v11427_v9 = vadd.f32 %v9744_v2, %v5329_v19  ;;  %v11397_v7 = vpop.f32.mrb[26].mxu0 }
 0x3dd   : > { %v9865_v40 = vadd.f32 %v11426_v33, %v14528_v57  ;;  %v11428_v14 = vadd.f32 %v11397_v7, %v11193_v39  ;;  %v9747_v59 = vpop.f32.mrb[27].mxu0 }
 0x3de   : > { %v9863_v17 = vadd.f32 %v11427_v9, %v14528_v57  ;;  %v11429_v52 = vadd.f32 %v9747_v59, %v5332_v60 }
 0x3df   : > { %9897 = vst [vmem:[%s14532_s6 + $0xd0] sm:$0xff] %v9865_v40  ;;  %v9866_v45 = vadd.f32 %v11428_v14, %v14528_v57 }
 0x3e0   : > { %9895 = vst [vmem:[%s14532_s6 + $0xc0] sm:$0xff] %v9863_v17  ;;  %v9864_v42 = vadd.f32 %v11429_v52, %v14528_v57 }
 0x3e1   : > { %9898 = vst [vmem:[%s14532_s6 + $0xd8] sm:$0xff] %v9866_v45 }
 0x3e2   : > { %9896 = vst [vmem:[%s14532_s6 + $0xc8] sm:$0xff] %v9864_v42  ;;  %v11400_v37 = vpop.f32.mrb[28].mxu0 }
 0x3e3   : > { %v11430_v23 = vadd.f32 %v11400_v37, %v11196_v31  ;;  %v9760_v54 = vpop.f32.mrb[29].mxu0 }
 0x3e4   : > { %v11431_v8 = vadd.f32 %v9760_v54, %v5345_v4  ;;  %v11401_v38 = vpop.f32.mrb[30].mxu0 }
 0x3e5   : > { %v9869_v22 = vadd.f32 %v11430_v23, %v14528_v57  ;;  %v11432_v29 = vadd.f32 %v11401_v38, %v11197_v49  ;;  %v9763_v11 = vpop.f32.mrb[31].mxu0 }
 0x3e6   : > { %v9867_v62 = vadd.f32 %v11431_v8, %v14528_v57  ;;  %v11433_v24 = vadd.f32 %v9763_v11, %v5348_v32 }
 0x3e7   : > { %9901 = vst [vmem:[%s14532_s6 + $0xf0] sm:$0xff] %v9869_v22  ;;  %v9870_v0 = vadd.f32 %v11432_v29, %v14528_v57 }
 0x3e8   : > { %9899 = vst [vmem:[%s14532_s6 + $0xe0] sm:$0xff] %v9867_v62  ;;  %v9868_v1 = vadd.f32 %v11433_v24, %v14528_v57 }
 0x3e9   : > { %9902 = vst [vmem:[%s14532_s6 + $0xf8] sm:$0xff] %v9870_v0 }
 0x3ea   : > { %9900 = vst [vmem:[%s14532_s6 + $0xe8] sm:$0xff] %v9868_v1 }
 0x3eb   : > { %12367 = shalt.err (!%p12364_p5)
}
 0x3ec   : > { %s12368_s26 = scalar_lea.hbm %s14597_s11, 4096  ;;  %s12372_s28 = scalar_lea.hbm %s14657_s3, 8192 }
 0x3ed   : > { %p12369_p6 = scmp.ne.s32.totalorder %s14597_s11, %s12368_s26  ;;  %p12373_p10 = scmp.lt.u32.totalorder %s14597_s11, %s14657_s3 }
 0x3ee   : > { %p12374_p11 = scmp.lt.u32.totalorder %s12372_s28, %s12368_s26  ;;  %p12376_p13 = scmp.lt.u32.totalorder %s12368_s26, %s14597_s11 }
 0x3ef   : > { %p12370_p7 = pnand %p12369_p6, %p12500_p4 }
 0x3f0   : > { %p12375_p12 = por %p12374_p11, %p12373_p10 }
 0x3f1   : > { %p12371_p9 = pneg %p12370_p7 }
 0x3f2   : > { %p12377_p0 = por %p12376_p13, %p12375_p12 }
 0x3f4   : > { %p12378_p1 = pnand %p12377_p0, %p12371_p9 }
 0x3f6   : > { %12381 = shalt.err (!%p12378_p1)
}
 0x3f7   : > { %s12439_s6 = smov 128  }
 0x3f8   : > { %11766 = dma.vmem_to_hbm [thread:$0]  (%p12500_p4), %s14601_s8, 4096, %s14597_s11, %s14607_s15, %s12439_s6, %s12439_s6, %s12435_s4  }
 0x3f9 PF: > { %p11772_p2 = scmp.ge.s32.totalorder %s12432_s17, 2  ;;  %s9932_s7 = sand.u32 1, %s12412_s12  }
 0x3fa   : > { %s9933_s9 = scalar_lea.sflag [#allocation5], %s9932_s7 }
 0x3fb   : > { %p11769_p3 = pnand %p11772_p2, %p12507_p8 }
 0x3fd   : > { %12407 = dma.done.wait (!%p11769_p3), %s9933_s9, 4096  }
 0x3fe   : > { %12409 = vsyncadd (!%p11769_p3), %s9933_s9, 4294963200  ;;  %s16_s17 = sadd.s32 1, %s12432_s17   ;;  %s14683_s12 = smov %s12416_s13 }
 0x3ff   : > { %p13_p5 = scmp.ge.s32.totalorder %s16_s17, 4   ;;  %s14684_s13 = smov %s12420_s14 }
 0x400   : > { %s14685_s14 = smov %s12513_s25  ;;  %s14686_s15 = smov %s12428_s16 }
 0x401   : > { %s14687_s16 = smov %s14689_s20  ;;  %15 = sbr.rel (!%p13_p5) target bundleno = 4 (0x4), region = 98 }
 0x408   :  { %9938 = vsyncpa [#allocation5], 1 }
 0x409   :  { %9940 = vsyncpa [#allocation5 + $0x1], 1 }

</bundles_post_ra>
